<compile_context>
chip_gen: v7x
topology: tpu7x:2x2x1
jax: 0.10.0
libtpu: 0.0.40
codegen_flags: <defaults>
</compile_context>

<pallas_src>
import jax
import jax.numpy as jnp
from jax import lax
from jax.experimental import pallas as pl
from jax.experimental.pallas import tpu as pltpu

IMG_RES = 16      # img_resolution
IMG_CH = 4        # img_channels
HIDDEN = 32       # hidden conv channels of the stand-in model
N_FREQ = 16       # Fourier frequencies  -> 2*N_FREQ features
EMB_HID = 64      # embedding MLP hidden width


# ----------------------------------------------------------------------------
# In-kernel 3x3 SAME conv on row-major slabs via 9 block-diagonal matmuls.
# ----------------------------------------------------------------------------
def _conv3x3(a, wbd_ref, cin):
    # a:       (B*H, W*cin) f32, lane index = w*cin + c
    # wbd_ref: (9, W*cin, W*cout) block-diagonal tap weights (bf16)
    m, width = a.shape
    nb = m // IMG_RES
    out_w = wbd_ref.shape[2]

    a3 = a.reshape(nb, IMG_RES, width)
    zrow = jnp.zeros((nb, 1, width), a.dtype)
    row_taps = (
        jnp.concatenate([zrow, a3[:, :-1, :]], axis=1).reshape(m, width),  # in[h-1]
        a,                                                                 # in[h]
        jnp.concatenate([a3[:, 1:, :], zrow], axis=1).reshape(m, width),   # in[h+1]
    )
    zcol = jnp.zeros((m, cin), a.dtype)

    acc = jnp.zeros((m, out_w), jnp.float32)
    for ky in range(3):
        av = row_taps[ky]
        for kx in range(3):
            if kx == 0:        # reads in[w-1]; zeros at w == 0
                t = jnp.concatenate([zcol, av[:, :-cin]], axis=1)
            elif kx == 2:      # reads in[w+1]; zeros at w == W-1
                t = jnp.concatenate([av[:, cin:], zcol], axis=1)
            else:              # reads in[w]
                t = av
            acc = acc + jnp.dot(t.astype(wbd_ref.dtype), wbd_ref[ky * 3 + kx],
                                preferred_element_type=jnp.float32)
    return acc


# ----------------------------------------------------------------------------
# Single fused kernel: one grid step processes batch_tile images end-to-end.
# ----------------------------------------------------------------------------
def fused_kernel(sig_ref, x_ref, freqs_ref, w1_ref, b1_ref, w2_ref, b2c_ref,
                 wbd1_ref, wbd2_ref, cb2_ref, o_ref):
    x = x_ref[...]                         # (M, W*C)  row-major image rows
    sig = sig_ref[...]                     # (M, 1)    per-image sigma, per row

    # ---- VEPrecond conditioning + Fourier-MLP noise embedding (batched) ----
    c_noise = jnp.log(0.5 * sig)                                      # (M, 1)
    ang = c_noise * freqs_ref[...]                                    # (M, F)
    feats = jnp.concatenate([jnp.cos(ang), jnp.sin(ang)], axis=-1)    # (M, 2F)
    e = jnp.dot(feats, w1_ref[...], preferred_element_type=jnp.float32) + b1_ref[...]
    e = e * jax.nn.sigmoid(e)                                         # SiLU
    emb = jnp.dot(e, w2_ref[...], preferred_element_type=jnp.float32) + b2c_ref[...]
    emb_row = jnp.concatenate([emb] * IMG_RES, axis=-1)               # (M, W*HID)

    # ---- conv1 (+emb, conv1 bias folded into b2c) + SiLU -------------------
    h1 = _conv3x3(x, wbd1_ref, IMG_CH) + emb_row
    h1 = h1 * jax.nn.sigmoid(h1)                                      # (M, W*HID)

    # ---- conv2 + bias  ->  F_x ---------------------------------------------
    f = _conv3x3(h1, wbd2_ref, HIDDEN) + cb2_ref[...]                 # (M, W*C)

    # ---- VE precond combine: D = c_skip*x + c_out*F, c_skip=1, c_out=sigma -
    o_ref[...] = x + sig * f


# ----------------------------------------------------------------------------
# Wrapper: layout prep (tiny XLA glue) + pallas_call.
# ----------------------------------------------------------------------------
def _blockdiag(cw):
    # HWIO (3,3,cin,cout) -> (9, W*cin, W*cout) block-diagonal tap matrices
    kh, kw, cin, cout = cw.shape
    eye = jnp.eye(IMG_RES, dtype=cw.dtype)
    wbd = jnp.einsum("xy,kio->kxiyo", eye, cw.reshape(kh * kw, cin, cout))
    return wbd.reshape(kh * kw, IMG_RES * cin, IMG_RES * cout)


def ve_precond_forward(x, sigma, params, batch_tile=None):
    # x: (N, C, H, W) float32 NCHW ; sigma: (N,)
    x = x.astype(jnp.float32)
    n = x.shape[0]
    h = w = IMG_RES
    sigma = jnp.broadcast_to(sigma.astype(jnp.float32).reshape(-1), (n,))

    if batch_tile is None:                       # images per grid step
        batch_tile = max(1, min(8, n // 2)) if n >= 2 else 1
    b = int(batch_tile)
    n_pad = -(-n // b) * b
    if n_pad != n:
        x = jnp.concatenate(
            [x, jnp.zeros((n_pad - n,) + x.shape[1:], jnp.float32)], axis=0)
        sigma = jnp.concatenate(
            [sigma, jnp.ones((n_pad - n,), jnp.float32)], axis=0)

    # Lane-dense row-major slabs: one image row == one (W*C)-wide slab row.
    x_rows = jnp.transpose(x, (0, 2, 3, 1)).reshape(n_pad * h, w * IMG_CH)
    sig_rows = jnp.repeat(sigma, h).reshape(n_pad * h, 1)

    wbd1 = _blockdiag(params["cw1"]).astype(jnp.bfloat16)     # (9,  64, 512)
    wbd2 = _blockdiag(params["cw2"]).astype(jnp.bfloat16)     # (9, 512,  64)
    b2c = params["b2"] + params["cb1"]                        # fold conv1 bias
    cb2_row = jnp.tile(params["cb2"], (1, w))                 # (1, W*C)

    m = b * h
    d_rows = pl.pallas_call(
        fused_kernel,
        out_shape=jax.ShapeDtypeStruct((n_pad * h, w * IMG_CH), jnp.float32),
        grid=(n_pad // b,),
        in_specs=[
            pl.BlockSpec((m, 1), lambda i: (i, 0)),                         # sigma rows
            pl.BlockSpec((m, w * IMG_CH), lambda i: (i, 0)),                # x rows
            pl.BlockSpec((1, N_FREQ), lambda i: (0, 0)),                    # freqs
            pl.BlockSpec((2 * N_FREQ, EMB_HID), lambda i: (0, 0)),          # w1
            pl.BlockSpec((1, EMB_HID), lambda i: (0, 0)),                   # b1
            pl.BlockSpec((EMB_HID, HIDDEN), lambda i: (0, 0)),              # w2
            pl.BlockSpec((1, HIDDEN), lambda i: (0, 0)),                    # b2 + cb1
            pl.BlockSpec((9, w * IMG_CH, w * HIDDEN), lambda i: (0, 0, 0)), # wbd1
            pl.BlockSpec((9, w * HIDDEN, w * IMG_CH), lambda i: (0, 0, 0)), # wbd2
            pl.BlockSpec((1, w * IMG_CH), lambda i: (0, 0)),                # cb2 row
        ],
        out_specs=pl.BlockSpec((m, w * IMG_CH), lambda i: (i, 0)),
        compiler_params=pltpu.CompilerParams(
            dimension_semantics=("parallel",)),                # megacore split
    )(sig_rows, x_rows, params["freqs"], params["w1"], params["b1"],
      params["w2"], b2c, wbd1, wbd2, cb2_row)

    d = d_rows.reshape(n_pad, h, w, IMG_CH)[:n]
    return jnp.transpose(d, (0, 3, 1, 2))                      # NHWC -> NCHW


# ----------------------------------------------------------------------------
# Deterministic parameter init + pure-JAX reference for verification.
# ----------------------------------------------------------------------------
def build_params(key):
    ks = jax.random.split(key, 9)
    p = {}
    p["freqs"] = jax.random.normal(ks[0], (1, N_FREQ), jnp.float32)
    p["w1"] = jax.random.normal(ks[1], (2 * N_FREQ, EMB_HID), jnp.float32) * 0.1
    p["b1"] = jax.random.normal(ks[2], (1, EMB_HID), jnp.float32) * 0.1
    p["w2"] = jax.random.normal(ks[3], (EMB_HID, HIDDEN), jnp.float32) * 0.1
    p["b2"] = jax.random.normal(ks[4], (1, HIDDEN), jnp.float32) * 0.1
    p["cw1"] = jax.random.normal(ks[5], (3, 3, IMG_CH, HIDDEN), jnp.float32) * 0.1
    p["cb1"] = jax.random.normal(ks[6], (1, HIDDEN), jnp.float32) * 0.1
    p["cw2"] = jax.random.normal(ks[7], (3, 3, HIDDEN, IMG_CH), jnp.float32) * 0.1
    p["cb2"] = jax.random.normal(ks[8], (1, IMG_CH), jnp.float32) * 0.1
    return p


def ref_forward(x, sigma, params):
    c_noise = jnp.log(0.5 * sigma)                              # (N,)
    ang = c_noise[:, None] * params["freqs"][0]                 # (N, F)
    feats = jnp.concatenate([jnp.cos(ang), jnp.sin(ang)], -1)
    h = feats @ params["w1"] + params["b1"]
    h = h * jax.nn.sigmoid(h)
    emb = h @ params["w2"] + params["b2"]                       # (N, HIDDEN)
    x_nhwc = jnp.transpose(x, (0, 2, 3, 1))
    h1 = lax.conv_general_dilated(
        x_nhwc, params["cw1"], (1, 1), "SAME",
        dimension_numbers=("NHWC", "HWIO", "NHWC")) + params["cb1"][0]
    h1 = h1 + emb[:, None, None, :]
    h1 = h1 * jax.nn.sigmoid(h1)
    f = lax.conv_general_dilated(
        h1, params["cw2"], (1, 1), "SAME",
        dimension_numbers=("NHWC", "HWIO", "NHWC")) + params["cb2"][0]
    f_nchw = jnp.transpose(f, (0, 3, 1, 2))
    return x + sigma[:, None, None, None] * f_nchw


if __name__ == "__main__":
    key = jax.random.PRNGKey(0)
    kx, ks, kp = jax.random.split(key, 3)
    N = 2
    x = jax.random.normal(kx, (N, IMG_CH, IMG_RES, IMG_RES), jnp.float32)
    # sigma in [sigma_min, sigma_max] = [0.02, 100]
    sigma = jnp.exp(jax.random.uniform(
        ks, (N,), jnp.float32, jnp.log(0.02), jnp.log(100.0)))
    params = build_params(kp)

    fwd = jax.jit(ve_precond_forward)
    out = jax.block_until_ready(fwd(x, sigma, params))
    ref = jax.block_until_ready(ref_forward(x, sigma, params))

    assert out.shape == x.shape and out.dtype == jnp.float32
    err = float(jnp.max(jnp.abs(out - ref)))
    scale = 1.0 + float(jnp.max(jnp.abs(ref)))
    # conv matmuls run with bf16 operands (f32 accumulation) -> 3e-2 rel tol.
    assert err <= 3e-2 * scale, f"max abs err {err} (scale {scale})"
    print("KERNEL_OK")
</pallas_src>

<mosaic_0001>
module attributes {stable_mosaic.version = 11 : i64} {
  func.func @fused_kernel(%arg0: i32, %arg1: memref<16x1xf32, #tpu.memory_space<vmem>>, %arg2: memref<16x64xf32, #tpu.memory_space<vmem>>, %arg3: memref<1x16xf32, #tpu.memory_space<vmem>>, %arg4: memref<32x64xf32, #tpu.memory_space<vmem>>, %arg5: memref<1x64xf32, #tpu.memory_space<vmem>>, %arg6: memref<64x32xf32, #tpu.memory_space<vmem>>, %arg7: memref<1x32xf32, #tpu.memory_space<vmem>>, %arg8: memref<9x64x512xbf16, #tpu.memory_space<vmem>>, %arg9: memref<9x512x64xbf16, #tpu.memory_space<vmem>>, %arg10: memref<1x64xf32, #tpu.memory_space<vmem>>, %arg11: memref<16x64xf32, #tpu.memory_space<vmem>>) attributes {dimension_semantics = [#tpu.dimension_semantics<parallel>], iteration_bounds = array<i64: 2>, scalar_prefetch = 0 : i64, scratch_operands = 0 : i64, tpu.core_type = #tpu.core_type<tc>, window_params = [{transform_indices = @transform_0, window_bounds = array<i64: 16, 1>}, {transform_indices = @transform_1, window_bounds = array<i64: 16, 64>}, {pipeline_mode = #tpu.pipeline_mode<synchronous>, transform_indices = @transform_2, window_bounds = array<i64: 1, 16>}, {pipeline_mode = #tpu.pipeline_mode<synchronous>, transform_indices = @transform_3, window_bounds = array<i64: 32, 64>}, {pipeline_mode = #tpu.pipeline_mode<synchronous>, transform_indices = @transform_4, window_bounds = array<i64: 1, 64>}, {pipeline_mode = #tpu.pipeline_mode<synchronous>, transform_indices = @transform_5, window_bounds = array<i64: 64, 32>}, {pipeline_mode = #tpu.pipeline_mode<synchronous>, transform_indices = @transform_6, window_bounds = array<i64: 1, 32>}, {pipeline_mode = #tpu.pipeline_mode<synchronous>, transform_indices = @transform_7, window_bounds = array<i64: 9, 64, 512>}, {pipeline_mode = #tpu.pipeline_mode<synchronous>, transform_indices = @transform_8, window_bounds = array<i64: 9, 512, 64>}, {pipeline_mode = #tpu.pipeline_mode<synchronous>, transform_indices = @transform_9, window_bounds = array<i64: 1, 64>}, {transform_indices = @transform_10, window_bounds = array<i64: 16, 64>}]} {
    %c0 = arith.constant 0 : index
    %c0_0 = arith.constant 0 : index
    %0 = vector.load %arg2[%c0, %c0_0] : memref<16x64xf32, #tpu.memory_space<vmem>>, vector<16x64xf32>
    %c0_1 = arith.constant 0 : index
    %c0_2 = arith.constant 0 : index
    %1 = vector.load %arg1[%c0_1, %c0_2] : memref<16x1xf32, #tpu.memory_space<vmem>>, vector<16x1xf32>
    %cst = arith.constant 5.000000e-01 : f32
    %2 = vector.broadcast %cst : f32 to vector<16x1xf32>
    %3 = arith.mulf %2, %1 : vector<16x1xf32>
    %4 = math.log %3 : vector<16x1xf32>
    %c0_3 = arith.constant 0 : index
    %c0_4 = arith.constant 0 : index
    %5 = vector.load %arg3[%c0_3, %c0_4] : memref<1x16xf32, #tpu.memory_space<vmem>>, vector<1x16xf32>
    %6 = vector.broadcast %4 : vector<16x1xf32> to vector<16x16xf32>
    %7 = vector.broadcast %5 : vector<1x16xf32> to vector<16x16xf32>
    %8 = arith.mulf %6, %7 : vector<16x16xf32>
    %9 = math.cos %8 : vector<16x16xf32>
    %10 = math.sin %8 : vector<16x16xf32>
    %11 = tpu.concatenate %9, %10 in 1 : vector<16x16xf32>, vector<16x16xf32> -> vector<16x32xf32>
    %c0_5 = arith.constant 0 : index
    %c0_6 = arith.constant 0 : index
    %12 = vector.load %arg4[%c0_5, %c0_6] : memref<32x64xf32, #tpu.memory_space<vmem>>, vector<32x64xf32>
    %cst_7 = arith.constant dense<0.000000e+00> : vector<16x64xf32>
    %13 = tpu.matmul %11, %12, %cst_7 {dimension_numbers = #tpu.dot_dimension_numbers<[1], [0], [0], [1], [0, 0, 1, 1], [], []>} : vector<16x32xf32>, vector<32x64xf32>, vector<16x64xf32> -> vector<16x64xf32>
    %c0_8 = arith.constant 0 : index
    %c0_9 = arith.constant 0 : index
    %14 = vector.load %arg5[%c0_8, %c0_9] : memref<1x64xf32, #tpu.memory_space<vmem>>, vector<1x64xf32>
    %15 = vector.broadcast %14 : vector<1x64xf32> to vector<16x64xf32>
    %16 = arith.addf %13, %15 : vector<16x64xf32>
    %17 = arith.negf %16 : vector<16x64xf32>
    %18 = math.exp %17 : vector<16x64xf32>
    %cst_10 = arith.constant 1.000000e+00 : f32
    %19 = vector.broadcast %cst_10 : f32 to vector<16x64xf32>
    %20 = arith.addf %19, %18 : vector<16x64xf32>
    %21 = arith.divf %19, %20 : vector<16x64xf32>
    %22 = arith.mulf %16, %21 : vector<16x64xf32>
    %c0_11 = arith.constant 0 : index
    %c0_12 = arith.constant 0 : index
    %23 = vector.load %arg6[%c0_11, %c0_12] : memref<64x32xf32, #tpu.memory_space<vmem>>, vector<64x32xf32>
    %cst_13 = arith.constant dense<0.000000e+00> : vector<16x32xf32>
    %24 = tpu.matmul %22, %23, %cst_13 {dimension_numbers = #tpu.dot_dimension_numbers<[1], [0], [0], [1], [0, 0, 1, 1], [], []>} : vector<16x64xf32>, vector<64x32xf32>, vector<16x32xf32> -> vector<16x32xf32>
    %c0_14 = arith.constant 0 : index
    %c0_15 = arith.constant 0 : index
    %25 = vector.load %arg7[%c0_14, %c0_15] : memref<1x32xf32, #tpu.memory_space<vmem>>, vector<1x32xf32>
    %26 = vector.broadcast %25 : vector<1x32xf32> to vector<16x32xf32>
    %27 = arith.addf %24, %26 : vector<16x32xf32>
    %28 = tpu.concatenate %27, %27, %27, %27, %27, %27, %27, %27, %27, %27, %27, %27, %27, %27, %27, %27 in 1 : vector<16x32xf32>, vector<16x32xf32>, vector<16x32xf32>, vector<16x32xf32>, vector<16x32xf32>, vector<16x32xf32>, vector<16x32xf32>, vector<16x32xf32>, vector<16x32xf32>, vector<16x32xf32>, vector<16x32xf32>, vector<16x32xf32>, vector<16x32xf32>, vector<16x32xf32>, vector<16x32xf32>, vector<16x32xf32> -> vector<16x512xf32>
    %29 = vector.shape_cast %0 : vector<16x64xf32> to vector<1x16x64xf32>
    %cst_16 = arith.constant 0.000000e+00 : f32
    %30 = vector.broadcast %cst_16 : f32 to vector<1x1x64xf32>
    %31 = vector.extract_strided_slice %29 {offsets = [0, 0, 0], sizes = [1, 15, 64], strides = [1, 1, 1]} : vector<1x16x64xf32> to vector<1x15x64xf32>
    %32 = tpu.concatenate %30, %31 in 1 : vector<1x1x64xf32>, vector<1x15x64xf32> -> vector<1x16x64xf32>
    %33 = vector.shape_cast %32 : vector<1x16x64xf32> to vector<16x64xf32>
    %34 = vector.extract_strided_slice %29 {offsets = [0, 1, 0], sizes = [1, 15, 64], strides = [1, 1, 1]} : vector<1x16x64xf32> to vector<1x15x64xf32>
    %35 = tpu.concatenate %34, %30 in 1 : vector<1x15x64xf32>, vector<1x1x64xf32> -> vector<1x16x64xf32>
    %36 = vector.shape_cast %35 : vector<1x16x64xf32> to vector<16x64xf32>
    %cst_17 = arith.constant 0.000000e+00 : f32
    %37 = vector.broadcast %cst_17 : f32 to vector<16x4xf32>
    %cst_18 = arith.constant 0.000000e+00 : f32
    %38 = vector.broadcast %cst_18 : f32 to vector<16x512xf32>
    %39 = vector.extract_strided_slice %33 {offsets = [0, 0], sizes = [16, 60], strides = [1, 1]} : vector<16x64xf32> to vector<16x60xf32>
    %40 = tpu.concatenate %37, %39 in 1 : vector<16x4xf32>, vector<16x60xf32> -> vector<16x64xf32>
    %41 = arith.truncf %40 : vector<16x64xf32> to vector<16x64xbf16>
    %c0_19 = arith.constant 0 : index
    %c0_20 = arith.constant 0 : index
    %c0_21 = arith.constant 0 : index
    %42 = vector.load %arg8[%c0_19, %c0_20, %c0_21] : memref<9x64x512xbf16, #tpu.memory_space<vmem>>, vector<1x64x512xbf16>
    %43 = vector.shape_cast %42 : vector<1x64x512xbf16> to vector<64x512xbf16>
    %cst_22 = arith.constant dense<0.000000e+00> : vector<16x512xf32>
    %44 = tpu.matmul %41, %43, %cst_22 {dimension_numbers = #tpu.dot_dimension_numbers<[1], [0], [0], [1], [0, 0, 1, 1], [], []>} : vector<16x64xbf16>, vector<64x512xbf16>, vector<16x512xf32> -> vector<16x512xf32>
    %45 = arith.addf %38, %44 : vector<16x512xf32>
    %46 = arith.truncf %33 : vector<16x64xf32> to vector<16x64xbf16>
    %c1 = arith.constant 1 : index
    %c0_23 = arith.constant 0 : index
    %c0_24 = arith.constant 0 : index
    %47 = vector.load %arg8[%c1, %c0_23, %c0_24] : memref<9x64x512xbf16, #tpu.memory_space<vmem>>, vector<1x64x512xbf16>
    %48 = vector.shape_cast %47 : vector<1x64x512xbf16> to vector<64x512xbf16>
    %cst_25 = arith.constant dense<0.000000e+00> : vector<16x512xf32>
    %49 = tpu.matmul %46, %48, %cst_25 {dimension_numbers = #tpu.dot_dimension_numbers<[1], [0], [0], [1], [0, 0, 1, 1], [], []>} : vector<16x64xbf16>, vector<64x512xbf16>, vector<16x512xf32> -> vector<16x512xf32>
    %50 = arith.addf %45, %49 : vector<16x512xf32>
    %51 = vector.extract_strided_slice %33 {offsets = [0, 4], sizes = [16, 60], strides = [1, 1]} : vector<16x64xf32> to vector<16x60xf32>
    %52 = tpu.concatenate %51, %37 in 1 : vector<16x60xf32>, vector<16x4xf32> -> vector<16x64xf32>
    %53 = arith.truncf %52 : vector<16x64xf32> to vector<16x64xbf16>
    %c2 = arith.constant 2 : index
    %c0_26 = arith.constant 0 : index
    %c0_27 = arith.constant 0 : index
    %54 = vector.load %arg8[%c2, %c0_26, %c0_27] : memref<9x64x512xbf16, #tpu.memory_space<vmem>>, vector<1x64x512xbf16>
    %55 = vector.shape_cast %54 : vector<1x64x512xbf16> to vector<64x512xbf16>
    %cst_28 = arith.constant dense<0.000000e+00> : vector<16x512xf32>
    %56 = tpu.matmul %53, %55, %cst_28 {dimension_numbers = #tpu.dot_dimension_numbers<[1], [0], [0], [1], [0, 0, 1, 1], [], []>} : vector<16x64xbf16>, vector<64x512xbf16>, vector<16x512xf32> -> vector<16x512xf32>
    %57 = arith.addf %50, %56 : vector<16x512xf32>
    %58 = vector.extract_strided_slice %0 {offsets = [0, 0], sizes = [16, 60], strides = [1, 1]} : vector<16x64xf32> to vector<16x60xf32>
    %59 = tpu.concatenate %37, %58 in 1 : vector<16x4xf32>, vector<16x60xf32> -> vector<16x64xf32>
    %60 = arith.truncf %59 : vector<16x64xf32> to vector<16x64xbf16>
    %c3 = arith.constant 3 : index
    %c0_29 = arith.constant 0 : index
    %c0_30 = arith.constant 0 : index
    %61 = vector.load %arg8[%c3, %c0_29, %c0_30] : memref<9x64x512xbf16, #tpu.memory_space<vmem>>, vector<1x64x512xbf16>
    %62 = vector.shape_cast %61 : vector<1x64x512xbf16> to vector<64x512xbf16>
    %cst_31 = arith.constant dense<0.000000e+00> : vector<16x512xf32>
    %63 = tpu.matmul %60, %62, %cst_31 {dimension_numbers = #tpu.dot_dimension_numbers<[1], [0], [0], [1], [0, 0, 1, 1], [], []>} : vector<16x64xbf16>, vector<64x512xbf16>, vector<16x512xf32> -> vector<16x512xf32>
    %64 = arith.addf %57, %63 : vector<16x512xf32>
    %65 = arith.truncf %0 : vector<16x64xf32> to vector<16x64xbf16>
    %c4 = arith.constant 4 : index
    %c0_32 = arith.constant 0 : index
    %c0_33 = arith.constant 0 : index
    %66 = vector.load %arg8[%c4, %c0_32, %c0_33] : memref<9x64x512xbf16, #tpu.memory_space<vmem>>, vector<1x64x512xbf16>
    %67 = vector.shape_cast %66 : vector<1x64x512xbf16> to vector<64x512xbf16>
    %cst_34 = arith.constant dense<0.000000e+00> : vector<16x512xf32>
    %68 = tpu.matmul %65, %67, %cst_34 {dimension_numbers = #tpu.dot_dimension_numbers<[1], [0], [0], [1], [0, 0, 1, 1], [], []>} : vector<16x64xbf16>, vector<64x512xbf16>, vector<16x512xf32> -> vector<16x512xf32>
    %69 = arith.addf %64, %68 : vector<16x512xf32>
    %70 = vector.extract_strided_slice %0 {offsets = [0, 4], sizes = [16, 60], strides = [1, 1]} : vector<16x64xf32> to vector<16x60xf32>
    %71 = tpu.concatenate %70, %37 in 1 : vector<16x60xf32>, vector<16x4xf32> -> vector<16x64xf32>
    %72 = arith.truncf %71 : vector<16x64xf32> to vector<16x64xbf16>
    %c5 = arith.constant 5 : index
    %c0_35 = arith.constant 0 : index
    %c0_36 = arith.constant 0 : index
    %73 = vector.load %arg8[%c5, %c0_35, %c0_36] : memref<9x64x512xbf16, #tpu.memory_space<vmem>>, vector<1x64x512xbf16>
    %74 = vector.shape_cast %73 : vector<1x64x512xbf16> to vector<64x512xbf16>
    %cst_37 = arith.constant dense<0.000000e+00> : vector<16x512xf32>
    %75 = tpu.matmul %72, %74, %cst_37 {dimension_numbers = #tpu.dot_dimension_numbers<[1], [0], [0], [1], [0, 0, 1, 1], [], []>} : vector<16x64xbf16>, vector<64x512xbf16>, vector<16x512xf32> -> vector<16x512xf32>
    %76 = arith.addf %69, %75 : vector<16x512xf32>
    %77 = vector.extract_strided_slice %36 {offsets = [0, 0], sizes = [16, 60], strides = [1, 1]} : vector<16x64xf32> to vector<16x60xf32>
    %78 = tpu.concatenate %37, %77 in 1 : vector<16x4xf32>, vector<16x60xf32> -> vector<16x64xf32>
    %79 = arith.truncf %78 : vector<16x64xf32> to vector<16x64xbf16>
    %c6 = arith.constant 6 : index
    %c0_38 = arith.constant 0 : index
    %c0_39 = arith.constant 0 : index
    %80 = vector.load %arg8[%c6, %c0_38, %c0_39] : memref<9x64x512xbf16, #tpu.memory_space<vmem>>, vector<1x64x512xbf16>
    %81 = vector.shape_cast %80 : vector<1x64x512xbf16> to vector<64x512xbf16>
    %cst_40 = arith.constant dense<0.000000e+00> : vector<16x512xf32>
    %82 = tpu.matmul %79, %81, %cst_40 {dimension_numbers = #tpu.dot_dimension_numbers<[1], [0], [0], [1], [0, 0, 1, 1], [], []>} : vector<16x64xbf16>, vector<64x512xbf16>, vector<16x512xf32> -> vector<16x512xf32>
    %83 = arith.addf %76, %82 : vector<16x512xf32>
    %84 = arith.truncf %36 : vector<16x64xf32> to vector<16x64xbf16>
    %c7 = arith.constant 7 : index
    %c0_41 = arith.constant 0 : index
    %c0_42 = arith.constant 0 : index
    %85 = vector.load %arg8[%c7, %c0_41, %c0_42] : memref<9x64x512xbf16, #tpu.memory_space<vmem>>, vector<1x64x512xbf16>
    %86 = vector.shape_cast %85 : vector<1x64x512xbf16> to vector<64x512xbf16>
    %cst_43 = arith.constant dense<0.000000e+00> : vector<16x512xf32>
    %87 = tpu.matmul %84, %86, %cst_43 {dimension_numbers = #tpu.dot_dimension_numbers<[1], [0], [0], [1], [0, 0, 1, 1], [], []>} : vector<16x64xbf16>, vector<64x512xbf16>, vector<16x512xf32> -> vector<16x512xf32>
    %88 = arith.addf %83, %87 : vector<16x512xf32>
    %89 = vector.extract_strided_slice %36 {offsets = [0, 4], sizes = [16, 60], strides = [1, 1]} : vector<16x64xf32> to vector<16x60xf32>
    %90 = tpu.concatenate %89, %37 in 1 : vector<16x60xf32>, vector<16x4xf32> -> vector<16x64xf32>
    %91 = arith.truncf %90 : vector<16x64xf32> to vector<16x64xbf16>
    %c8 = arith.constant 8 : index
    %c0_44 = arith.constant 0 : index
    %c0_45 = arith.constant 0 : index
    %92 = vector.load %arg8[%c8, %c0_44, %c0_45] : memref<9x64x512xbf16, #tpu.memory_space<vmem>>, vector<1x64x512xbf16>
    %93 = vector.shape_cast %92 : vector<1x64x512xbf16> to vector<64x512xbf16>
    %cst_46 = arith.constant dense<0.000000e+00> : vector<16x512xf32>
    %94 = tpu.matmul %91, %93, %cst_46 {dimension_numbers = #tpu.dot_dimension_numbers<[1], [0], [0], [1], [0, 0, 1, 1], [], []>} : vector<16x64xbf16>, vector<64x512xbf16>, vector<16x512xf32> -> vector<16x512xf32>
    %95 = arith.addf %88, %94 : vector<16x512xf32>
    %96 = arith.addf %95, %28 : vector<16x512xf32>
    %97 = arith.negf %96 : vector<16x512xf32>
    %98 = math.exp %97 : vector<16x512xf32>
    %cst_47 = arith.constant 1.000000e+00 : f32
    %99 = vector.broadcast %cst_47 : f32 to vector<16x512xf32>
    %100 = arith.addf %99, %98 : vector<16x512xf32>
    %101 = arith.divf %99, %100 : vector<16x512xf32>
    %102 = arith.mulf %96, %101 : vector<16x512xf32>
    %103 = vector.shape_cast %102 : vector<16x512xf32> to vector<1x16x512xf32>
    %cst_48 = arith.constant 0.000000e+00 : f32
    %104 = vector.broadcast %cst_48 : f32 to vector<1x1x512xf32>
    %105 = vector.extract_strided_slice %103 {offsets = [0, 0, 0], sizes = [1, 15, 512], strides = [1, 1, 1]} : vector<1x16x512xf32> to vector<1x15x512xf32>
    %106 = tpu.concatenate %104, %105 in 1 : vector<1x1x512xf32>, vector<1x15x512xf32> -> vector<1x16x512xf32>
    %107 = vector.shape_cast %106 : vector<1x16x512xf32> to vector<16x512xf32>
    %108 = vector.extract_strided_slice %103 {offsets = [0, 1, 0], sizes = [1, 15, 512], strides = [1, 1, 1]} : vector<1x16x512xf32> to vector<1x15x512xf32>
    %109 = tpu.concatenate %108, %104 in 1 : vector<1x15x512xf32>, vector<1x1x512xf32> -> vector<1x16x512xf32>
    %110 = vector.shape_cast %109 : vector<1x16x512xf32> to vector<16x512xf32>
    %cst_49 = arith.constant 0.000000e+00 : f32
    %111 = vector.broadcast %cst_49 : f32 to vector<16x32xf32>
    %cst_50 = arith.constant 0.000000e+00 : f32
    %112 = vector.broadcast %cst_50 : f32 to vector<16x64xf32>
    %113 = vector.extract_strided_slice %107 {offsets = [0, 0], sizes = [16, 480], strides = [1, 1]} : vector<16x512xf32> to vector<16x480xf32>
    %114 = tpu.concatenate %111, %113 in 1 : vector<16x32xf32>, vector<16x480xf32> -> vector<16x512xf32>
    %115 = arith.truncf %114 : vector<16x512xf32> to vector<16x512xbf16>
    %c0_51 = arith.constant 0 : index
    %c0_52 = arith.constant 0 : index
    %c0_53 = arith.constant 0 : index
    %116 = vector.load %arg9[%c0_51, %c0_52, %c0_53] : memref<9x512x64xbf16, #tpu.memory_space<vmem>>, vector<1x512x64xbf16>
    %117 = vector.shape_cast %116 : vector<1x512x64xbf16> to vector<512x64xbf16>
    %cst_54 = arith.constant dense<0.000000e+00> : vector<16x64xf32>
    %118 = tpu.matmul %115, %117, %cst_54 {dimension_numbers = #tpu.dot_dimension_numbers<[1], [0], [0], [1], [0, 0, 1, 1], [], []>} : vector<16x512xbf16>, vector<512x64xbf16>, vector<16x64xf32> -> vector<16x64xf32>
    %119 = arith.addf %112, %118 : vector<16x64xf32>
    %120 = arith.truncf %107 : vector<16x512xf32> to vector<16x512xbf16>
    %c1_55 = arith.constant 1 : index
    %c0_56 = arith.constant 0 : index
    %c0_57 = arith.constant 0 : index
    %121 = vector.load %arg9[%c1_55, %c0_56, %c0_57] : memref<9x512x64xbf16, #tpu.memory_space<vmem>>, vector<1x512x64xbf16>
    %122 = vector.shape_cast %121 : vector<1x512x64xbf16> to vector<512x64xbf16>
    %cst_58 = arith.constant dense<0.000000e+00> : vector<16x64xf32>
    %123 = tpu.matmul %120, %122, %cst_58 {dimension_numbers = #tpu.dot_dimension_numbers<[1], [0], [0], [1], [0, 0, 1, 1], [], []>} : vector<16x512xbf16>, vector<512x64xbf16>, vector<16x64xf32> -> vector<16x64xf32>
    %124 = arith.addf %119, %123 : vector<16x64xf32>
    %125 = vector.extract_strided_slice %107 {offsets = [0, 32], sizes = [16, 480], strides = [1, 1]} : vector<16x512xf32> to vector<16x480xf32>
    %126 = tpu.concatenate %125, %111 in 1 : vector<16x480xf32>, vector<16x32xf32> -> vector<16x512xf32>
    %127 = arith.truncf %126 : vector<16x512xf32> to vector<16x512xbf16>
    %c2_59 = arith.constant 2 : index
    %c0_60 = arith.constant 0 : index
    %c0_61 = arith.constant 0 : index
    %128 = vector.load %arg9[%c2_59, %c0_60, %c0_61] : memref<9x512x64xbf16, #tpu.memory_space<vmem>>, vector<1x512x64xbf16>
    %129 = vector.shape_cast %128 : vector<1x512x64xbf16> to vector<512x64xbf16>
    %cst_62 = arith.constant dense<0.000000e+00> : vector<16x64xf32>
    %130 = tpu.matmul %127, %129, %cst_62 {dimension_numbers = #tpu.dot_dimension_numbers<[1], [0], [0], [1], [0, 0, 1, 1], [], []>} : vector<16x512xbf16>, vector<512x64xbf16>, vector<16x64xf32> -> vector<16x64xf32>
    %131 = arith.addf %124, %130 : vector<16x64xf32>
    %132 = vector.extract_strided_slice %102 {offsets = [0, 0], sizes = [16, 480], strides = [1, 1]} : vector<16x512xf32> to vector<16x480xf32>
    %133 = tpu.concatenate %111, %132 in 1 : vector<16x32xf32>, vector<16x480xf32> -> vector<16x512xf32>
    %134 = arith.truncf %133 : vector<16x512xf32> to vector<16x512xbf16>
    %c3_63 = arith.constant 3 : index
    %c0_64 = arith.constant 0 : index
    %c0_65 = arith.constant 0 : index
    %135 = vector.load %arg9[%c3_63, %c0_64, %c0_65] : memref<9x512x64xbf16, #tpu.memory_space<vmem>>, vector<1x512x64xbf16>
    %136 = vector.shape_cast %135 : vector<1x512x64xbf16> to vector<512x64xbf16>
    %cst_66 = arith.constant dense<0.000000e+00> : vector<16x64xf32>
    %137 = tpu.matmul %134, %136, %cst_66 {dimension_numbers = #tpu.dot_dimension_numbers<[1], [0], [0], [1], [0, 0, 1, 1], [], []>} : vector<16x512xbf16>, vector<512x64xbf16>, vector<16x64xf32> -> vector<16x64xf32>
    %138 = arith.addf %131, %137 : vector<16x64xf32>
    %139 = arith.truncf %102 : vector<16x512xf32> to vector<16x512xbf16>
    %c4_67 = arith.constant 4 : index
    %c0_68 = arith.constant 0 : index
    %c0_69 = arith.constant 0 : index
    %140 = vector.load %arg9[%c4_67, %c0_68, %c0_69] : memref<9x512x64xbf16, #tpu.memory_space<vmem>>, vector<1x512x64xbf16>
    %141 = vector.shape_cast %140 : vector<1x512x64xbf16> to vector<512x64xbf16>
    %cst_70 = arith.constant dense<0.000000e+00> : vector<16x64xf32>
    %142 = tpu.matmul %139, %141, %cst_70 {dimension_numbers = #tpu.dot_dimension_numbers<[1], [0], [0], [1], [0, 0, 1, 1], [], []>} : vector<16x512xbf16>, vector<512x64xbf16>, vector<16x64xf32> -> vector<16x64xf32>
    %143 = arith.addf %138, %142 : vector<16x64xf32>
    %144 = vector.extract_strided_slice %102 {offsets = [0, 32], sizes = [16, 480], strides = [1, 1]} : vector<16x512xf32> to vector<16x480xf32>
    %145 = tpu.concatenate %144, %111 in 1 : vector<16x480xf32>, vector<16x32xf32> -> vector<16x512xf32>
    %146 = arith.truncf %145 : vector<16x512xf32> to vector<16x512xbf16>
    %c5_71 = arith.constant 5 : index
    %c0_72 = arith.constant 0 : index
    %c0_73 = arith.constant 0 : index
    %147 = vector.load %arg9[%c5_71, %c0_72, %c0_73] : memref<9x512x64xbf16, #tpu.memory_space<vmem>>, vector<1x512x64xbf16>
    %148 = vector.shape_cast %147 : vector<1x512x64xbf16> to vector<512x64xbf16>
    %cst_74 = arith.constant dense<0.000000e+00> : vector<16x64xf32>
    %149 = tpu.matmul %146, %148, %cst_74 {dimension_numbers = #tpu.dot_dimension_numbers<[1], [0], [0], [1], [0, 0, 1, 1], [], []>} : vector<16x512xbf16>, vector<512x64xbf16>, vector<16x64xf32> -> vector<16x64xf32>
    %150 = arith.addf %143, %149 : vector<16x64xf32>
    %151 = vector.extract_strided_slice %110 {offsets = [0, 0], sizes = [16, 480], strides = [1, 1]} : vector<16x512xf32> to vector<16x480xf32>
    %152 = tpu.concatenate %111, %151 in 1 : vector<16x32xf32>, vector<16x480xf32> -> vector<16x512xf32>
    %153 = arith.truncf %152 : vector<16x512xf32> to vector<16x512xbf16>
    %c6_75 = arith.constant 6 : index
    %c0_76 = arith.constant 0 : index
    %c0_77 = arith.constant 0 : index
    %154 = vector.load %arg9[%c6_75, %c0_76, %c0_77] : memref<9x512x64xbf16, #tpu.memory_space<vmem>>, vector<1x512x64xbf16>
    %155 = vector.shape_cast %154 : vector<1x512x64xbf16> to vector<512x64xbf16>
    %cst_78 = arith.constant dense<0.000000e+00> : vector<16x64xf32>
    %156 = tpu.matmul %153, %155, %cst_78 {dimension_numbers = #tpu.dot_dimension_numbers<[1], [0], [0], [1], [0, 0, 1, 1], [], []>} : vector<16x512xbf16>, vector<512x64xbf16>, vector<16x64xf32> -> vector<16x64xf32>
    %157 = arith.addf %150, %156 : vector<16x64xf32>
    %158 = arith.truncf %110 : vector<16x512xf32> to vector<16x512xbf16>
    %c7_79 = arith.constant 7 : index
    %c0_80 = arith.constant 0 : index
    %c0_81 = arith.constant 0 : index
    %159 = vector.load %arg9[%c7_79, %c0_80, %c0_81] : memref<9x512x64xbf16, #tpu.memory_space<vmem>>, vector<1x512x64xbf16>
    %160 = vector.shape_cast %159 : vector<1x512x64xbf16> to vector<512x64xbf16>
    %cst_82 = arith.constant dense<0.000000e+00> : vector<16x64xf32>
    %161 = tpu.matmul %158, %160, %cst_82 {dimension_numbers = #tpu.dot_dimension_numbers<[1], [0], [0], [1], [0, 0, 1, 1], [], []>} : vector<16x512xbf16>, vector<512x64xbf16>, vector<16x64xf32> -> vector<16x64xf32>
    %162 = arith.addf %157, %161 : vector<16x64xf32>
    %163 = vector.extract_strided_slice %110 {offsets = [0, 32], sizes = [16, 480], strides = [1, 1]} : vector<16x512xf32> to vector<16x480xf32>
    %164 = tpu.concatenate %163, %111 in 1 : vector<16x480xf32>, vector<16x32xf32> -> vector<16x512xf32>
    %165 = arith.truncf %164 : vector<16x512xf32> to vector<16x512xbf16>
    %c8_83 = arith.constant 8 : index
    %c0_84 = arith.constant 0 : index
    %c0_85 = arith.constant 0 : index
    %166 = vector.load %arg9[%c8_83, %c0_84, %c0_85] : memref<9x512x64xbf16, #tpu.memory_space<vmem>>, vector<1x512x64xbf16>
    %167 = vector.shape_cast %166 : vector<1x512x64xbf16> to vector<512x64xbf16>
    %cst_86 = arith.constant dense<0.000000e+00> : vector<16x64xf32>
    %168 = tpu.matmul %165, %167, %cst_86 {dimension_numbers = #tpu.dot_dimension_numbers<[1], [0], [0], [1], [0, 0, 1, 1], [], []>} : vector<16x512xbf16>, vector<512x64xbf16>, vector<16x64xf32> -> vector<16x64xf32>
    %169 = arith.addf %162, %168 : vector<16x64xf32>
    %c0_87 = arith.constant 0 : index
    %c0_88 = arith.constant 0 : index
    %170 = vector.load %arg10[%c0_87, %c0_88] : memref<1x64xf32, #tpu.memory_space<vmem>>, vector<1x64xf32>
    %171 = vector.broadcast %170 : vector<1x64xf32> to vector<16x64xf32>
    %172 = arith.addf %169, %171 : vector<16x64xf32>
    %173 = vector.broadcast %1 : vector<16x1xf32> to vector<16x64xf32>
    %174 = arith.mulf %173, %172 : vector<16x64xf32>
    %175 = arith.addf %0, %174 : vector<16x64xf32>
    %c0_89 = arith.constant 0 : index
    %c0_90 = arith.constant 0 : index
    %176 = vector.load %arg11[%c0_89, %c0_90] : memref<16x64xf32, #tpu.memory_space<vmem>>, vector<16x64xf32>
    tpu.vector_store %arg11[%c0_89, %c0_90], %175 {strides = array<i32>} : memref<16x64xf32, #tpu.memory_space<vmem>>, vector<16x64xf32>,
    return
  }
  func.func @transform_0(%arg0: i32) -> (i32, i32) {
    %c0_i32 = arith.constant 0 : i32
    %c0_i32_0 = arith.constant 0 : i32
    return %arg0, %c0_i32 : i32, i32
  }
  func.func @transform_1(%arg0: i32) -> (i32, i32) {
    %c0_i32 = arith.constant 0 : i32
    %c0_i32_0 = arith.constant 0 : i32
    return %arg0, %c0_i32 : i32, i32
  }
  func.func @transform_2(%arg0: i32) -> (i32, i32) {
    %c0_i32 = arith.constant 0 : i32
    %c0_i32_0 = arith.constant 0 : i32
    %c0_i32_1 = arith.constant 0 : i32
    return %c0_i32, %c0_i32_0 : i32, i32
  }
  func.func @transform_3(%arg0: i32) -> (i32, i32) {
    %c0_i32 = arith.constant 0 : i32
    %c0_i32_0 = arith.constant 0 : i32
    %c0_i32_1 = arith.constant 0 : i32
    return %c0_i32, %c0_i32_0 : i32, i32
  }
  func.func @transform_4(%arg0: i32) -> (i32, i32) {
    %c0_i32 = arith.constant 0 : i32
    %c0_i32_0 = arith.constant 0 : i32
    %c0_i32_1 = arith.constant 0 : i32
    return %c0_i32, %c0_i32_0 : i32, i32
  }
  func.func @transform_5(%arg0: i32) -> (i32, i32) {
    %c0_i32 = arith.constant 0 : i32
    %c0_i32_0 = arith.constant 0 : i32
    %c0_i32_1 = arith.constant 0 : i32
    return %c0_i32, %c0_i32_0 : i32, i32
  }
  func.func @transform_6(%arg0: i32) -> (i32, i32) {
    %c0_i32 = arith.constant 0 : i32
    %c0_i32_0 = arith.constant 0 : i32
    %c0_i32_1 = arith.constant 0 : i32
    return %c0_i32, %c0_i32_0 : i32, i32
  }
  func.func @transform_7(%arg0: i32) -> (i32, i32, i32) {
    %c0_i32 = arith.constant 0 : i32
    %c0_i32_0 = arith.constant 0 : i32
    %c0_i32_1 = arith.constant 0 : i32
    %c0_i32_2 = arith.constant 0 : i32
    return %c0_i32, %c0_i32_0, %c0_i32_1 : i32, i32, i32
  }
  func.func @transform_8(%arg0: i32) -> (i32, i32, i32) {
    %c0_i32 = arith.constant 0 : i32
    %c0_i32_0 = arith.constant 0 : i32
    %c0_i32_1 = arith.constant 0 : i32
    %c0_i32_2 = arith.constant 0 : i32
    return %c0_i32, %c0_i32_0, %c0_i32_1 : i32, i32, i32
  }
  func.func @transform_9(%arg0: i32) -> (i32, i32) {
    %c0_i32 = arith.constant 0 : i32
    %c0_i32_0 = arith.constant 0 : i32
    %c0_i32_1 = arith.constant 0 : i32
    return %c0_i32, %c0_i32_0 : i32, i32
  }
  func.func @transform_10(%arg0: i32) -> (i32, i32) {
    %c0_i32 = arith.constant 0 : i32
    %c0_i32_0 = arith.constant 0 : i32
    return %arg0, %c0_i32 : i32, i32
  }
}

</mosaic_0001>

<bundles_post_ra>
// kernel: ve_precond_forward.1
= control target key start
LH: loop header
LB: loop body
LE: loop exit
PB: predicated region body
PF: predicated region fallthrough
CT: control target
= control target key end

     0   :  { %s8928_s13 = smov 0   ;;  %s11144_s0 = inlined_call_operand.vmem [shape: f32[32,1], index: 0, kind: input, shape index: {}]   ;;  %s11145_s1 = inlined_call_operand.vmem [shape: f32[32,64], index: 1, kind: input, shape index: {}]   ;;  %s11146_s2 = inlined_call_operand.vmem [shape: f32[1,16], index: 2, kind: input, shape index: {}]   ;;  %s11147_s3 = inlined_call_operand.vmem [shape: f32[32,64], index: 3, kind: input, shape index: {}]   ;;  %s11148_s4 = inlined_call_operand.vmem [shape: f32[1,64], index: 4, kind: input, shape index: {}]   ;;  %s11149_s5 = inlined_call_operand.vmem [shape: f32[64,32], index: 5, kind: input, shape index: {}]   ;;  %s11150_s6 = inlined_call_operand.vmem [shape: f32[1,32], index: 6, kind: input, shape index: {}]   ;;  %s11151_s7 = inlined_call_operand.vmem [shape: bf16[9,64,512], index: 7, kind: input, shape index: {}]   ;;  %s11152_s8 = inlined_call_operand.vmem [shape: bf16[9,512,64], index: 8, kind: input, shape index: {}]   ;;  %s11153_s9 = inlined_call_operand.vmem [shape: f32[1,64], index: 9, kind: input, shape index: {}]   ;;  %s11154_s10 = inlined_call_operand.vmem [shape: f32[32,64], index: 10, kind: output, shape index: {}]  }
   0x1 LB: > { %s6390_s14 = sadd.s32 4294967295, %s8857_s13   ;;  %p6394_p0 = scmp.ge.s32.totalorder %s8857_s13, 1  ;;  %s8857_s13 = sphi %s8928_s13, %s20_s13  }
   0x2   : > { %p324_p1 = scmp.lt.s32.totalorder %s8857_s13, 3 }
   0x4   : > { %p325_p2 = pnand %p6394_p0, %p324_p1 }
   0x5   : > { %s6395_s15 = sshll.u32 (!%p325_p2), %s6390_s14, 1  ;;  %v8859_v0 = vmov (!%p325_p2), 0   ;;  %v840_v9 = vld [vmem:[%s11147_s3] sm:$0xff] (!%p325_p2)  ;;  %v841_v10 = vld [vmem:[%s11147_s3 + $0x8] sm:$0xff] (!%p325_p2)  ;;  %v8860_v37 = vmov (!%p325_p2), 2102212464  }
   0x6   : > { %328 = sbr.rel (%p325_p2) target bundleno = 1585 (0x631), region = 60  ;;  %8139 = vset.pattern.permute.xlu0 (!%p325_p2), %v8859_v0  ;;  %p368_p3 = scmp.lt.s32.totalorder (!%p325_p2), %s6395_s15, 3  ;;  %8290 = vset.pattern.permute.xlu1 (!%p325_p2), %v8859_v0  ;;  %v8021_v11 = vpack.c.bf16 (!%p325_p2), %v841_v10, %v840_v9  ;;  %v6401_v12 = vld [vmem:[%s11146_s2] ss:$0 sm:$0xff] (!%p325_p2)  ;;  %v8861_v39 = vmov (!%p325_p2), 920167782  }
   0x7   : > { %v8862_v42 = vmov (!%p325_p2), 1326507024   ;;  %v8863_v45 = vmov (!%p325_p2), 683565275   ;;  %v8864_v49 = vmov (!%p325_p2), 2475754826  }
   0x8   : > { %8022 = vmatprep.subr.bf16.mxu0 (!%p325_p2), %v8021_v11  ;;  %v8865_v51 = vmov (!%p325_p2), 2131351028   ;;  %s8866_s17 = smov (!%p325_p2), 4   ;;  %s8867_s18 = smov (!%p325_p2), 16  }
   0x9   : > { %8024 = vmatpush3.bf16.msra.mxu0 (!%p325_p2), %v8021_v11  ;;  %s8868_s20 = smov (!%p325_p2), 124   ;;  %s8869_s23 = smov (!%p325_p2), 32  }
   0xa   : > { %s8870_s26 = smov (!%p325_p2), 64   ;;  %s8871_s12 = smov (!%p325_p2), 96  }
   0xd   : > { %s11170_s15 = smov (!%p368_p3, %s6395_s15), 3 }
   0xe   : > { %s8938_s16 = sshll.u32 %s11170_s15, 3 }
   0xf   : > { %s8944_s19 = scalar_lea.vmem %s11144_s0, %s8938_s16  ;;  %s9077_s28 = scalar_lea.vmem %s11145_s1, %s8938_s16 }
  0x10   : > { %v388_v1 = vld [vmem:[%s8944_s19] sm:$0xff]  ;;  %v389_v2 = vld [vmem:[%s8944_s19 + $0x8] sm:$0xff] }
  0x11   : > { %v390_v3 = vmul.f32 0.5, %v388_v1  ;;  %v391_v4 = vmul.f32 0.5, %v389_v2 }
  0x13   : > { %8795 = vlog2.f32 %v390_v3 }
  0x14   : > { %8797 = vlog2.f32 %v391_v4 }
  0x1d   : > { %v8796_v5 = vpop.eup %8795 }
  0x1e   : > { %v8798_v6 = vpop.eup %8797  ;;  %v393_v7 = vmul.f32 0.6931472, %v8796_v5 }
  0x1f   : > { %v395_v8 = vmul.f32 0.6931472, %v8798_v6 }
  0x20   : > { %399 = vperm.xlu0 %8139, %v393_v7  }
  0x24   : > { %404 = vperm.xlu0 %8139, %v395_v8  }
  0x9f   : > { %v400_v13 = vpop.permute.xlu0 %399 }
  0xa0   : > { %v8957_v14 = vmul.f32 %v6401_v12, %v400_v13 }
  0xa2   : > { %v418_v15 = vand.u32 2139095040, %v8957_v14  ;;  %v415_v16 = vand.u32 2147483647, %v8957_v14  ;;  %vm417_vm15 = vcmp.lt.s32.totalorder %v8957_v14, 0 }
  0xa3   : > { %v405_v17 = vpop.permute.xlu0 %404 }
  0xa4   : > { %v419_v18 = vshrl.u32 %v418_v15, 23  ;;  %v8961_v19 = vmul.f32 %v6401_v12, %v405_v17  ;;  %v422_v20 = vand.u32 8388607, %v415_v16 }
  0xa6   : > { %v6402_v21 = vadd.s32 4294967169, %v419_v18  ;;  %v518_v22 = vand.u32 2147483647, %v8961_v19  ;;  %v521_v23 = vand.u32 2139095040, %v8961_v19  ;;  %v423_v27 = vor.u32 8388608, %v422_v20 }
  0xa7   : > { %vm520_vm12 = vcmp.lt.s32.totalorder %v8961_v19, 0 }
  0xa8   : > { %v425_v24 = vadd.s32 1, %v6402_v21  ;;  %v522_v25 = vshrl.u32 %v521_v23, 23  ;;  %v525_v26 = vand.u32 8388607, %v518_v22  ;;  %v8971_v34 = vshll.u32 %v423_v27, 8 }
  0xa9   : > { %vm9037_vm13 = vcmp.le.f32.partialorder %v518_v22, 0.7853982 }
  0xaa   : > { %vm426_vm0 = vcmp.gt.s32.totalorder %v425_v24, 0  ;;  %v6406_v28 = vadd.s32 4294967169, %v522_v25  ;;  %v526_v29 = vor.u32 8388608, %v525_v26 }
  0xab   : > { %v427_v30 = vsel %vm426_vm0, %v425_v24, 0  ;;  %vm9047_vm0 = vcmp.le.f32.partialorder %v415_v16, 0.7853982 }
  0xac   : > { %v8969_v31 = vshrl.u32 %v427_v30, 5  ;;  %v429_v32 = vand.u32 31, %v427_v30  ;;  %v528_v33 = vadd.s32 1, %v6406_v28  ;;  %v8975_v36 = vshll.u32 %v526_v29, 8 }
  0xae   : > { %v8973_v35 = vsub.s32 32, %v429_v32  ;;  %v441_v38 = vshll.u32 %v8860_v37, %v429_v32  ;;  %v444_v40 = vshll.u32 %v8861_v39, %v429_v32  ;;  %vm450_vm1 = vcmp.lt.s32.totalorder %v8969_v31, 4 }
  0xaf   : > { %vm529_vm2 = vcmp.gt.s32.totalorder %v528_v33, 0  ;;  %v432_v46 = vshll.u32 %v8863_v45, %v429_v32  ;;  %v435_v50 = vshll.u32 %v8864_v49, %v429_v32  ;;  %v438_v52 = vshll.u32 %v8865_v51, %v429_v32 }
  0xb0   : > { %v442_v41 = vshrl.u32 %v8861_v39, %v8973_v35  ;;  %v445_v43 = vshrl.u32 %v8862_v42, %v8973_v35  ;;  %v530_v44 = vsel %vm529_vm2, %v528_v33, 0  ;;  %v433_v55 = vshrl.u32 %v8864_v49, %v8973_v35 }
  0xb1   : > { %v531_v47 = vshrl.u32 %v530_v44, 5  ;;  %v532_v48 = vand.u32 31, %v530_v44  ;;  %v436_v56 = vshrl.u32 %v8865_v51, %v8973_v35  ;;  %v439_v60 = vshrl.u32 %v8860_v37, %v8973_v35 }
  0xb2   : > { %v443_v53 = vor.u32 %v442_v41, %v441_v38  ;;  %v446_v54 = vor.u32 %v445_v43, %v444_v40  ;;  %vm447_vm3 = vcmp.lt.s32.totalorder %v8969_v31, 1  ;;  %v434_v13 = vor.u32 %v433_v55, %v432_v46 }
  0xb3   : > { %v533_v57 = vsub.s32 32, %v532_v48  ;;  %v535_v58 = vshll.u32 %v8863_v45, %v532_v48  ;;  %v538_v59 = vshll.u32 %v8864_v49, %v532_v48  ;;  %v541_v62 = vshll.u32 %v8865_v51, %v532_v48 }
  0xb4   : > { %v456_v61 = vsel %vm450_vm1, %v443_v53, 920167782  ;;  %v544_v63 = vshll.u32 %v8860_v37, %v532_v48  ;;  %v547_v1 = vshll.u32 %v8861_v39, %v532_v48  ;;  %vm550_vm4 = vcmp.lt.s32.totalorder %v531_v47, 1 }
  0xb5   : > { %v534_v2 = vshrl.u32 %v8863_v45, %v533_v57  ;;  %v536_v3 = vshrl.u32 %v8864_v49, %v533_v57  ;;  %v539_v4 = vshrl.u32 %v8865_v51, %v533_v57  ;;  %v542_v5 = vshrl.u32 %v8860_v37, %v533_v57 }
  0xb6   : > { %v545_v6 = vshrl.u32 %v8861_v39, %v533_v57  ;;  %v548_v7 = vshrl.u32 %v8862_v42, %v533_v57  ;;  %vm551_vm5 = vcmp.lt.s32.totalorder %v531_v47, 2  ;;  %vm552_vm6 = vcmp.lt.s32.totalorder %v531_v47, 3 }
  0xb7   : > { %v537_v8 = vor.u32 %v536_v3, %v535_v58  ;;  %v540_v9 = vor.u32 %v539_v4, %v538_v59  ;;  %v543_v10 = vor.u32 %v542_v5, %v541_v62  ;;  %vm553_vm7 = vcmp.lt.s32.totalorder %v531_v47, 4 }
  0xb8   : > { %v546_v11 = vor.u32 %v545_v6, %v544_v63  ;;  %v549_v12 = vor.u32 %v548_v7, %v547_v1  ;;  %v437_v25 = vor.u32 %v436_v56, %v435_v50  ;;  %v440_v28 = vor.u32 %v439_v60, %v438_v52 }
  0xb9   : > { %v554_v15 = vsel %vm550_vm4, %v534_v2, %v537_v8  ;;  %v555_v17 = vsel %vm553_vm7, %v543_v10, 2102212464  ;;  %v558_v18 = vsel %vm550_vm4, %v537_v8, %v540_v9  ;;  %v562_v20 = vsel %vm550_vm4, %v540_v9, %v543_v10 }
  0xba   : > { %v556_v21 = vsel %vm552_vm6, %v540_v9, %v555_v17  ;;  %v559_v23 = vsel %vm553_vm7, %v546_v11, 920167782  ;;  %v563_v24 = vsel %vm553_vm7, %v549_v12, 1326507024  ;;  %v460_v29 = vsel %vm450_vm1, %v446_v54, 1326507024 }
  0xbb   : > { %v560_v26 = vsel %vm552_vm6, %v543_v10, %v559_v23  ;;  %v564_v27 = vsel %vm552_vm6, %v546_v11, %v563_v24  ;;  %v557_v30 = vsel %vm551_vm5, %v554_v15, %v556_v21  ;;  %vm448_vm8 = vcmp.lt.s32.totalorder %v8969_v31, 2 }
  0xbc   : > { %v561_v32 = vsel %vm551_vm5, %v558_v18, %v560_v26  ;;  %v565_v33 = vsel %vm551_vm5, %v562_v20, %v564_v27  ;;  %vm449_vm9 = vcmp.lt.s32.totalorder %v8969_v31, 3  ;;  %v452_v41 = vsel %vm450_vm1, %v440_v28, 2102212464 }
  0xbd   : > { %v8992_v37 = vmul.u32.u64.low %v8975_v36, %v565_v33  ;;  %v8993_v38 = vmul.u32.u64.high %v8975_v36, %v565_v33, %v8992_v37  ;;  %v8996_v39 = vmul.u32.u64.low %v8975_v36, %v561_v32  ;;  %v8997_v40 = vmul.u32.u64.high %v8975_v36, %v561_v32, %v8996_v39 }
  0xbe   : > { %v455_v42 = vsel %vm447_vm3, %v434_v13, %v437_v25  ;;  %v431_v43 = vshrl.u32 %v8863_v45, %v8973_v35  ;;  %v457_v44 = vsel %vm449_vm9, %v440_v28, %v456_v61  ;;  %v459_v46 = vsel %vm447_vm3, %v437_v25, %v440_v28 }
  0xbf   : > { %v461_v47 = vsel %vm449_vm9, %v443_v53, %v460_v29  ;;  %v573_v48 = vmul.u32 %v8975_v36, %v557_v30  ;;  %v458_v49 = vsel %vm448_vm8, %v455_v42, %v457_v44  ;;  %vm575_vm10 = vc.u32 %v8993_v38, %v8996_v39 }
  0xc0   : > { %v462_v50 = vsel %vm448_vm8, %v459_v46, %v461_v47  ;;  %v576_v51 = vadd.s32 1, %v8997_v40  ;;  %v451_v35 = vsel %vm447_vm3, %v431_v43, %v434_v13  ;;  %v453_v45 = vsel %vm449_vm9, %v437_v25, %v452_v41 }
  0xc1   : > { %v9018_v52 = vmul.u32.u64.low %v8971_v34, %v462_v50  ;;  %v9019_v54 = vmul.u32.u64.high %v8971_v34, %v462_v50, %v9018_v52  ;;  %v9022_v36 = vmul.u32.u64.low %v8971_v34, %v458_v49  ;;  %v9023_v53 = vmul.u32.u64.high %v8971_v34, %v458_v49, %v9022_v36 }
  0xc2   : > { %v577_v55 = vsel %vm575_vm10, %v576_v51, %v8997_v40  ;;  %v454_v57 = vsel %vm448_vm8, %v451_v35, %v453_v45  ;;  %v574_v20 = vadd.s32 %v8996_v39, %v8993_v38 }
  0xc3   : > { %v578_v56 = vadd.s32 %v577_v55, %v573_v48  ;;  %vm472_vm11 = vc.u32 %v9019_v54, %v9022_v36  ;;  %v473_v59 = vadd.s32 1, %v9023_v53  ;;  %v470_v60 = vmul.u32 %v8971_v34, %v454_v57 }
  0xc4   : > { %v471_v38 = vadd.s32 %v9022_v36, %v9019_v54 }
  0xc5   : > { %v579_v58 = vadd.s32 536870912, %v578_v56  ;;  %v474_v62 = vsel %vm472_vm11, %v473_v59, %v9023_v53  ;;  %vm610_vm11 = vweird.f32 %v8961_v19 }
  0xc6   : > { %v475_v63 = vadd.s32 %v474_v62, %v470_v60  ;;  %v842_v62 = vld [vmem:[%s11147_s3 + $0x10] sm:$0xff] }
  0xc7   : > { %v580_v61 = vshrl.u32 %v579_v58, 30 }
  0xc8   : > { %v476_v2 = vadd.s32 536870912, %v475_v63 }
  0xc9   : > { %v581_v1 = vshll.u32 %v580_v61, 30  ;;  %v604_v7 = vsub.s32 4, %v580_v61 }
  0xca   : > { %v477_v4 = vshrl.u32 %v476_v2, 30 }
  0xcb   : > { %v582_v3 = vsub.s32 %v578_v56, %v581_v1  ;;  %v605_v34 = vsel %vm520_vm12, %v604_v7, %v580_v61  ;;  %v9089_v1 = vld [vmem:[%s9077_s28] sm:$0xff] }
  0xcc   : > { %v478_v6 = vshll.u32 %v477_v4, 30  ;;  %v607_v15 = vsel %vm9037_vm13, 0, %v605_v34  ;;  %v501_v29 = vsub.s32 4, %v477_v4 }
  0xcd   : > { %v584_v5 = vsub.s32 0, %v582_v3  ;;  %v9051_v25 = vand.u32 3, %v607_v15  ;;  %v818_v30 = vadd.s32 3, %v607_v15 }
  0xce   : > { %v479_v8 = vsub.s32 %v475_v63, %v478_v6  ;;  %v502_v41 = vsel %vm417_vm15, %v501_v29, %v477_v4  ;;  %v843_v63 = vld [vmem:[%s11147_s3 + $0x18] sm:$0xff]  ;;  %v9094_v4 = vld [vmem:[%s9077_s28 + $0x8] sm:$0xff] }
  0xcf   : > { %v6407_v31 = vmin.u32 %v584_v5, %v582_v3  ;;  %v9056_v46 = vand.u32 3, %v818_v30  ;;  %v504_v51 = vsel %vm9047_vm0, 0, %v502_v41  ;;  %vm613_vm2 = vcmp.eq.s32.totalorder %v9051_v25, 0 }
  0xd0   : > { %v481_v10 = vsub.s32 0, %v479_v8  ;;  %v9060_v54 = vand.u32 3, %v504_v51  ;;  %v714_v59 = vadd.s32 3, %v504_v51  ;;  %vm612_vm3 = vcmp.lt.s32.totalorder %v9051_v25, 2 }
  0xd1   : > { %v586_v9 = vclz %v6407_v31  ;;  %vm616_vm4 = vcmp.eq.s32.totalorder %v9051_v25, 2  ;;  %vm820_vm5 = vcmp.lt.s32.totalorder %v9056_v46, 2  ;;  %vm821_vm6 = vcmp.eq.s32.totalorder %v9056_v46, 0 }
  0xd2   : > { %v6403_v12 = vmin.u32 %v481_v10, %v479_v8  ;;  %vm824_vm7 = vcmp.eq.s32.totalorder %v9056_v46, 2  ;;  %v8025_v2 = vpack.c.bf16 %v843_v63, %v842_v62  ;;  %vm510_vm8 = vcmp.eq.s32.totalorder %v9060_v54, 0  ;;  %v8314_v63 = vld [vmem:[%s11151_s7 + $0x64] ss:$16 sps:$4 sm:$0xff]  }
  0xd3   : > { %v6408_v11 = vadd.s32 4294967294, %v586_v9  ;;  %vm509_vm9 = vcmp.lt.s32.totalorder %v9060_v54, 2  ;;  %v715_v6 = vand.u32 3, %v714_v59  ;;  %vm513_vm10 = vcmp.eq.s32.totalorder %v9060_v54, 2  ;;  %v8302_v54 = vld [vmem:[%s11151_s7 + $0xe4] ss:$16 sps:$4 sm:$0xff]  }
  0xd4   : > { %v483_v18 = vclz %v6403_v12  ;;  %8026 = vmatprep.subr.bf16.mxu0 %v8025_v2  ;;  %v1075_v15 = vrot.slane %v9094_v4, 7 }
  0xd5   : > { %vm6409_vm14 = vcmp.lt.s32.totalorder %v6408_v11, 0  ;;  %8028 = vmatpush3.bf16.msra.mxu0 %v8025_v2 }
  0xd6   : > { %v589_v17 = vsel %vm6409_vm14, 0, %v6408_v11  ;;  %v6404_v22 = vadd.s32 4294967294, %v483_v18  ;;  %v1074_v11 = vrot.slane %v9089_v1, 7  ;;  %vm717_vm14 = vcmp.eq.s32.totalorder %v715_v6, 0 }
  0xd7   : > { %v590_v21 = vsub.s32 32, %v589_v17  ;;  %v594_v23 = vsub.s32 4294967266, %v589_v17  ;;  %v591_v26 = vshll.u32 %v582_v3, %v589_v17  ;;  %v8293_v17 = vld [vmem:[%s11151_s7 + $0x84] ss:$16 sps:$4 sm:$0xff]  }
  0xd8   : > { %vm6405_vm1 = vcmp.lt.s32.totalorder %v6404_v22, 0  ;;  %1215 = vmatprep.subr.bf16.mxu0 %v8293_v17 }
  0xd9   : > { %v592_v27 = vshrl.u32 %v574_v20, %v590_v21  ;;  %v595_v28 = vadd.s32 127, %v594_v23  ;;  %v486_v37 = vsel %vm6405_vm1, 0, %v6404_v22  ;;  %vm1080_vm1 = vcmask 1046528  }
  0xda   : > { %v487_v39 = vsub.s32 32, %v486_v37  ;;  %v491_v40 = vsub.s32 4294967266, %v486_v37  ;;  %v488_v42 = vshll.u32 %v479_v8, %v486_v37 }
  0xdb   : > { %v593_v32 = vor.u32 %v592_v27, %v591_v26  ;;  %v596_v33 = vshll.u32 %v595_v28, 23 }
  0xdc   : > { %v489_v43 = vshrl.u32 %v471_v38, %v487_v39  ;;  %v492_v44 = vadd.s32 127, %v491_v40  ;;  %v8150_v39 = vpack.i.bf16 %v9094_v4, %v9089_v1  ;;  %v1082_v40 = vrot.slane %v9094_v4, 1 }
  0xdd   : > { %v597_v16 = vor.u32 4788187, %v596_v33  ;;  %v600_v48 = vcvt.s32.f32 %v593_v32  ;;  %v1081_v33 = vrot.slane %v9089_v1, 1 }
  0xde   : > { %v490_v49 = vor.u32 %v489_v43, %v488_v42  ;;  %v493_v50 = vshll.u32 %v492_v44, 23  ;;  %v1086_v43 = vsel %vm1080_vm1, %v1082_v40, 0.0 }
  0xdf   : > { %v598_v47 = vand.u32 2147483647, %v597_v16  ;;  %v1083_v42 = vsel %vm1080_vm1, %v1081_v33, %v1082_v40  ;;  %v8338_v33 = vld [vmem:[%s11151_s7 + $0x1e4] ss:$16 sps:$4 sm:$0xff]  }
  0xe0   : > { %v494_v45 = vor.u32 4788187, %v493_v50  ;;  %v497_v53 = vcvt.s32.f32 %v490_v49  ;;  %v9142_v46 = vpack.c.bf16 %v1086_v43, %v1083_v42  ;;  %v8296_v50 = vld [vmem:[%s11151_s7 + $0xa4] ss:$16 sps:$4 sm:$0xff]  }
  0xe1   : > { %v601_v35 = vmul.f32 %v600_v48, %v598_v47  ;;  %v8160_v47 = vpack.i.bf16 %v1086_v43, %v1083_v42  ;;  %v8341_v40 = vld [vmem:[%s11151_s7 + $0x204] ss:$16 sps:$4 sm:$0xff]   ;;  %v8342_v43 = vld [vmem:[%s11151_s7 + $0x220] ss:$16 sps:$4 sm:$0xff]  }
  0xe2   : > { %v495_v36 = vand.u32 2147483647, %v494_v45  ;;  %v8299_v45 = vld [vmem:[%s11151_s7 + $0xc4] ss:$16 sps:$4 sm:$0xff]  }
  0xe3   : > { %v602_v52 = vxor.u32 2147483648, %v601_v35  ;;  %v8344_v42 = vld [vmem:[%s11151_s7 + $0x224] ss:$16 sps:$4 sm:$0xff]  }
  0xe4   : > { %v498_v56 = vmul.f32 %v497_v53, %v495_v36  ;;  %v8300_v36 = vld [vmem:[%s11151_s7 + $0xe0] ss:$16 sps:$4 sm:$0xff]   ;;  %v8305_v53 = vld [vmem:[%s11151_s7 + $0x4] ss:$16 sps:$4 sm:$0xff]  }
  0xe5   : > { %v603_v55 = vsel %vm520_vm12, %v602_v52, %v601_v35  ;;  %vm1073_vm12 = vcmask 1040384   ;;  %v8294_v35 = vld [vmem:[%s11151_s7 + $0xa0] ss:$16 sps:$4 sm:$0xff]  }
  0xe6   : > { %v606_v57 = vsel %vm9037_vm13, %v8961_v19, %v603_v55  ;;  %v499_v58 = vxor.u32 2147483648, %v498_v56  ;;  %vm716_vm13 = vcmp.lt.s32.totalorder %v715_v6, 2  ;;  %v1079_v23 = vsel %vm1073_vm12, 0.0, %v1074_v11  ;;  %v8291_v19 = vld [vmem:[%s11151_s7 + $0x80] ss:$16 sps:$4 sm:$0xff]  }
  0xe7   : > { %8799 = vcosq.f32 %v606_v57  ;;  %v1076_v25 = vsel %vm1073_vm12, %v1074_v11, %v1075_v15  ;;  %v8297_v52 = vld [vmem:[%s11151_s7 + $0xc0] ss:$16 sps:$4 sm:$0xff]   ;;  %v8326_v15 = vld [vmem:[%s11151_s7 + $0x164] ss:$16 sps:$4 sm:$0xff]  }
  0xe8   : > { %8801 = vsinq.f32 %v606_v57  ;;  %v500_v60 = vsel %vm417_vm15, %v499_v58, %v498_v56  ;;  %vm720_vm15 = vcmp.eq.s32.totalorder %v715_v6, 2  ;;  %v8140_v28 = vpack.i.bf16 %v1076_v25, %v1079_v23  ;;  %v8303_v55 = vld [vmem:[%s11151_s7] ss:$16 sps:$4 sm:$0xff]   ;;  %v8308_v56 = vld [vmem:[%s11151_s7 + $0x24] ss:$16 sps:$4 sm:$0xff]  }
  0xe9   : > { %v503_v61 = vsel %vm9047_vm0, %v8957_v14, %v500_v60  ;;  %vm507_vm0 = vweird.f32 %v8957_v14  ;;  %v9122_v29 = vpack.c.bf16 %v1076_v25, %v1079_v23  ;;  %v8306_v57 = vld [vmem:[%s11151_s7 + $0x20] ss:$16 sps:$4 sm:$0xff]   ;;  %v8311_v58 = vld [vmem:[%s11151_s7 + $0x44] ss:$16 sps:$4 sm:$0xff]  }
  0xea   : > { %8803 = vcosq.f32 %v503_v61  ;;  %8141 = vrot.lane.b32.xlu0 %v8140_v28, %s8866_s17  ;;  %v8309_v60 = vld [vmem:[%s11151_s7 + $0x40] ss:$16 sps:$4 sm:$0xff]   ;;  %v8317_v6 = vld [vmem:[%s11151_s7 + $0x104] ss:$16 sps:$4 sm:$0xff]  }
  0xeb   : > { %8805 = vsinq.f32 %v503_v61  ;;  %v8321_v11 = vld [vmem:[%s11151_s7 + $0x140] ss:$16 sps:$4 sm:$0xff]  }
  0xec   : > { %v8330_v25 = vld [vmem:[%s11151_s7 + $0x1a0] ss:$16 sps:$4 sm:$0xff]  }
  0xee   : > { %8151 = vrot.lane.b32.xlu0 %v8150_v39, %s8866_s17 }
  0xf1   : > { %v8800_v3 = vpop.eup %8799 }
  0xf2   : > { %v8802_v5 = vpop.eup %8801  ;;  %v617_v7 = vxor.u32 2147483648, %v8800_v3  ;;  %8161 = vrot.lane.b32.xlu0 %v8160_v47, %s8866_s17 }
  0xf3   : > { %v614_v31 = vxor.u32 2147483648, %v8802_v5 }
  0xf4   : > { %v826_v8 = vsel %vm824_vm7, %v617_v7, %v8802_v5  ;;  %v618_v9 = vsel %vm616_vm4, %v617_v7, %v8802_v5  ;;  %v8804_v12 = vpop.eup %8803  ;;  %vm962_vm4 = vcmask 523264   ;;  %v8312_v5 = vld [vmem:[%s11151_s7 + $0x60] ss:$16 sps:$4 sm:$0xff]   ;;  %vm1068_vm7 = vcmask 785408  }
  0xf5   : > { %v823_v10 = vsel %vm821_vm6, %v8800_v3, %v614_v31  ;;  %v615_v34 = vsel %vm613_vm2, %v8800_v3, %v614_v31  ;;  %v8806_v18 = vpop.eup %8805  ;;  %v514_v20 = vxor.u32 2147483648, %v8804_v12  ;;  %vm837_vm2 = vcmask 130048   ;;  %v8315_v31 = vld [vmem:[%s11151_s7 + $0x100] ss:$16 sps:$4 sm:$0xff]  }
  0xf6   : > { %v619_v13 = vsel %vm612_vm3, %v615_v34, %v618_v9  ;;  %v511_v24 = vxor.u32 2147483648, %v8806_v18  ;;  %v827_v22 = vsel %vm820_vm5, %v823_v10, %v826_v8  ;;  %vm851_vm3 = vcmask 261120   ;;  %v8320_v8 = vld [vmem:[%s11151_s7 + $0x124] ss:$16 sps:$4 sm:$0xff]   ;;  %v8318_v9 = vld [vmem:[%s11151_s7 + $0x120] ss:$16 sps:$4 sm:$0xff]  }
  0xf7   : > { %v620_v21 = vsel %vm610_vm11, nan, %v619_v13  ;;  %v722_v26 = vsel %vm720_vm15, %v514_v20, %v8806_v18  ;;  %v515_v27 = vsel %vm513_vm10, %v514_v20, %v8806_v18  ;;  %v828_v44 = vsel %vm610_vm11, nan, %v827_v22  ;;  %v8323_v10 = vld [vmem:[%s11151_s7 + $0x144] ss:$16 sps:$4 sm:$0xff]   ;;  %v8324_v20 = vld [vmem:[%s11151_s7 + $0x160] ss:$16 sps:$4 sm:$0xff]   ;;  %vm6868_vm11 = vmneg %vm851_vm3 }
  0xf8   : > { %v719_v30 = vsel %vm717_vm14, %v8804_v12, %v511_v24  ;;  %v512_v32 = vsel %vm510_vm8, %v8804_v12, %v511_v24  ;;  %vm1094_vm5 = vcmask 31744   ;;  %vm1476_vm6 = vcmask 490496   ;;  %v8327_v24 = vld [vmem:[%s11151_s7 + $0x180] ss:$16 sps:$4 sm:$0xff]   ;;  %v8332_v22 = vld [vmem:[%s11151_s7 + $0x1a4] ss:$16 sps:$4 sm:$0xff]   ;;  %vm9857_vm8 = vmneg %vm1073_vm12 }
  0xf9   : > { %v723_v37 = vsel %vm716_vm13, %v719_v30, %v722_v26  ;;  %v516_v38 = vsel %vm509_vm9, %v512_v32, %v515_v27  ;;  %v8335_v26 = vld [vmem:[%s11151_s7 + $0x1c4] ss:$16 sps:$4 sm:$0xff]   ;;  %vm8872_vm9 = vmmov 1   ;;  %vm10249_vm13 = vmpackc.low %vm1068_vm7, %vm1068_vm7 }
  0xfa   : > { %v724_v16 = vsel %vm507_vm0, nan, %v723_v37  ;;  %v517_v41 = vsel %vm507_vm0, nan, %v516_v38  ;;  %vm9891_vm10 = vmpackc.low %vm8872_vm9, %vm9857_vm8 }
  0xfb   : > { %831 = vrot.lane.b32.xlu1 %v724_v16, %s8867_s18  ;;  %vm10837_vm14 = vmpackc.low %vm1080_vm1, %vm8872_vm9 }
  0xff   : > { %833 = vrot.lane.b32.xlu1 %v828_v44, %s8867_s18  ;;  %v8347_v44 = vld [vmem:[%s11151_s7 + $0x244] ss:$16 sps:$4 sm:$0xff]   ;;  %s383_s18 = scalar_lea.vmem %s11154_s10, %s8938_s16 }
 0x103   : > { %8146 = vrot.lane.b32.xlu1 %v8140_v28, %s8868_s20  ;;  %v8333_v28 = vld [vmem:[%s11151_s7 + $0x1c0] ss:$16 sps:$4 sm:$0xff]  }
 0x107   : > { %8156 = vrot.lane.b32.xlu1 %v8150_v39, %s8868_s20  ;;  %v8336_v39 = vld [vmem:[%s11151_s7 + $0x1e0] ss:$16 sps:$4 sm:$0xff]  }
 0x10b   : > { %8166 = vrot.lane.b32.xlu1 %v8160_v47, %s8868_s20  ;;  %v8345_v47 = vld [vmem:[%s11151_s7 + $0x240] ss:$16 sps:$4 sm:$0xff]  }
 0x15c   : > { %v8142_v59 = vpop.permute.xlu0 %8141 }
 0x15d   : > { %v8144_v61 = vunpack.i.h.bf16 %v8142_v59  ;;  %v8143_v62 = vunpack.i.l.bf16 %v8142_v59  ;;  %v8363_v59 = vld [vmem:[%s11151_s7 + $0x300] ss:$16 sps:$4 sm:$0xff]  }
 0x15f   : > { %v1096_v2 = vsel %vm1094_vm5, 0.0, %v8144_v61  ;;  %v1095_v3 = vsel %vm1094_vm5, 0.0, %v8143_v62  ;;  %v8366_v61 = vld [vmem:[%s11151_s7 + $0x320] ss:$16 sps:$4 sm:$0xff]   ;;  %v8371_v62 = vld [vmem:[%s11151_s7 + $0x344] ss:$16 sps:$4 sm:$0xff]  }
 0x160   : > { %v9200_v7 = vpack.c.bf16 %v1096_v2, %v1095_v3  ;;  %v8152_v27 = vpop.permute.xlu0 %8151  ;;  %v947_v2 = vld [vmem:[%s11149_s5] sm:$0xff]  ;;  %v948_v3 = vld [vmem:[%s11149_s5 + $0x8] sm:$0xff] }
 0x161   : > { %v8154_v30 = vunpack.i.h.bf16 %v8152_v27  ;;  %v8153_v32 = vunpack.i.l.bf16 %v8152_v27  ;;  %v954_v27 = vld [vmem:[%s11149_s5 + $0x38] sm:$0xff] }
 0x163   : > { %v1681_v37 = vsel %vm1094_vm5, 0.0, %v8154_v30  ;;  %v1680_v38 = vsel %vm1094_vm5, 0.0, %v8153_v32  ;;  %v8383_v32 = vld [vmem:[%s11151_s7 + $0x3c4] ss:$16 sps:$4 sm:$0xff]  }
 0x164   : > { %v9262_v16 = vpack.c.bf16 %v1681_v37, %v1680_v38  ;;  %v8381_v37 = vld [vmem:[%s11151_s7 + $0x3c0] ss:$16 sps:$4 sm:$0xff]   ;;  %v8386_v38 = vld [vmem:[%s11151_s7 + $0x3e4] ss:$16 sps:$4 sm:$0xff]  }
 0x16d   : > { %v832_v14 = vpop.permute.xlu1 %831 }
 0x16e   : > { %v838_v48 = vsel %vm837_vm2, %v517_v41, %v832_v14  ;;  %v8339_v41 = vld [vmem:[%s11151_s7 + $0x200] ss:$16 sps:$4 sm:$0xff]   ;;  %v8350_v14 = vld [vmem:[%s11151_s7 + $0x264] ss:$16 sps:$4 sm:$0xff]  }
 0x16f   : > { %7999 = vmatprep.mubr.msk.f32.mxu0 %vm851_vm3, %v838_v48  ;;  %v8348_v48 = vld [vmem:[%s11151_s7 + $0x260] ss:$16 sps:$4 sm:$0xff]  }
 0x171   : > { %v834_v49 = vpop.permute.xlu1 %833 }
 0x172   : > { %v839_v51 = vsel %vm837_vm2, %v620_v21, %v834_v49  ;;  %v8329_v21 = vld [vmem:[%s11151_s7 + $0x184] ss:$16 sps:$4 sm:$0xff]   ;;  %v9293_v49 = vpack.c.bf16 %v9094_v4, %v9089_v1 }
 0x173   : > { %8000 = vmatmul.mubr.msk.f32.vlgmr.msra.gmra.mrb[0].mxu0 %vm851_vm3, %v839_v51  ;;  %v8356_v51 = vld [vmem:[%s11151_s7 + $0x2a4] ss:$16 sps:$4 sm:$0xff]  }
 0x174   : > { %1216 = vmatpush1.bf16.msra.mxu0 %v8291_v19  ;;  %1247 = vmatprep.mubr.bf16.mxu0 %v8859_v0  ;;  %v8353_v19 = vld [vmem:[%s11151_s7 + $0x284] ss:$16 sps:$4 sm:$0xff]  }
 0x175   : > { %1217 = vmatprep.subr.bf16.mxu0 %v8296_v50  ;;  %v8147_v34 = vpop.permute.xlu1 %8146  ;;  %v8351_v50 = vld [vmem:[%s11151_s7 + $0x280] ss:$16 sps:$4 sm:$0xff]   ;;  %v8359_v1 = vld [vmem:[%s11151_s7 + $0x2c4] ss:$16 sps:$4 sm:$0xff]  }
 0x176   : > { %v8149_v12 = vunpack.i.h.bf16 %v8147_v34  ;;  %v8148_v13 = vunpack.i.l.bf16 %v8147_v34  ;;  %v950_v34 = vld [vmem:[%s11149_s5 + $0x18] sm:$0xff] }
 0x178   : > { %1218 = vmatpush1.bf16.msra.mxu0 %v8294_v35  ;;  %v1478_v17 = vsel %vm1476_vm6, %v8149_v12, 0.0  ;;  %v1477_v18 = vsel %vm1476_vm6, %v8148_v13, 0.0  ;;  %v8354_v35 = vld [vmem:[%s11151_s7 + $0x2a0] ss:$16 sps:$4 sm:$0xff]  }
 0x179   : > { %1219 = vmatprep.subr.bf16.mxu0 %v8299_v45  ;;  %v9231_v23 = vpack.c.bf16 %v1478_v17, %v1477_v18  ;;  %v8157_v4 = vpop.permute.xlu1 %8156  ;;  %v8357_v45 = vld [vmem:[%s11151_s7 + $0x2c0] ss:$16 sps:$4 sm:$0xff]   ;;  %v8377_v17 = vld [vmem:[%s11151_s7 + $0x384] ss:$16 sps:$4 sm:$0xff]  }
 0x17a   : > { %v8372_v13 = vld [vmem:[%s11151_s7 + $0x360] ss:$16 sps:$4 sm:$0xff]  }
 0x17c   : > { %1220 = vmatpush1.bf16.msra.mxu0 %v8297_v52  ;;  %v8159_v52 = vunpack.i.h.bf16 %v8157_v4 }
 0x17d   : > { %1221 = vmatprep.subr.bf16.mxu0 %v8302_v54  ;;  %v8158_v54 = vunpack.i.l.bf16 %v8157_v4 }
 0x180   : > { %1222 = vmatpush1.bf16.msra.mxu0 %v8300_v36  ;;  %v8362_v36 = vld [vmem:[%s11151_s7 + $0x2e4] ss:$16 sps:$4 sm:$0xff]  }
 0x181   : > { %1384 = vmatprep.subr.bf16.mxu0 %v8305_v53  ;;  %v2079_v53 = vsel %vm1476_vm6, %v8159_v52, 0.0 }
 0x183   : > { %6458 = vmatmul.mubr.msk.bf16.vlgmr.msra.gmra.mrb[4].mxu0 %vm962_vm4, %v9122_v29 }
 0x184   : > { %1385 = vmatpush1.bf16.msra.mxu0 %v8303_v55  ;;  %1416 = vmatprep.mubr.bf16.mxu0 %v8859_v0  ;;  %v2078_v55 = vsel %vm1476_vm6, %v8158_v54, 0.0 }
 0x185   : > { %1386 = vmatprep.subr.bf16.mxu0 %v8308_v56  ;;  %v8360_v56 = vld [vmem:[%s11151_s7 + $0x2e0] ss:$16 sps:$4 sm:$0xff]  }
 0x188   : > { %1387 = vmatpush1.bf16.msra.mxu0 %v8306_v57  ;;  %v8365_v57 = vld [vmem:[%s11151_s7 + $0x304] ss:$16 sps:$4 sm:$0xff]  }
 0x189   : > { %1388 = vmatprep.subr.bf16.mxu0 %v8311_v58  ;;  %v9324_v58 = vpack.c.bf16 %v2079_v53, %v2078_v55 }
 0x18c   : > { %1389 = vmatpush1.bf16.msra.mxu0 %v8309_v60  ;;  %v8368_v60 = vld [vmem:[%s11151_s7 + $0x324] ss:$16 sps:$4 sm:$0xff]  }
 0x18d   : > { %1390 = vmatprep.subr.bf16.mxu0 %v8314_v63  ;;  %v8162_v63 = vpop.permute.xlu0 %8161 }
 0x190   : > { %1391 = vmatpush1.bf16.msra.mxu0 %v8312_v5  ;;  %v8369_v5 = vld [vmem:[%s11151_s7 + $0x340] ss:$16 sps:$4 sm:$0xff]  }
 0x191   : > { %1580 = vmatprep.subr.bf16.mxu0 %v8317_v6  ;;  %v8164_v6 = vunpack.i.h.bf16 %v8162_v63 }
 0x193   : > { %6476 = vmatmul.mubr.msk.bf16.vlgmr.msra.gmra.mrb[4].mxu0 %vm962_vm4, %v9200_v7 }
 0x194   : > { %1581 = vmatpush1.bf16.msra.mxu0 %v8315_v31  ;;  %1612 = vmatprep.mubr.bf16.mxu0 %v8859_v0  ;;  %v8163_v31 = vunpack.i.l.bf16 %v8162_v63 }
 0x195   : > { %1582 = vmatprep.subr.bf16.mxu0 %v8320_v8  ;;  %v8029_v8 = vpack.c.bf16 %v948_v3, %v947_v2  ;;  %v8390_v3 = vld [vmem:[%s11151_s7 + $0x88] ss:$16 sps:$4 sm:$0xff]  }
 0x196   : > { %v2282_v12 = vsel %vm1094_vm5, 0.0, %v8163_v31  ;;  %v8396_v31 = vld [vmem:[%s11151_s7 + $0xa8] ss:$16 sps:$4 sm:$0xff]  }
 0x197   : > { %8030 = vmatprep.subr.bf16.mxu1 %v8029_v8 }
 0x198   : > { %1583 = vmatpush1.bf16.msra.mxu0 %v8318_v9  ;;  %v8374_v9 = vld [vmem:[%s11151_s7 + $0x364] ss:$16 sps:$4 sm:$0xff]   ;;  %8032 = vmatpush3.bf16.msra.mxu1 %v8029_v8  ;;  %v8404_v8 = vld [vmem:[%s11151_s7 + $0xcc] ss:$16 sps:$4 sm:$0xff]  }
 0x199   : > { %1584 = vmatprep.subr.bf16.mxu0 %v8323_v10  ;;  %v949_v10 = vld [vmem:[%s11149_s5 + $0x10] sm:$0xff] }
 0x19c   : > { %1585 = vmatpush1.bf16.msra.mxu0 %v8321_v11  ;;  %v2283_v11 = vsel %vm1094_vm5, 0.0, %v8164_v6  ;;  %v8398_v6 = vld [vmem:[%s11151_s7 + $0xac] ss:$16 sps:$4 sm:$0xff]  }
 0x19d   : > { %1586 = vmatprep.subr.bf16.mxu0 %v8326_v15  ;;  %v8033_v15 = vpack.c.bf16 %v950_v34, %v949_v10  ;;  %v9367_v18 = vpack.c.bf16 %v2283_v11, %v2282_v12  ;;  %v8410_v10 = vld [vmem:[%s11151_s7 + $0xec] ss:$16 sps:$4 sm:$0xff]   ;;  %v8408_v34 = vld [vmem:[%s11151_s7 + $0xe8] ss:$16 sps:$4 sm:$0xff]  }
 0x19e   : > { %v8413_v11 = vld [vmem:[%s11151_s7 + $0xc] ss:$16 sps:$4 sm:$0xff]   ;;  %v8411_v12 = vld [vmem:[%s11151_s7 + $0x8] ss:$16 sps:$4 sm:$0xff]  }
 0x19f   : > { %8034 = vmatprep.subr.bf16.mxu1 %v8033_v15 }
 0x1a0   : > { %1587 = vmatpush1.bf16.msra.mxu0 %v8324_v20  ;;  %8036 = vmatpush3.bf16.msra.mxu1 %v8033_v15  ;;  %v951_v20 = vld [vmem:[%s11149_s5 + $0x20] sm:$0xff]  ;;  %v8414_v15 = vld [vmem:[%s11151_s7 + $0x28] ss:$16 sps:$4 sm:$0xff]  }
 0x1a1   : > { %1783 = vmatprep.subr.bf16.mxu0 %v8329_v21  ;;  %v952_v21 = vld [vmem:[%s11149_s5 + $0x28] sm:$0xff] }
 0x1a3   : > { %6510 = vmatmul.mubr.msk.bf16.vlgmr.msra.gmra.mrb[4].mxu0 %vm962_vm4, %v9231_v23 }
 0x1a4   : > { %1784 = vmatpush1.bf16.msra.mxu0 %v8327_v24  ;;  %1815 = vmatprep.mubr.bf16.mxu0 %v8859_v0  ;;  %v8375_v24 = vld [vmem:[%s11151_s7 + $0x380] ss:$16 sps:$4 sm:$0xff]  }
 0x1a5   : > { %1785 = vmatprep.subr.bf16.mxu0 %v8332_v22  ;;  %v8037_v22 = vpack.c.bf16 %v952_v21, %v951_v20  ;;  %v8417_v20 = vld [vmem:[%s11151_s7 + $0x48] ss:$16 sps:$4 sm:$0xff]  }
 0x1a6   : > { %v8420_v21 = vld [vmem:[%s11151_s7 + $0x68] ss:$16 sps:$4 sm:$0xff]  }
 0x1a7   : > { %8038 = vmatprep.subr.bf16.mxu1 %v8037_v22 }
 0x1a8   : > { %1786 = vmatpush1.bf16.msra.mxu0 %v8330_v25  ;;  %v8380_v25 = vld [vmem:[%s11151_s7 + $0x3a4] ss:$16 sps:$4 sm:$0xff]   ;;  %8040 = vmatpush3.bf16.msra.mxu1 %v8037_v22  ;;  %v8423_v22 = vld [vmem:[%s11151_s7 + $0x108] ss:$16 sps:$4 sm:$0xff]  }
 0x1a9   : > { %1787 = vmatprep.subr.bf16.mxu0 %v8335_v26  ;;  %v953_v26 = vld [vmem:[%s11149_s5 + $0x30] sm:$0xff] }
 0x1aa   : > { %v8041_v30 = vpack.c.bf16 %v954_v27, %v953_v26  ;;  %v8426_v26 = vld [vmem:[%s11151_s7 + $0x128] ss:$16 sps:$4 sm:$0xff]   ;;  %v8431_v27 = vld [vmem:[%s11151_s7 + $0x14c] ss:$16 sps:$4 sm:$0xff]  }
 0x1ac   : > { %1788 = vmatpush1.bf16.msra.mxu0 %v8333_v28  ;;  %v8378_v28 = vld [vmem:[%s11151_s7 + $0x3a0] ss:$16 sps:$4 sm:$0xff]   ;;  %8042 = vmatprep.subr.bf16.mxu1 %v8041_v30 }
 0x1ad   : > { %1789 = vmatprep.subr.bf16.mxu0 %v8338_v33  ;;  %v8392_v33 = vld [vmem:[%s11151_s7 + $0x8c] ss:$16 sps:$4 sm:$0xff]   ;;  %8044 = vmatpush3.bf16.msra.mxu1 %v8041_v30  ;;  %v8432_v30 = vld [vmem:[%s11151_s7 + $0x168] ss:$16 sps:$4 sm:$0xff]  }
 0x1ae   : > { %1258 = vmatprep.subr.bf16.mxu1 %v8392_v33  ;;  %v8435_v33 = vld [vmem:[%s11151_s7 + $0x188] ss:$16 sps:$4 sm:$0xff]  }
 0x1b0   : > { %1790 = vmatpush1.bf16.msra.mxu0 %v8336_v39  ;;  %v8384_v39 = vld [vmem:[%s11151_s7 + $0x3e0] ss:$16 sps:$4 sm:$0xff]  }
 0x1b1   : > { %1978 = vmatprep.subr.bf16.mxu0 %v8341_v40  ;;  %v8389_v40 = vld [vmem:[%s11151_s7 + $0x404] ss:$16 sps:$4 sm:$0xff]  }
 0x1b3   : > { %6544 = vmatmul.mubr.msk.bf16.vlgmr.msra.gmra.mrb[4].mxu0 %vm962_vm4, %v9262_v16 }
 0x1b4   : > { %1979 = vmatpush1.bf16.msra.mxu0 %v8339_v41  ;;  %2010 = vmatprep.mubr.bf16.mxu0 %v8859_v0  ;;  %v8387_v41 = vld [vmem:[%s11151_s7 + $0x400] ss:$16 sps:$4 sm:$0xff]  }
 0x1b5   : > { %1980 = vmatprep.subr.bf16.mxu0 %v8344_v42  ;;  %v8395_v42 = vld [vmem:[%s11151_s7 + $0x424] ss:$16 sps:$4 sm:$0xff]  }
 0x1b8   : > { %1981 = vmatpush1.bf16.msra.mxu0 %v8342_v43  ;;  %v8393_v43 = vld [vmem:[%s11151_s7 + $0x420] ss:$16 sps:$4 sm:$0xff]  }
 0x1b9   : > { %1982 = vmatprep.subr.bf16.mxu0 %v8347_v44  ;;  %v8401_v44 = vld [vmem:[%s11151_s7 + $0x444] ss:$16 sps:$4 sm:$0xff]  }
 0x1bc   : > { %1983 = vmatpush1.bf16.msra.mxu0 %v8345_v47  ;;  %v8167_v47 = vpop.permute.xlu1 %8166 }
 0x1bd   : > { %1984 = vmatprep.subr.bf16.mxu0 %v8350_v14  ;;  %v8399_v14 = vld [vmem:[%s11151_s7 + $0x440] ss:$16 sps:$4 sm:$0xff]  }
 0x1c0   : > { %1985 = vmatpush1.bf16.msra.mxu0 %v8348_v48  ;;  %v8169_v48 = vunpack.i.h.bf16 %v8167_v47 }
 0x1c1   : > { %2181 = vmatprep.subr.bf16.mxu0 %v8353_v19  ;;  %v8168_v19 = vunpack.i.l.bf16 %v8167_v47  ;;  %v8450_v47 = vld [vmem:[%s11151_s7 + $0x228] ss:$16 sps:$4 sm:$0xff]  }
 0x1c3   : > { %6578 = vmatmul.mubr.msk.bf16.vlgmr.msra.gmra.mrb[4].mxu0 %vm962_vm4, %v9293_v49 }
 0x1c4   : > { %2182 = vmatpush1.bf16.msra.mxu0 %v8351_v50  ;;  %2213 = vmatprep.mubr.bf16.mxu0 %v8859_v0  ;;  %v8407_v50 = vld [vmem:[%s11151_s7 + $0x464] ss:$16 sps:$4 sm:$0xff]  }
 0x1c5   : > { %2183 = vmatprep.subr.bf16.mxu0 %v8356_v51  ;;  %v2681_v51 = vsel %vm1476_vm6, %v8169_v48, 0.0  ;;  %v8453_v48 = vld [vmem:[%s11151_s7 + $0x248] ss:$16 sps:$4 sm:$0xff]  }
 0x1c8   : > { %2184 = vmatpush1.bf16.msra.mxu0 %v8354_v35  ;;  %v2680_v35 = vsel %vm1476_vm6, %v8168_v19, 0.0  ;;  %v8456_v19 = vld [vmem:[%s11151_s7 + $0x268] ss:$16 sps:$4 sm:$0xff]  }
 0x1c9   : > { %2185 = vmatprep.subr.bf16.mxu0 %v8359_v1  ;;  %v8405_v1 = vld [vmem:[%s11151_s7 + $0x460] ss:$16 sps:$4 sm:$0xff]   ;;  %v9437_v4 = vpack.c.bf16 %v2681_v51, %v2680_v35  ;;  %v8459_v51 = vld [vmem:[%s11151_s7 + $0x288] ss:$16 sps:$4 sm:$0xff]   ;;  %v8464_v35 = vld [vmem:[%s11151_s7 + $0x2ac] ss:$16 sps:$4 sm:$0xff]  }
 0x1cc   : > { %2186 = vmatpush1.bf16.msra.mxu0 %v8357_v45  ;;  %v6418_v45 = vld [vmem:[%s11148_s4] ss:$0 sm:$0xff] }
 0x1cd   : > { %2187 = vmatprep.subr.bf16.mxu0 %v8362_v36 }
 0x1d0   : > { %2188 = vmatpush1.bf16.msra.mxu0 %v8360_v56 }
 0x1d1   : > { %2385 = vmatprep.subr.bf16.mxu0 %v8365_v57 }
 0x1d3   : > { %6612 = vmatmul.mubr.msk.bf16.vlgmr.msra.gmra.mrb[4].mxu0 %vm962_vm4, %v9324_v58 }
 0x1d4   : > { %2386 = vmatpush1.bf16.msra.mxu0 %v8363_v59  ;;  %2417 = vmatprep.mubr.bf16.mxu0 %v8859_v0 }
 0x1d5   : > { %2387 = vmatprep.subr.bf16.mxu0 %v8368_v60 }
 0x1d8   : > { %2388 = vmatpush1.bf16.msra.mxu0 %v8366_v61 }
 0x1d9   : > { %2389 = vmatprep.subr.bf16.mxu0 %v8371_v62 }
 0x1dc   : > { %2390 = vmatpush1.bf16.msra.mxu0 %v8369_v5 }
 0x1dd   : > { %2391 = vmatprep.subr.bf16.mxu0 %v8374_v9  ;;  %v8402_v9 = vld [vmem:[%s11151_s7 + $0xc8] ss:$16 sps:$4 sm:$0xff]  }
 0x1e0   : > { %2392 = vmatpush1.bf16.msra.mxu0 %v8372_v13  ;;  %v8416_v13 = vld [vmem:[%s11151_s7 + $0x2c] ss:$16 sps:$4 sm:$0xff]  }
 0x1e1   : > { %2580 = vmatprep.subr.bf16.mxu0 %v8377_v17  ;;  %v8419_v17 = vld [vmem:[%s11151_s7 + $0x4c] ss:$16 sps:$4 sm:$0xff]  }
 0x1e3   : > { %6646 = vmatmul.mubr.msk.bf16.vlgmr.msra.gmra.mrb[4].mxu0 %vm962_vm4, %v9367_v18 }
 0x1e4   : > { %2581 = vmatpush1.bf16.msra.mxu0 %v8375_v24  ;;  %2612 = vmatprep.mubr.bf16.mxu0 %v8859_v0  ;;  %v8425_v24 = vld [vmem:[%s11151_s7 + $0x10c] ss:$16 sps:$4 sm:$0xff]  }
 0x1e5   : > { %2582 = vmatprep.subr.bf16.mxu0 %v8380_v25  ;;  %v8428_v25 = vld [vmem:[%s11151_s7 + $0x12c] ss:$16 sps:$4 sm:$0xff]  }
 0x1e8   : > { %2583 = vmatpush1.bf16.msra.mxu0 %v8378_v28  ;;  %v8429_v28 = vld [vmem:[%s11151_s7 + $0x148] ss:$16 sps:$4 sm:$0xff]  }
 0x1e9   : > { %2584 = vmatprep.subr.bf16.mxu0 %v8383_v32  ;;  %v8437_v32 = vld [vmem:[%s11151_s7 + $0x18c] ss:$16 sps:$4 sm:$0xff]  }
 0x1ec   : > { %2585 = vmatpush1.bf16.msra.mxu0 %v8381_v37  ;;  %v8440_v37 = vld [vmem:[%s11151_s7 + $0x1ac] ss:$16 sps:$4 sm:$0xff]  }
 0x1ed   : > { %2586 = vmatprep.subr.bf16.mxu0 %v8386_v38  ;;  %v8438_v38 = vld [vmem:[%s11151_s7 + $0x1a8] ss:$16 sps:$4 sm:$0xff]  }
 0x1f0   : > { %2587 = vmatpush1.bf16.msra.mxu0 %v8384_v39  ;;  %v8443_v39 = vld [vmem:[%s11151_s7 + $0x1cc] ss:$16 sps:$4 sm:$0xff]  }
 0x1f1   : > { %2783 = vmatprep.subr.bf16.mxu0 %v8389_v40  ;;  %v8441_v40 = vld [vmem:[%s11151_s7 + $0x1c8] ss:$16 sps:$4 sm:$0xff]  }
 0x1f3   : > { %6680 = vmatmul.mubr.msk.bf16.vlgmr.msra.gmra.mrb[4].mxu0 %vm962_vm4, %v9142_v46 }
 0x1f4   : > { %2784 = vmatpush1.bf16.msra.mxu0 %v8387_v41  ;;  %2815 = vmatprep.mubr.bf16.mxu0 %v8859_v0  ;;  %v8444_v41 = vld [vmem:[%s11151_s7 + $0x1e8] ss:$16 sps:$4 sm:$0xff]  }
 0x1f5   : > { %2785 = vmatprep.subr.bf16.mxu0 %v8395_v42  ;;  %v8449_v42 = vld [vmem:[%s11151_s7 + $0x20c] ss:$16 sps:$4 sm:$0xff]  }
 0x1f8   : > { %2786 = vmatpush1.bf16.msra.mxu0 %v8393_v43  ;;  %v8447_v43 = vld [vmem:[%s11151_s7 + $0x208] ss:$16 sps:$4 sm:$0xff]  }
 0x1f9   : > { %2787 = vmatprep.subr.bf16.mxu0 %v8401_v44  ;;  %v8452_v44 = vld [vmem:[%s11151_s7 + $0x22c] ss:$16 sps:$4 sm:$0xff]  }
 0x1fc   : > { %2788 = vmatpush1.bf16.msra.mxu0 %v8399_v14  ;;  %v8455_v14 = vld [vmem:[%s11151_s7 + $0x24c] ss:$16 sps:$4 sm:$0xff]  }
 0x1fd   : > { %2789 = vmatprep.subr.bf16.mxu0 %v8407_v50  ;;  %v8461_v50 = vld [vmem:[%s11151_s7 + $0x28c] ss:$16 sps:$4 sm:$0xff]  }
 0x200   : > { %2790 = vmatpush1.bf16.msra.mxu0 %v8405_v1  ;;  %v8462_v1 = vld [vmem:[%s11151_s7 + $0x2a8] ss:$16 sps:$4 sm:$0xff]  }
 0x203   : > { %6714 = vmatmul.mubr.msk.bf16.vlgmr.msra.gmra.mrb[4].mxu0 %vm962_vm4, %v9437_v4 }
 0x246   : > { %v8001_v52 = vpop.f32.mrb[0].mxu0 }
 0x247   : > { %v930_v54 = vadd.f32 %v8001_v52, %v6418_v45  ;;  %v924_v36 = vpop.f32.mrb[1].mxu0  ;;  %v8465_v52 = vld [vmem:[%s11151_s7 + $0x2c8] ss:$16 sps:$4 sm:$0xff]  }
 0x248   : > { %v925_v53 = vadd.f32 %v6418_v45, %v924_v36  ;;  %v8467_v45 = vld [vmem:[%s11151_s7 + $0x2cc] ss:$16 sps:$4 sm:$0xff]  }
 0x249   : > { %v6422_v55 = vmul.f32 -1.442695, %v930_v54  ;;  %v8473_v36 = vld [vmem:[%s11151_s7 + $0x30c] ss:$16 sps:$4 sm:$0xff]  }
 0x24a   : > { %v6421_v56 = vmul.f32 -1.442695, %v925_v53 }
 0x24b   : > { %8807 = vpow2.f32 %v6422_v55  ;;  %v8476_v55 = vld [vmem:[%s11151_s7 + $0x32c] ss:$16 sps:$4 sm:$0xff]  }
 0x24c   : > { %8809 = vpow2.f32 %v6421_v56  ;;  %v8474_v56 = vld [vmem:[%s11151_s7 + $0x328] ss:$16 sps:$4 sm:$0xff]  }
 0x255   : > { %v8808_v57 = vpop.eup %8807 }
 0x256   : > { %v8810_v59 = vpop.eup %8809  ;;  %v940_v60 = vadd.f32 1.0, %v8808_v57  ;;  %v8479_v57 = vld [vmem:[%s11151_s7 + $0x34c] ss:$16 sps:$4 sm:$0xff]  }
 0x257   : > { %v939_v61 = vadd.f32 1.0, %v8810_v59  ;;  %v8477_v59 = vld [vmem:[%s11151_s7 + $0x348] ss:$16 sps:$4 sm:$0xff]  }
 0x258   : > { %8811 = vrcp.f32 %v940_v60  ;;  %v8480_v60 = vld [vmem:[%s11151_s7 + $0x368] ss:$16 sps:$4 sm:$0xff]  }
 0x259   : > { %8813 = vrcp.f32 %v939_v61  ;;  %v8485_v61 = vld [vmem:[%s11151_s7 + $0x38c] ss:$16 sps:$4 sm:$0xff]  }
 0x262   : > { %v8812_v62 = vpop.eup %8811 }
 0x263   : > { %v8814_v63 = vpop.eup %8813  ;;  %v946_v5 = vmul.f32 %v8812_v62, %v930_v54  ;;  %v8468_v54 = vld [vmem:[%s11151_s7 + $0x2e8] ss:$16 sps:$4 sm:$0xff]  }
 0x264   : > { %v945_v2 = vmul.f32 %v8814_v63, %v925_v53  ;;  %v8471_v53 = vld [vmem:[%s11151_s7 + $0x308] ss:$16 sps:$4 sm:$0xff]   ;;  %v8488_v63 = vld [vmem:[%s11151_s7 + $0x3ac] ss:$16 sps:$4 sm:$0xff]  }
 0x265   : > { %v8483_v62 = vld [vmem:[%s11151_s7 + $0x388] ss:$16 sps:$4 sm:$0xff]  }
 0x266   : > { %8018 = vmatprep.mubr.msk.f32.mxu1 %vm962_vm4, %v945_v2 }
 0x267   : > { %8019 = vmatmul.mubr.msk.f32.vlgmr.msra.gmra.mrb[0].mxu1 %vm962_vm4, %v946_v5  ;;  %v8486_v5 = vld [vmem:[%s11151_s7 + $0x3a8] ss:$16 sps:$4 sm:$0xff]  }
 0x268   : > { %1259 = vmatpush1.bf16.msra.mxu1 %v8390_v3  ;;  %1290 = vmatprep.mubr.bf16.mxu1 %v8859_v0 }
 0x269   : > { %1260 = vmatprep.subr.bf16.mxu1 %v8398_v6 }
 0x26c   : > { %1261 = vmatpush1.bf16.msra.mxu1 %v8396_v31  ;;  %v8491_v31 = vld [vmem:[%s11151_s7 + $0x3cc] ss:$16 sps:$4 sm:$0xff]  }
 0x26d   : > { %1262 = vmatprep.subr.bf16.mxu1 %v8404_v8 }
 0x270   : > { %1263 = vmatpush1.bf16.msra.mxu1 %v8402_v9  ;;  %v8494_v9 = vld [vmem:[%s11151_s7 + $0x3ec] ss:$16 sps:$4 sm:$0xff]  }
 0x271   : > { %1264 = vmatprep.subr.bf16.mxu1 %v8410_v10  ;;  %v8492_v10 = vld [vmem:[%s11151_s7 + $0x3e8] ss:$16 sps:$4 sm:$0xff]  }
 0x274   : > { %1265 = vmatpush1.bf16.msra.mxu1 %v8408_v34  ;;  %v8497_v34 = vld [vmem:[%s11151_s7 + $0x40c] ss:$16 sps:$4 sm:$0xff]  }
 0x275   : > { %1427 = vmatprep.subr.bf16.mxu1 %v8413_v11  ;;  %v8495_v11 = vld [vmem:[%s11151_s7 + $0x408] ss:$16 sps:$4 sm:$0xff]  }
 0x277   : > { %6459 = vmatmul.mubr.msk.bf16.vlgmr.msra.gmra.mrb[4].mxu1 %vm962_vm4, %v9122_v29  ;;  %v8422_v29 = vld [vmem:[%s11151_s7 + $0x6c] ss:$16 sps:$4 sm:$0xff]  }
 0x278   : > { %1428 = vmatpush1.bf16.msra.mxu1 %v8411_v12  ;;  %1459 = vmatprep.mubr.bf16.mxu1 %v8859_v0  ;;  %v8500_v12 = vld [vmem:[%s11151_s7 + $0x42c] ss:$16 sps:$4 sm:$0xff]  }
 0x279   : > { %1429 = vmatprep.subr.bf16.mxu1 %v8416_v13  ;;  %v8498_v13 = vld [vmem:[%s11151_s7 + $0x428] ss:$16 sps:$4 sm:$0xff]  }
 0x27c   : > { %1430 = vmatpush1.bf16.msra.mxu1 %v8414_v15  ;;  %v8503_v15 = vld [vmem:[%s11151_s7 + $0x44c] ss:$16 sps:$4 sm:$0xff]  }
 0x27d   : > { %1431 = vmatprep.subr.bf16.mxu1 %v8419_v17  ;;  %v8501_v17 = vld [vmem:[%s11151_s7 + $0x448] ss:$16 sps:$4 sm:$0xff]  }
 0x280   : > { %1432 = vmatpush1.bf16.msra.mxu1 %v8417_v20  ;;  %v6423_v20 = vld [vmem:[%s11150_s6] ss:$0 sm:$0xff] }
 0x281   : > { %1433 = vmatprep.subr.bf16.mxu1 %v8422_v29 }
 0x284   : > { %1434 = vmatpush1.bf16.msra.mxu1 %v8420_v21 }
 0x285   : > { %1623 = vmatprep.subr.bf16.mxu1 %v8425_v24 }
 0x287   : > { %6477 = vmatmul.mubr.msk.bf16.vlgmr.msra.gmra.mrb[4].mxu1 %vm962_vm4, %v9200_v7  ;;  %v8434_v7 = vld [vmem:[%s11151_s7 + $0x16c] ss:$16 sps:$4 sm:$0xff]  }
 0x288   : > { %1624 = vmatpush1.bf16.msra.mxu1 %v8423_v22  ;;  %1655 = vmatprep.mubr.bf16.mxu1 %v8859_v0 }
 0x289   : > { %1625 = vmatprep.subr.bf16.mxu1 %v8428_v25  ;;  %v8508_v25 = vld [vmem:[%s11152_s8 + $0x100] sm:$0xff]  }
 0x28c   : > { %1626 = vmatpush1.bf16.msra.mxu1 %v8426_v26  ;;  %v8509_v26 = vld [vmem:[%s11152_s8 + $0x148] sm:$0xff]  }
 0x28d   : > { %1627 = vmatprep.subr.bf16.mxu1 %v8431_v27  ;;  %v8510_v27 = vld [vmem:[%s11152_s8 + $0x108] sm:$0xff]  }
 0x290   : > { %1628 = vmatpush1.bf16.msra.mxu1 %v8429_v28  ;;  %v8511_v28 = vld [vmem:[%s11152_s8 + $0x150] sm:$0xff]  }
 0x291   : > { %1629 = vmatprep.subr.bf16.mxu1 %v8434_v7  ;;  %v8512_v7 = vld [vmem:[%s11152_s8 + $0x110] sm:$0xff]  }
 0x294   : > { %1630 = vmatpush1.bf16.msra.mxu1 %v8432_v30  ;;  %v8513_v30 = vld [vmem:[%s11152_s8 + $0x158] sm:$0xff]  }
 0x295   : > { %1826 = vmatprep.subr.bf16.mxu1 %v8437_v32  ;;  %v8514_v32 = vld [vmem:[%s11152_s8 + $0x118] sm:$0xff]  }
 0x297   : > { %6511 = vmatmul.mubr.msk.bf16.vlgmr.msra.gmra.mrb[4].mxu1 %vm962_vm4, %v9231_v23  ;;  %v8446_v23 = vld [vmem:[%s11151_s7 + $0x1ec] ss:$16 sps:$4 sm:$0xff]  }
 0x298   : > { %1827 = vmatpush1.bf16.msra.mxu1 %v8435_v33  ;;  %1858 = vmatprep.mubr.bf16.mxu1 %v8859_v0  ;;  %v8515_v33 = vld [vmem:[%s11152_s8 + $0x160] sm:$0xff]  }
 0x299   : > { %1828 = vmatprep.subr.bf16.mxu1 %v8440_v37  ;;  %v8516_v37 = vld [vmem:[%s11152_s8 + $0x120] sm:$0xff]  }
 0x29c   : > { %1829 = vmatpush1.bf16.msra.mxu1 %v8438_v38  ;;  %v8517_v38 = vld [vmem:[%s11152_s8 + $0x1c0] sm:$0xff]  }
 0x29d   : > { %1830 = vmatprep.subr.bf16.mxu1 %v8443_v39  ;;  %v8518_v39 = vld [vmem:[%s11152_s8 + $0x168] sm:$0xff]  }
 0x2a0   : > { %1831 = vmatpush1.bf16.msra.mxu1 %v8441_v40  ;;  %v8519_v40 = vld [vmem:[%s11152_s8 + $0x180] sm:$0xff]  }
 0x2a1   : > { %1832 = vmatprep.subr.bf16.mxu1 %v8446_v23  ;;  %v8520_v23 = vld [vmem:[%s11152_s8 + $0x128] sm:$0xff]  }
 0x2a4   : > { %1833 = vmatpush1.bf16.msra.mxu1 %v8444_v41  ;;  %v8521_v41 = vld [vmem:[%s11152_s8 + $0x1c8] sm:$0xff]  }
 0x2a5   : > { %2021 = vmatprep.subr.bf16.mxu1 %v8449_v42  ;;  %v8522_v42 = vld [vmem:[%s11152_s8 + $0x170] sm:$0xff]  }
 0x2a7   : > { %6545 = vmatmul.mubr.msk.bf16.vlgmr.msra.gmra.mrb[4].mxu1 %vm962_vm4, %v9262_v16  ;;  %v8458_v16 = vld [vmem:[%s11151_s7 + $0x26c] ss:$16 sps:$4 sm:$0xff]  }
 0x2a8   : > { %2022 = vmatpush1.bf16.msra.mxu1 %v8447_v43  ;;  %2053 = vmatprep.mubr.bf16.mxu1 %v8859_v0  ;;  %v8523_v43 = vld [vmem:[%s11152_s8 + $0x188] sm:$0xff]  }
 0x2a9   : > { %2023 = vmatprep.subr.bf16.mxu1 %v8452_v44  ;;  %v8524_v44 = vld [vmem:[%s11152_s8 + $0x130] sm:$0xff]  }
 0x2ac   : > { %2024 = vmatpush1.bf16.msra.mxu1 %v8450_v47  ;;  %v8525_v47 = vld [vmem:[%s11152_s8 + $0x1d0] sm:$0xff]  }
 0x2ad   : > { %2025 = vmatprep.subr.bf16.mxu1 %v8455_v14  ;;  %v8526_v14 = vld [vmem:[%s11152_s8 + $0x178] sm:$0xff]  }
 0x2b0   : > { %2026 = vmatpush1.bf16.msra.mxu1 %v8453_v48  ;;  %v8527_v48 = vld [vmem:[%s11152_s8 + $0x190] sm:$0xff]  }
 0x2b1   : > { %2027 = vmatprep.subr.bf16.mxu1 %v8458_v16  ;;  %v8528_v16 = vld [vmem:[%s11152_s8 + $0x138] sm:$0xff]  }
 0x2b4   : > { %2028 = vmatpush1.bf16.msra.mxu1 %v8456_v19  ;;  %v8529_v19 = vld [vmem:[%s11152_s8 + $0x1d8] sm:$0xff]  }
 0x2b5   : > { %2224 = vmatprep.subr.bf16.mxu1 %v8461_v50  ;;  %v8530_v50 = vld [vmem:[%s11152_s8 + $0x198] sm:$0xff]  }
 0x2b7   : > { %6579 = vmatmul.mubr.msk.bf16.vlgmr.msra.gmra.mrb[4].mxu1 %vm962_vm4, %v9293_v49  ;;  %v8470_v49 = vld [vmem:[%s11151_s7 + $0x2ec] ss:$16 sps:$4 sm:$0xff]  }
 0x2b8   : > { %2225 = vmatpush1.bf16.msra.mxu1 %v8459_v51  ;;  %2256 = vmatprep.mubr.bf16.mxu1 %v8859_v0  ;;  %v8531_v51 = vld [vmem:[%s11152_s8 + $0x1e0] sm:$0xff]  }
 0x2b9   : > { %2226 = vmatprep.subr.bf16.mxu1 %v8464_v35  ;;  %v8532_v35 = vld [vmem:[%s11152_s8 + $0x1a0] sm:$0xff]  }
 0x2bc   : > { %2227 = vmatpush1.bf16.msra.mxu1 %v8462_v1  ;;  %v8533_v1 = vld [vmem:[%s11152_s8 + $0x1e8] sm:$0xff]  }
 0x2bd   : > { %2228 = vmatprep.subr.bf16.mxu1 %v8467_v45  ;;  %v8534_v45 = vld [vmem:[%s11152_s8 + $0x1a8] sm:$0xff]  }
 0x2c0   : > { %2229 = vmatpush1.bf16.msra.mxu1 %v8465_v52  ;;  %v8535_v52 = vld [vmem:[%s11152_s8 + $0x1f0] sm:$0xff]  }
 0x2c1   : > { %2230 = vmatprep.subr.bf16.mxu1 %v8470_v49  ;;  %v8536_v49 = vld [vmem:[%s11152_s8 + $0x1b0] sm:$0xff]  }
 0x2c4   : > { %2231 = vmatpush1.bf16.msra.mxu1 %v8468_v54  ;;  %v8537_v54 = vld [vmem:[%s11152_s8 + $0x1f8] sm:$0xff]  }
 0x2c5   : > { %2428 = vmatprep.subr.bf16.mxu1 %v8473_v36  ;;  %v8538_v36 = vld [vmem:[%s11152_s8 + $0x1b8] sm:$0xff]  }
 0x2c7   : > { %6613 = vmatmul.mubr.msk.bf16.vlgmr.msra.gmra.mrb[4].mxu1 %vm962_vm4, %v9324_v58  ;;  %v8482_v58 = vld [vmem:[%s11151_s7 + $0x36c] ss:$16 sps:$4 sm:$0xff]  }
 0x2c8   : > { %2429 = vmatpush1.bf16.msra.mxu1 %v8471_v53  ;;  %2460 = vmatprep.mubr.bf16.mxu1 %v8859_v0  ;;  %v8539_v53 = vld [vmem:[%s11152_s8 + $0x40] sm:$0xff]  }
 0x2c9   : > { %2430 = vmatprep.subr.bf16.mxu1 %v8476_v55  ;;  %v8549_v55 = vld [vmem:[%s11152_s8 + $0xc0] sm:$0xff]  }
 0x2cc   : > { %2431 = vmatpush1.bf16.msra.mxu1 %v8474_v56 }
 0x2cd   : > { %2432 = vmatprep.subr.bf16.mxu1 %v8479_v57 }
 0x2d0   : > { %2433 = vmatpush1.bf16.msra.mxu1 %v8477_v59 }
 0x2d1   : > { %2434 = vmatprep.subr.bf16.mxu1 %v8482_v58 }
 0x2d4   : > { %2435 = vmatpush1.bf16.msra.mxu1 %v8480_v60 }
 0x2d5   : > { %2623 = vmatprep.subr.bf16.mxu1 %v8485_v61 }
 0x2d6   : > { %v9639_v2 = vpop.f32.mrb[4].mxu0 }
 0x2d7   : > { %6647 = vmatmul.mubr.msk.bf16.vlgmr.msra.gmra.mrb[4].mxu1 %vm962_vm4, %v9367_v18  ;;  %v9643_v3 = vpop.f32.mrb[5].mxu0  ;;  %v8489_v18 = vld [vmem:[%s11151_s7 + $0x3c8] ss:$16 sps:$4 sm:$0xff]  }
 0x2d8   : > { %2624 = vmatpush1.bf16.msra.mxu1 %v8483_v62  ;;  %2655 = vmatprep.mubr.bf16.mxu1 %v8859_v0  ;;  %v9649_v6 = vpop.f32.mrb[6].mxu0 }
 0x2d9   : > { %2625 = vmatprep.subr.bf16.mxu1 %v8488_v63  ;;  %v9654_v8 = vpop.f32.mrb[7].mxu0 }
 0x2dc   : > { %2626 = vmatpush1.bf16.msra.mxu1 %v8486_v5 }
 0x2dd   : > { %2627 = vmatprep.subr.bf16.mxu1 %v8491_v31 }
 0x2e0   : > { %2628 = vmatpush1.bf16.msra.mxu1 %v8489_v18 }
 0x2e1   : > { %2629 = vmatprep.subr.bf16.mxu1 %v8494_v9 }
 0x2e4   : > { %2630 = vmatpush1.bf16.msra.mxu1 %v8492_v10 }
 0x2e5   : > { %2826 = vmatprep.subr.bf16.mxu1 %v8497_v34 }
 0x2e7   : > { %6681 = vmatmul.mubr.msk.bf16.vlgmr.msra.gmra.mrb[4].mxu1 %vm962_vm4, %v9142_v46  ;;  %v8506_v46 = vld [vmem:[%s11151_s7 + $0x46c] ss:$16 sps:$4 sm:$0xff]  }
 0x2e8   : > { %2827 = vmatpush1.bf16.msra.mxu1 %v8495_v11  ;;  %2858 = vmatprep.mubr.bf16.mxu1 %v8859_v0  ;;  %v8504_v0 = vld [vmem:[%s11151_s7 + $0x468] ss:$16 sps:$4 sm:$0xff]  }
 0x2e9   : > { %2828 = vmatprep.subr.bf16.mxu1 %v8500_v12 }
 0x2ec   : > { %2829 = vmatpush1.bf16.msra.mxu1 %v8498_v13 }
 0x2ed   : > { %2830 = vmatprep.subr.bf16.mxu1 %v8503_v15 }
 0x2f0   : > { %2831 = vmatpush1.bf16.msra.mxu1 %v8501_v17 }
 0x2f1   : > { %2832 = vmatprep.subr.bf16.mxu1 %v8506_v46 }
 0x2f4   : > { %2833 = vmatpush1.bf16.msra.mxu1 %v8504_v0 }
 0x2f5   : > { %7617 = vmatprep.subr.bf16.mxu1 %v8517_v38 }
 0x2f7   : > { %6715 = vmatmul.mubr.msk.bf16.vlgmr.msra.gmra.mrb[4].mxu1 %vm962_vm4, %v9437_v4  ;;  %v8507_v4 = vld [vmem:[%s11152_s8 + $0x140] sm:$0xff]  }
 0x2f8   : > { %7595 = vmatprep.subr.bf16.mxu0 %v8507_v4  ;;  %7618 = vmatpush3.bf16.msra.mxu1 %v8519_v40 }
 0x2f9   : > { %7596 = vmatpush3.bf16.msra.mxu0 %v8508_v25  ;;  %7619 = vmatprep.subr.bf16.mxu1 %v8521_v41 }
 0x2fa   : > { %7597 = vmatprep.subr.bf16.mxu0 %v8509_v26 }
 0x2fc   : > { %7620 = vmatpush3.bf16.msra.mxu1 %v8523_v43 }
 0x2fd   : > { %7598 = vmatpush3.bf16.msra.mxu0 %v8510_v27  ;;  %7621 = vmatprep.subr.bf16.mxu1 %v8525_v47 }
 0x2fe   : > { %7599 = vmatprep.subr.bf16.mxu0 %v8511_v28 }
 0x300   : > { %7622 = vmatpush3.bf16.msra.mxu1 %v8527_v48 }
 0x301   : > { %7600 = vmatpush3.bf16.msra.mxu0 %v8512_v7  ;;  %7623 = vmatprep.subr.bf16.mxu1 %v8529_v19 }
 0x302   : > { %7601 = vmatprep.subr.bf16.mxu0 %v8513_v30 }
 0x304   : > { %7624 = vmatpush3.bf16.msra.mxu1 %v8530_v50 }
 0x305   : > { %7602 = vmatpush3.bf16.msra.mxu0 %v8514_v32  ;;  %7625 = vmatprep.subr.bf16.mxu1 %v8531_v51 }
 0x306   : > { %7603 = vmatprep.subr.bf16.mxu0 %v8515_v33 }
 0x308   : > { %7626 = vmatpush3.bf16.msra.mxu1 %v8532_v35 }
 0x309   : > { %7604 = vmatpush3.bf16.msra.mxu0 %v8516_v37  ;;  %7627 = vmatprep.subr.bf16.mxu1 %v8533_v1 }
 0x30a   : > { %7605 = vmatprep.subr.bf16.mxu0 %v8518_v39 }
 0x30c   : > { %7628 = vmatpush3.bf16.msra.mxu1 %v8534_v45 }
 0x30d   : > { %7606 = vmatpush3.bf16.msra.mxu0 %v8520_v23  ;;  %7629 = vmatprep.subr.bf16.mxu1 %v8535_v52 }
 0x30e   : > { %7607 = vmatprep.subr.bf16.mxu0 %v8522_v42 }
 0x310   : > { %7630 = vmatpush3.bf16.msra.mxu1 %v8536_v49 }
 0x311   : > { %7608 = vmatpush3.bf16.msra.mxu0 %v8524_v44  ;;  %7631 = vmatprep.subr.bf16.mxu1 %v8537_v54 }
 0x312   : > { %7609 = vmatprep.subr.bf16.mxu0 %v8526_v14 }
 0x314   : > { %7632 = vmatpush3.bf16.msra.mxu1 %v8538_v36 }
 0x315   : > { %7610 = vmatpush3.bf16.msra.mxu0 %v8528_v16  ;;  %7661 = vmatprep.subr.bf16.mxu1 %v8549_v55 }
 0x316   : > { %7639 = vmatprep.subr.bf16.mxu0 %v8539_v53 }
 0x33a   : > { %v8020_v29 = vpop.f32.mrb[0].mxu1 }
 0x33b   : > { %v9697_v21 = vadd.f32 %v8020_v29, %v6423_v20  ;;  %v1035_v24 = vpop.f32.mrb[1].mxu1 }
 0x33c   : > { %v9699_v22 = vadd.f32 %v6423_v20, %v1035_v24 }
 0x33d   : > { %1048 = vrot.lane.b32.xlu1 %v9697_v21, %s8869_s23 }
 0x33e   : > { %1046 = vrot.lane.b32.xlu0 %v9699_v22, %s8869_s23 }
 0x341   : > { %1054 = vrot.lane.b32.xlu1 %v9697_v21, %s8870_s26 }
 0x342   : > { %1052 = vrot.lane.b32.xlu0 %v9699_v22, %s8870_s26 }
 0x345   : > { %1060 = vrot.lane.b32.xlu1 %v9697_v21, %s8871_s12 }
 0x346   : > { %1058 = vrot.lane.b32.xlu0 %v9699_v22, %s8871_s12 }
 0x3af   : > { %v1049_v56 = vpop.permute.xlu1 %1048 }
 0x3b0   : > { %v1047_v57 = vpop.permute.xlu0 %1046  ;;  %v1065_v60 = vsel %vm851_vm3, %v9697_v21, %v1049_v56 }
 0x3b1   : > { %v1064_v61 = vsel %vm851_vm3, %v9699_v22, %v1047_v57 }
 0x3b3   : > { %v1055_v59 = vpop.permute.xlu1 %1054 }
 0x3b4   : > { %v1053_v58 = vpop.permute.xlu0 %1052  ;;  %v1067_v62 = vsel %vm962_vm4, %v1065_v60, %v1055_v59 }
 0x3b5   : > { %v1066_v5 = vsel %vm962_vm4, %v1064_v61, %v1053_v58 }
 0x3b7   : > { %v1061_v63 = vpop.permute.xlu1 %1060 }
 0x3b8   : > { %v1070_v31 = vsel %vm1068_vm7, %v1067_v62, %v1061_v63  ;;  %v1059_v18 = vpop.permute.xlu0 %1058 }
 0x3b9   : > { %v2881_v9 = vadd.f32 %v9649_v6, %v1070_v31  ;;  %v2882_v10 = vadd.f32 %v9654_v8, %v1070_v31  ;;  %v1069_v34 = vsel %vm1068_vm7, %v1066_v5, %v1059_v18 }
 0x3ba   : > { %v2877_v11 = vadd.f32 %v9639_v2, %v1069_v34  ;;  %v2878_v12 = vadd.f32 %v9643_v3, %v1069_v34 }
 0x3bb   : > { %v6720_v13 = vmul.f32 -1.442695, %v2881_v9  ;;  %v6721_v15 = vmul.f32 -1.442695, %v2882_v10 }
 0x3bc   : > { %v6716_v17 = vmul.f32 -1.442695, %v2877_v11  ;;  %v6717_v46 = vmul.f32 -1.442695, %v2878_v12 }
 0x3bd   : > { %8815 = vpow2.f32 %v6720_v13 }
 0x3be   : > { %8817 = vpow2.f32 %v6721_v15  ;;  %v8541_v15 = vld [vmem:[%s11152_s8 + $0x48] sm:$0xff]  }
 0x3bf   : > { %8819 = vpow2.f32 %v6716_v17 }
 0x3c0   : > { %8821 = vpow2.f32 %v6717_v46 }
 0x3c7   : > { %v8816_v0 = vpop.eup %8815 }
 0x3c8   : > { %v8818_v20 = vpop.eup %8817  ;;  %v2913_v29 = vadd.f32 1.0, %v8816_v0 }
 0x3c9   : > { %v8820_v6 = vpop.eup %8819  ;;  %v2914_v21 = vadd.f32 1.0, %v8818_v20 }
 0x3ca   : > { %v8822_v8 = vpop.eup %8821  ;;  %8823 = vrcp.f32 %v2913_v29  ;;  %v2909_v24 = vadd.f32 1.0, %v8820_v6  ;;  %v2860_v22 = vpop.f32.mrb[4].mxu1 }
 0x3cb   : > { %8825 = vrcp.f32 %v2914_v21  ;;  %v2910_v2 = vadd.f32 1.0, %v8822_v8  ;;  %v9825_v3 = vadd.f32 %v2860_v22, %v1069_v34  ;;  %v2862_v4 = vpop.f32.mrb[5].mxu1  ;;  %v8542_v21 = vld [vmem:[%s11152_s8 + $0x8] sm:$0xff]   ;;  %v8543_v8 = vld [vmem:[%s11152_s8 + $0x50] sm:$0xff]  }
 0x3cc   : > { %8827 = vrcp.f32 %v2909_v24  ;;  %v9827_v25 = vadd.f32 %v2862_v4, %v1069_v34  ;;  %v2864_v26 = vpop.f32.mrb[6].mxu1  ;;  %v8540_v34 = vld [vmem:[%s11152_s8] sm:$0xff]   ;;  %v8544_v24 = vld [vmem:[%s11152_s8 + $0x10] sm:$0xff]  }
 0x3cd   : > { %8829 = vrcp.f32 %v2910_v2  ;;  %v6718_v27 = vmul.f32 -1.442695, %v9825_v3  ;;  %v9830_v28 = vadd.f32 %v2864_v26, %v1070_v31  ;;  %v2866_v7 = vpop.f32.mrb[7].mxu1  ;;  %v8545_v2 = vld [vmem:[%s11152_s8 + $0x58] sm:$0xff]  }
 0x3ce   : > { %v6719_v30 = vmul.f32 -1.442695, %v9827_v25  ;;  %v9833_v32 = vadd.f32 %v2866_v7, %v1070_v31 }
 0x3cf   : > { %8831 = vpow2.f32 %v6718_v27  ;;  %v6722_v33 = vmul.f32 -1.442695, %v9830_v28 }
 0x3d0   : > { %8833 = vpow2.f32 %v6719_v30  ;;  %v6723_v37 = vmul.f32 -1.442695, %v9833_v32 }
 0x3d1   : > { %8835 = vpow2.f32 %v6722_v33 }
 0x3d2   : > { %8837 = vpow2.f32 %v6723_v37 }
 0x3d4   : > { %v8824_v38 = vpop.eup %8823 }
 0x3d5   : > { %v8826_v39 = vpop.eup %8825  ;;  %v9837_v40 = vmul.f32 %v8824_v38, %v2881_v9 }
 0x3d6   : > { %v8828_v23 = vpop.eup %8827  ;;  %v9839_v41 = vmul.f32 %v8826_v39, %v2882_v10 }
 0x3d7   : > { %v8830_v42 = vpop.eup %8829  ;;  %v9841_v43 = vmul.f32 %v8828_v23, %v2877_v11  ;;  %v2953_v44 = vrot.slane %v9837_v40, 7  ;;  %v9845_v47 = vrot.slane %v9837_v40, 1 }
 0x3d8   : > { %v9847_v14 = vmul.f32 %v8830_v42, %v2878_v12  ;;  %v2955_v48 = vrot.slane %v9839_v41, 7  ;;  %v8220_v16 = vpack.i.bf16 %v9839_v41, %v9837_v40  ;;  %v9853_v19 = vrot.slane %v9839_v41, 1 }
 0x3d9   : > { %v8832_v50 = vpop.eup %8831  ;;  %v2949_v51 = vrot.slane %v9841_v43, 7  ;;  %v2973_v1 = vrot.slane %v9841_v43, 1  ;;  %v9864_v45 = vsel %vm1080_vm1, %v9845_v47, 0.0  ;;  %v4472_v52 = vpack.c.bf16 %v9837_v40, %v9841_v43 }
 0x3da   : > { %v8834_v49 = vpop.eup %8833  ;;  %v2911_v54 = vadd.f32 1.0, %v8832_v50  ;;  %v2950_v36 = vrot.slane %v9847_v14, 7  ;;  %v8210_v53 = vpack.i.bf16 %v9847_v14, %v9841_v43  ;;  %v2976_v55 = vrot.slane %v9847_v14, 1 }
 0x3db   : > { %v8836_v56 = vpop.eup %8835  ;;  %v2912_v57 = vadd.f32 1.0, %v8834_v49  ;;  %v9873_v59 = vsel %vm1073_vm12, 0.0, %v2949_v51  ;;  %v9876_v58 = vsel %vm1073_vm12, %v2949_v51, %v2953_v44  ;;  %v9880_v60 = vsel %vm1080_vm1, %v2973_v1, %v9845_v47 }
 0x3dc   : > { %v8838_v61 = vpop.eup %8837  ;;  %8839 = vrcp.f32 %v2911_v54  ;;  %v2915_v62 = vadd.f32 1.0, %v8836_v56  ;;  %v9883_v63 = vsel %vm1073_vm12, 0.0, %v2950_v36  ;;  %v9886_v5 = vsel %vm1073_vm12, %v2950_v36, %v2955_v48  ;;  %v8547_v54 = vld [vmem:[%s11152_s8 + $0x60] sm:$0xff]  }
 0x3dd   : > { %8841 = vrcp.f32 %v2912_v57  ;;  %v2916_v18 = vadd.f32 1.0, %v8838_v61  ;;  %v8170_v9 = vpack.i.bf16 %v9883_v63, %v9873_v59  ;;  %v6822_v10 = vpack.c.bf16 %v9886_v5, %v2950_v36  ;;  %v8548_v61 = vld [vmem:[%s11152_s8 + $0x20] sm:$0xff]  }
 0x3de   : > { %8843 = vrcp.f32 %v2915_v62  ;;  %v6826_v11 = vpack.c.bf16 %v9876_v58, %v2949_v51  ;;  %v8175_v12 = vpack.i.bf16 %v9886_v5, %v9876_v58  ;;  %v9906_v13 = vsel %vm1080_vm1, %v2976_v55, %v9853_v19 }
 0x3df   : > { %8845 = vrcp.f32 %v2916_v18  ;;  %8171 = vrot.lane.b32.xlu0 %v8170_v9, %s8869_s23  ;;  %6823 = vmatprep.mubr.msk.bf16.mxu0 %vm9891_vm10, %v6822_v10  ;;  %v7469_v17 = vpack.c.bf16 %v9845_v47, %v9880_v60  ;;  %v8250_v46 = vpack.i.bf16 %v9906_v13, %v9880_v60  ;;  %v9920_v0 = vsel %vm1080_vm1, %v9853_v19, 0.0  ;;  %v8764_v47 = vld [vmem:[%s11152_s8 + $0x7f0] sm:$0xff]  }
 0x3e0   : > { %6827 = vmatmul.mubr.msk.bf16.vlgmr.msra.gmra.mrb[8].mxu0 %vm9891_vm10, %v6826_v11  ;;  %v8255_v20 = vpack.i.bf16 %v9920_v0, %v9864_v45  ;;  %v4473_v29 = vpack.c.bf16 %v9839_v41, %v9847_v14  ;;  %v7466_v6 = vpack.c.bf16 %v9853_v19, %v9906_v13  ;;  %v8732_v19 = vld [vmem:[%s11152_s8 + $0x6f0] sm:$0xff]  }
 0x3e1   : > { %7640 = vmatpush3.bf16.msra.mxu0 %v8540_v34 }
 0x3e2   : > { %7641 = vmatprep.subr.bf16.mxu0 %v8541_v15 }
 0x3e3   : > { %8176 = vrot.lane.b32.xlu0 %v8175_v12, %s8869_s23 }
 0x3e5   : > { %7642 = vmatpush3.bf16.msra.mxu0 %v8542_v21 }
 0x3e6   : > { %v8840_v22 = vpop.eup %8839  ;;  %7643 = vmatprep.subr.bf16.mxu0 %v8543_v8  ;;  %v8551_v8 = vld [vmem:[%s11152_s8 + $0x68] sm:$0xff]  }
 0x3e7   : > { %v8842_v4 = vpop.eup %8841  ;;  %v9944_v26 = vmul.f32 %v8840_v22, %v9825_v3  ;;  %v8546_v3 = vld [vmem:[%s11152_s8 + $0x18] sm:$0xff]   ;;  %v8552_v22 = vld [vmem:[%s11152_s8 + $0x28] sm:$0xff]  }
 0x3e8   : > { %v8844_v27 = vpop.eup %8843  ;;  %v9947_v7 = vmul.f32 %v8842_v4, %v9827_v25 }
 0x3e9   : > { %v8846_v30 = vpop.eup %8845  ;;  %v9950_v33 = vmul.f32 %v8844_v27, %v9830_v28  ;;  %v2951_v37 = vrot.slane %v9944_v26, 7  ;;  %v8230_v38 = vpack.i.bf16 %v9944_v26, %v9847_v14  ;;  %v2979_v39 = vrot.slane %v9944_v26, 1  ;;  %7644 = vmatpush3.bf16.msra.mxu0 %v8544_v24  ;;  %v8637_v14 = vld [vmem:[%s11152_s8 + $0x410] sm:$0xff]  }
 0x3ea   : > { %v9960_v23 = vmul.f32 %v8846_v30, %v9833_v32  ;;  %v2952_v25 = vrot.slane %v9947_v7, 7  ;;  %v8215_v28 = vpack.i.bf16 %v9947_v7, %v9944_v26  ;;  %v8240_v42 = vpack.i.bf16 %v9947_v7, %v9841_v43  ;;  %7645 = vmatprep.subr.bf16.mxu0 %v8545_v2  ;;  %v8553_v2 = vld [vmem:[%s11152_s8 + $0xc8] sm:$0xff]   ;;  %v8669_v43 = vld [vmem:[%s11152_s8 + $0x510] sm:$0xff]  }
 0x3eb   : > { %v2957_v44 = vrot.slane %v9950_v33, 7  ;;  %v2971_v48 = vsel %vm1073_vm12, 0.0, %v2951_v37  ;;  %v8235_v50 = vpack.i.bf16 %v9950_v33, %v9839_v41  ;;  %v9972_v51 = vrot.slane %v9950_v33, 1  ;;  %v8636_v41 = vld [vmem:[%s11152_s8 + $0x3f0] sm:$0xff]  }
 0x3ec   : > { %v8190_v32 = vpack.i.bf16 %v2971_v48, %v9883_v63  ;;  %v2972_v35 = vsel %vm1073_vm12, 0.0, %v2952_v25  ;;  %v2959_v1 = vrot.slane %v9960_v23, 7  ;;  %v8225_v49 = vpack.i.bf16 %v9960_v23, %v9950_v33 }
 0x3ed   : > { %v2958_v36 = vsel %vm1073_vm12, %v2951_v37, %v2957_v44  ;;  %v8180_v55 = vpack.i.bf16 %v2972_v35, %v2971_v48  ;;  %v8200_v56 = vpack.i.bf16 %v2972_v35, %v9873_v59  ;;  %v8245_v57 = vpack.i.bf16 %v9960_v23, %v9837_v40  ;;  %7646 = vmatpush3.bf16.msra.mxu0 %v8546_v3  ;;  %v8554_v48 = vld [vmem:[%s11152_s8 + $0x88] sm:$0xff]   ;;  %v8556_v35 = vld [vmem:[%s11152_s8 + $0x30] sm:$0xff]  }
 0x3ee   : > { %8191 = vrot.lane.b32.xlu0 %v8190_v32, %s8871_s12  ;;  %v2960_v62 = vsel %vm1073_vm12, %v2952_v25, %v2959_v1  ;;  %v6834_v63 = vpack.c.bf16 %v2958_v36, %v2951_v37  ;;  %v8195_v18 = vpack.i.bf16 %v2958_v36, %v9886_v5  ;;  %v9994_v9 = vsel %vm1080_vm1, %v2979_v39, %v9972_v51  ;;  %v8555_v39 = vld [vmem:[%s11152_s8 + $0x70] sm:$0xff]   ;;  %vm10168_vm12 = vmpackc.low %vm6868_vm11, %vm6868_vm11 }
 0x3ef   : > { %8181 = vrot.lane.b32.xlu1 %v8180_v55, %s8869_s23  ;;  %v6830_v59 = vpack.c.bf16 %v2960_v62, %v2952_v25  ;;  %v8185_v10 = vpack.i.bf16 %v2960_v62, %v2958_v36  ;;  %v8205_v34 = vpack.i.bf16 %v2960_v62, %v9876_v58  ;;  %v7475_v11 = vpack.c.bf16 %v9972_v51, %v9994_v9  ;;  %v8550_v58 = vld [vmem:[%s11152_s8 + $0x80] sm:$0xff]   ;;  %v8557_v1 = vld [vmem:[%s11152_s8 + $0xd0] sm:$0xff]   ;;  %v8560_v55 = vld [vmem:[%s11152_s8 + $0x38] sm:$0xff]  }
 0x3f0   : > { %v8270_v12 = vpack.i.bf16 %v9994_v9, %v9906_v13  ;;  %v2982_v15 = vrot.slane %v9947_v7, 1  ;;  %v10004_v5 = vrot.slane %v9960_v23, 1  ;;  %v10008_v21 = vsel %vm1080_vm1, %v9972_v51, 0.0  ;;  %7647 = vmatprep.subr.bf16.mxu0 %v8547_v54  ;;  %v8559_v54 = vld [vmem:[%s11152_s8 + $0x78] sm:$0xff]   ;;  %v8558_v36 = vld [vmem:[%s11152_s8 + $0x90] sm:$0xff]   ;;  %v8564_v62 = vld [vmem:[%s11152_s8 + $0xe0] sm:$0xff]  }
 0x3f1   : > { %6831 = vmatprep.mubr.msk.bf16.mxu1 %vm9891_vm10, %v6830_v59  ;;  %v8275_v24 = vpack.i.bf16 %v10008_v21, %v9920_v0  ;;  %7648 = vmatpush3.bf16.msra.mxu0 %v8548_v61  ;;  %v4475_v4 = vpack.c.bf16 %v9960_v23, %v9947_v7  ;;  %v4474_v27 = vpack.c.bf16 %v9950_v33, %v9944_v26  ;;  %v8562_v61 = vld [vmem:[%s11152_s8 + $0x98] sm:$0xff]   ;;  %v8652_v7 = vld [vmem:[%s11152_s8 + $0x430] sm:$0xff]  }
 0x3f2   : > { %6835 = vmatmul.mubr.msk.bf16.vlgmr.msra.gmra.mrb[8].mxu1 %vm9891_vm10, %v6834_v63  ;;  %8201 = vrot.lane.b32.xlu0 %v8200_v56, %s8871_s12  ;;  %v10035_v30 = vsel %vm1080_vm1, %v2982_v15, %v10004_v5  ;;  %v10039_v37 = vsel %vm1080_vm1, %v10004_v5, 0.0  ;;  %v8563_v56 = vld [vmem:[%s11152_s8 + $0x240] sm:$0xff]   ;;  %v8568_v63 = vld [vmem:[%s11152_s8 + $0xe8] sm:$0xff]   ;;  %v8654_v23 = vld [vmem:[%s11152_s8 + $0x490] sm:$0xff]  }
 0x3f3   : > { %8186 = vrot.lane.b32.xlu1 %v8185_v10, %s8869_s23  ;;  %v8260_v31 = vpack.i.bf16 %v10035_v30, %v9994_v9  ;;  %v8280_v3 = vpack.i.bf16 %v10035_v30, %v9880_v60  ;;  %v8265_v25 = vpack.i.bf16 %v10039_v37, %v10008_v21  ;;  %v8285_v44 = vpack.i.bf16 %v10039_v37, %v9864_v45  ;;  %v8847_v45 = vld [vmem:[%s8944_s19] sm:$0xff]  ;;  %v8571_v37 = vld [vmem:[%s11152_s8 + $0x250] sm:$0xff]  }
 0x3f4   : > { %7662 = vmatpush3.bf16.msra.mxu1 %v8550_v58  ;;  %7649 = vmatprep.subr.bf16.mxu0 %v8551_v8  ;;  %v7472_v32 = vpack.c.bf16 %v10004_v5, %v10035_v30  ;;  %v8565_v21 = vld [vmem:[%s11152_s8 + $0x200] sm:$0xff]   ;;  %v8668_v40 = vld [vmem:[%s11152_s8 + $0x4f0] sm:$0xff]  }
 0x3f5   : > { %7650 = vmatpush3.bf16.msra.mxu0 %v8552_v22  ;;  %7663 = vmatprep.subr.bf16.mxu1 %v8553_v2  ;;  %v8567_v22 = vld [vmem:[%s11152_s8 + $0x248] sm:$0xff]   ;;  %v8685_v26 = vld [vmem:[%s11152_s8 + $0x5d0] sm:$0xff]  }
 0x3f6   : > { %8211 = vrot.lane.b32.xlu0 %v8210_v53, %s8869_s23  ;;  %7651 = vmatprep.subr.bf16.mxu0 %v8555_v39  ;;  %v8561_v53 = vld [vmem:[%s11152_s8 + $0xd8] sm:$0xff]   ;;  %v8569_v2 = vld [vmem:[%s11152_s8 + $0x208] sm:$0xff]   ;;  %v8731_v0 = vld [vmem:[%s11152_s8 + $0x750] sm:$0xff]  }
 0x3f7   : > { %8196 = vrot.lane.b32.xlu1 %v8195_v18, %s8871_s12  ;;  %v8733_v13 = vld [vmem:[%s11152_s8 + $0x710] sm:$0xff]  }
 0x3f8   : > { %7664 = vmatpush3.bf16.msra.mxu1 %v8554_v48  ;;  %v8748_v5 = vld [vmem:[%s11152_s8 + $0x730] sm:$0xff]  }
 0x3f9   : > { %7652 = vmatpush3.bf16.msra.mxu0 %v8556_v35  ;;  %7665 = vmatprep.subr.bf16.mxu1 %v8557_v1  ;;  %v8750_v30 = vld [vmem:[%s11152_s8 + $0x790] sm:$0xff]  }
 0x3fa   : > { %8221 = vrot.lane.b32.xlu0 %v8220_v16, %s8869_s23  ;;  %7653 = vmatprep.subr.bf16.mxu0 %v8559_v54  ;;  %v8566_v16 = vld [vmem:[%s11152_s8 + $0xa0] sm:$0xff]   ;;  %v8577_v54 = vld [vmem:[%s11152_s8 + $0x218] sm:$0xff]   ;;  %v8765_v60 = vld [vmem:[%s11152_s8 + $0x810] sm:$0xff]  }
 0x3fb   : > { %8206 = vrot.lane.b32.xlu1 %v8205_v34, %s8871_s12  ;;  %v8779_v51 = vld [vmem:[%s11152_s8 + $0x870] sm:$0xff]  }
 0x3fc   : > { %7666 = vmatpush3.bf16.msra.mxu1 %v8558_v36 }
 0x3fd   : > { %7654 = vmatpush3.bf16.msra.mxu0 %v8560_v55  ;;  %7667 = vmatprep.subr.bf16.mxu1 %v8561_v53  ;;  %v8579_v53 = vld [vmem:[%s11152_s8 + $0x260] sm:$0xff]  }
 0x3fe   : > { %8231 = vrot.lane.b32.xlu0 %v8230_v38, %s8871_s12  ;;  %7683 = vmatprep.subr.bf16.mxu0 %v8563_v56  ;;  %v8570_v38 = vld [vmem:[%s11152_s8 + $0xa8] sm:$0xff]  }
 0x3ff   : > { %8216 = vrot.lane.b32.xlu1 %v8215_v28, %s8869_s23  ;;  %v8572_v28 = vld [vmem:[%s11152_s8 + $0xf0] sm:$0xff]  }
 0x400   : > { %7668 = vmatpush3.bf16.msra.mxu1 %v8562_v61 }
 0x401   : > { %7669 = vmatprep.subr.bf16.mxu1 %v8564_v62 }
 0x402   : > { %8241 = vrot.lane.b32.xlu0 %v8240_v42, %s8871_s12  ;;  %v8574_v42 = vld [vmem:[%s11152_s8 + $0xb0] sm:$0xff]  }
 0x403   : > { %8226 = vrot.lane.b32.xlu1 %v8225_v49, %s8869_s23  ;;  %v8576_v49 = vld [vmem:[%s11152_s8 + $0xf8] sm:$0xff]  }
 0x404   : > { %7670 = vmatpush3.bf16.msra.mxu1 %v8566_v16 }
 0x405   : > { %7671 = vmatprep.subr.bf16.mxu1 %v8568_v63 }
 0x406   : > { %8251 = vrot.lane.b32.xlu0 %v8250_v46, %s8869_s23  ;;  %v8578_v46 = vld [vmem:[%s11152_s8 + $0xb8] sm:$0xff]  }
 0x407   : > { %8236 = vrot.lane.b32.xlu1 %v8235_v50, %s8871_s12  ;;  %v8581_v50 = vld [vmem:[%s11152_s8 + $0x2c0] sm:$0xff]  }
 0x408   : > { %7672 = vmatpush3.bf16.msra.mxu1 %v8570_v38 }
 0x409   : > { %7673 = vmatprep.subr.bf16.mxu1 %v8572_v28 }
 0x40a   : > { %8256 = vrot.lane.b32.xlu0 %v8255_v20, %s8869_s23  ;;  %v8848_v20 = vld [vmem:[%s8944_s19 + $0x8] sm:$0xff] }
 0x40b   : > { %8246 = vrot.lane.b32.xlu1 %v8245_v57, %s8871_s12 }
 0x40c   : > { %7674 = vmatpush3.bf16.msra.mxu1 %v8574_v42 }
 0x40d   : > { %7675 = vmatprep.subr.bf16.mxu1 %v8576_v49 }
 0x40e   : > { %8271 = vrot.lane.b32.xlu0 %v8270_v12, %s8871_s12 }
 0x40f   : > { %8261 = vrot.lane.b32.xlu1 %v8260_v31, %s8869_s23 }
 0x410   : > { %7676 = vmatpush3.bf16.msra.mxu1 %v8578_v46  ;;  %v8580_v46 = vld [vmem:[%s11152_s8 + $0x220] sm:$0xff]  }
 0x411   : > { %7705 = vmatprep.subr.bf16.mxu1 %v8581_v50  ;;  %v8582_v50 = vld [vmem:[%s11152_s8 + $0x280] sm:$0xff]  }
 0x412   : > { %8281 = vrot.lane.b32.xlu0 %v8280_v3, %s8871_s12  ;;  %v8573_v3 = vld [vmem:[%s11152_s8 + $0x210] sm:$0xff]  }
 0x413   : > { %8266 = vrot.lane.b32.xlu1 %v8265_v25, %s8869_s23  ;;  %v8575_v25 = vld [vmem:[%s11152_s8 + $0x258] sm:$0xff]  }
 0x416   : > { %6308 = vperm.xlu0 %8139, %v8847_v45  }
 0x417   : > { %8276 = vrot.lane.b32.xlu1 %v8275_v24, %s8871_s12 }
 0x41b   : > { %8286 = vrot.lane.b32.xlu1 %v8285_v44, %s8871_s12 }
 0x41f   : > { %6313 = vperm.xlu1 %8290, %v8848_v20  }
 0x451   : > { %v8172_v57 = vpop.permute.xlu0 %8171 }
 0x452   : > { %v8174_v18 = vunpack.i.h.bf16 %v8172_v57  ;;  %v8173_v59 = vunpack.i.l.bf16 %v8172_v57  ;;  %v8583_v57 = vld [vmem:[%s11152_s8 + $0x268] sm:$0xff]  }
 0x454   : > { %v3017_v15 = vsel %vm851_vm3, %v8173_v59, %v8174_v18 }
 0x455   : > { %v8177_v10 = vpop.permute.xlu0 %8176 }
 0x456   : > { %v8179_v34 = vunpack.i.h.bf16 %v8177_v10  ;;  %v8178_v12 = vunpack.i.l.bf16 %v8177_v10 }
 0x458   : > { %v3020_v58 = vsel %vm851_vm3, %v8178_v12, %v8179_v34  ;;  %v6871_v24 = vpack.c.bf16 %v8178_v12, %v8173_v59 }
 0x459   : > { %v3034_v8 = vpack.c.bf16 %v3020_v58, %v3017_v15  ;;  %v8584_v15 = vld [vmem:[%s11152_s8 + $0x228] sm:$0xff]  }
 0x45b   : > { %3668 = vmatprep.mubr.bf16.mxu0 %v3034_v8  ;;  %v8586_v8 = vld [vmem:[%s11152_s8 + $0x288] sm:$0xff]  }
 0x45c   : > { %6872 = vmatmul.mubr.msk.bf16.vlgmr.msra.gmra.mrb[12].mxu0 %vm10168_vm12, %v6871_v24 }
 0x45d   : > { %7684 = vmatpush3.bf16.msra.mxu0 %v8565_v21 }
 0x45e   : > { %7685 = vmatprep.subr.bf16.mxu0 %v8567_v22  ;;  %v8587_v22 = vld [vmem:[%s11152_s8 + $0x270] sm:$0xff]  }
 0x460   : > { %v10186_v39 = vpop.permute.xlu0 %8191 }
 0x461   : > { %7686 = vmatpush3.bf16.msra.mxu0 %v8569_v2  ;;  %v8182_v31 = vpop.permute.xlu1 %8181  ;;  %v8194_v56 = vunpack.i.h.bf16 %v10186_v39  ;;  %v8193_v61 = vunpack.i.l.bf16 %v10186_v39  ;;  %v8617_v39 = vld [vmem:[%s11152_s8 + $0x3c8] sm:$0xff]  }
 0x462   : > { %7687 = vmatprep.subr.bf16.mxu0 %v8571_v37  ;;  %v8184_v44 = vunpack.i.h.bf16 %v8182_v31  ;;  %v8183_v48 = vunpack.i.l.bf16 %v8182_v31  ;;  %v8589_v37 = vld [vmem:[%s11152_s8 + $0x2d0] sm:$0xff]  }
 0x463   : > { %v3735_v10 = vsel %vm1068_vm7, %v8193_v61, %v8194_v56 }
 0x464   : > { %v10194_v35 = vpop.permute.xlu0 %8201  ;;  %v3018_v62 = vsel %vm851_vm3, %v8174_v18, %v8183_v48  ;;  %v3019_v63 = vsel %vm851_vm3, %v8183_v48, %v8184_v44  ;;  %v8585_v18 = vld [vmem:[%s11152_s8 + $0x2c8] sm:$0xff]   ;;  %v8590_v44 = vld [vmem:[%s11152_s8 + $0x290] sm:$0xff]   ;;  %v8591_v48 = vld [vmem:[%s11152_s8 + $0x278] sm:$0xff]  }
 0x465   : > { %7688 = vmatpush3.bf16.msra.mxu0 %v8573_v3  ;;  %v8187_v1 = vpop.permute.xlu1 %8186  ;;  %v8204_v21 = vunpack.i.h.bf16 %v10194_v35 }
 0x466   : > { %v8189_v36 = vunpack.i.h.bf16 %v8187_v1  ;;  %v8188_v55 = vunpack.i.l.bf16 %v8187_v1  ;;  %7689 = vmatprep.subr.bf16.mxu0 %v8575_v25  ;;  %v8588_v25 = vld [vmem:[%s11152_s8 + $0x230] sm:$0xff]   ;;  %v8593_v1 = vld [vmem:[%s11152_s8 + $0x2d8] sm:$0xff]  }
 0x468   : > { %v3021_v16 = vsel %vm851_vm3, %v8179_v34, %v8188_v55  ;;  %v3022_v38 = vsel %vm851_vm3, %v8188_v55, %v8189_v36  ;;  %v10224_v59 = vpop.permute.xlu0 %8211 }
 0x469   : > { %v3035_v28 = vpack.c.bf16 %v3021_v16, %v3018_v62  ;;  %7690 = vmatpush3.bf16.msra.mxu0 %v8577_v54  ;;  %v10208_v42 = vpop.permute.xlu1 %8196  ;;  %v3036_v49 = vpack.c.bf16 %v3022_v38, %v3019_v63  ;;  %v8592_v62 = vld [vmem:[%s11152_s8 + $0x238] sm:$0xff]   ;;  %v8214_v63 = vunpack.i.h.bf16 %v10224_v59  ;;  %v8213_v38 = vunpack.i.l.bf16 %v10224_v59  ;;  %v8648_v59 = vld [vmem:[%s11152_s8 + $0x428] sm:$0xff]  }
 0x46a   : > { %v8199_v45 = vunpack.i.h.bf16 %v10208_v42  ;;  %v8198_v20 = vunpack.i.l.bf16 %v10208_v42  ;;  %7691 = vmatprep.subr.bf16.mxu0 %v8579_v53  ;;  %v8203_v53 = vunpack.i.l.bf16 %v10194_v35  ;;  %v8594_v16 = vld [vmem:[%s11152_s8 + $0x298] sm:$0xff]   ;;  %v8614_v42 = vld [vmem:[%s11152_s8 + $0x380] sm:$0xff]   ;;  %v8615_v35 = vld [vmem:[%s11152_s8 + $0x368] sm:$0xff]  }
 0x46b   : > { %3709 = vmatprep.mubr.bf16.mxu1 %v3036_v49  ;;  %v8596_v49 = vld [vmem:[%s11152_s8 + $0x2e0] sm:$0xff]  }
 0x46c   : > { %3710 = vmatmul.mubr.bf16.vlgmr.msra.gmra.mrb[12].mxu1 %v3035_v28  ;;  %v3738_v34 = vsel %vm1068_vm7, %v8198_v20, %v8199_v45  ;;  %v10260_v3 = vpop.permute.xlu0 %8221  ;;  %v8595_v28 = vld [vmem:[%s11152_s8 + $0x340] sm:$0xff]  }
 0x46d   : > { %7692 = vmatpush3.bf16.msra.mxu0 %v8580_v46  ;;  %7706 = vmatpush3.bf16.msra.mxu1 %v8582_v50  ;;  %v10234_v12 = vpop.permute.xlu1 %8206  ;;  %v3751_v58 = vpack.c.bf16 %v3738_v34, %v3735_v10  ;;  %v8224_v36 = vunpack.i.h.bf16 %v10260_v3  ;;  %v8223_v55 = vunpack.i.l.bf16 %v10260_v3  ;;  %v8598_v34 = vld [vmem:[%s11152_s8 + $0x2a0] sm:$0xff]  }
 0x46e   : > { %v8209_v24 = vunpack.i.h.bf16 %v10234_v12  ;;  %7693 = vmatprep.subr.bf16.mxu0 %v8583_v57  ;;  %7707 = vmatprep.subr.bf16.mxu1 %v8585_v18  ;;  %v8208_v54 = vunpack.i.l.bf16 %v10234_v12  ;;  %v3734_v57 = vsel %vm1068_vm7, %v8203_v53, %v8193_v61  ;;  %v8597_v18 = vld [vmem:[%s11152_s8 + $0x300] sm:$0xff]   ;;  %v8599_v61 = vld [vmem:[%s11152_s8 + $0x348] sm:$0xff]   ;;  %v8608_v53 = vld [vmem:[%s11152_s8 + $0x2f8] sm:$0xff]  }
 0x46f   : > { %4043 = vmatprep.mubr.bf16.mxu0 %v3751_v58  ;;  %v4114_v50 = vsel %vm851_vm3, %v8223_v55, %v8224_v36  ;;  %v8600_v58 = vld [vmem:[%s11152_s8 + $0x2e8] sm:$0xff]  }
 0x470   : > { %v6970_v31 = vpack.c.bf16 %v8209_v24, %v8204_v21  ;;  %v3737_v46 = vsel %vm1068_vm7, %v8208_v54, %v8198_v20  ;;  %v4111_v20 = vsel %vm851_vm3, %v8213_v38, %v8214_v63  ;;  %v8607_v54 = vld [vmem:[%s11152_s8 + $0x358] sm:$0xff]  }
 0x471   : > { %7694 = vmatpush3.bf16.msra.mxu0 %v8584_v15  ;;  %7708 = vmatpush3.bf16.msra.mxu1 %v8586_v8  ;;  %v3750_v10 = vpack.c.bf16 %v3737_v46, %v3734_v57  ;;  %v4128_v15 = vpack.c.bf16 %v4114_v50, %v4111_v20  ;;  %v10320_v8 = vpop.permute.xlu1 %8216  ;;  %v8611_v46 = vld [vmem:[%s11152_s8 + $0x360] sm:$0xff]  }
 0x472   : > { %7695 = vmatprep.subr.bf16.mxu0 %v8587_v22  ;;  %6971 = vmatprep.mubr.msk.bf16.mxu1 %vm10249_vm13, %v6970_v31  ;;  %v8601_v22 = vld [vmem:[%s11152_s8 + $0x308] sm:$0xff]   ;;  %v8603_v31 = vld [vmem:[%s11152_s8 + $0x350] sm:$0xff]   ;;  %v8219_v50 = vunpack.i.h.bf16 %v10320_v8  ;;  %v8218_v57 = vunpack.i.l.bf16 %v10320_v8  ;;  %v8612_v20 = vld [vmem:[%s11152_s8 + $0x320] sm:$0xff]  }
 0x473   : > { %7709 = vmatprep.subr.bf16.mxu1 %v8589_v37  ;;  %v8602_v37 = vld [vmem:[%s11152_s8 + $0x2a8] sm:$0xff]  }
 0x474   : > { %v4113_v12 = vsel %vm851_vm3, %v8218_v57, %v8219_v50  ;;  %v8632_v50 = vld [vmem:[%s11152_s8 + $0x3e8] sm:$0xff]  }
 0x475   : > { %7696 = vmatpush3.bf16.msra.mxu0 %v8588_v25  ;;  %7710 = vmatpush3.bf16.msra.mxu1 %v8590_v44  ;;  %v8604_v25 = vld [vmem:[%s11152_s8 + $0x2f0] sm:$0xff]   ;;  %v8649_v8 = vld [vmem:[%s11152_s8 + $0x4c8] sm:$0xff]  }
 0x476   : > { %7697 = vmatprep.subr.bf16.mxu0 %v8591_v48  ;;  %7711 = vmatprep.subr.bf16.mxu1 %v8593_v1  ;;  %v8605_v44 = vld [vmem:[%s11152_s8 + $0x310] sm:$0xff]   ;;  %v10337_v48 = vpop.permute.xlu1 %8226 }
 0x477   : > { %v8606_v1 = vld [vmem:[%s11152_s8 + $0x2b0] sm:$0xff]  }
 0x479   : > { %7698 = vmatpush3.bf16.msra.mxu0 %v8592_v62  ;;  %7712 = vmatpush3.bf16.msra.mxu1 %v8594_v16  ;;  %v8229_v62 = vunpack.i.h.bf16 %v10337_v48  ;;  %v8228_v16 = vunpack.i.l.bf16 %v10337_v48  ;;  %v8646_v48 = vld [vmem:[%s11152_s8 + $0x480] sm:$0xff]  }
 0x47a   : > { %7727 = vmatprep.subr.bf16.mxu0 %v8595_v28  ;;  %7713 = vmatprep.subr.bf16.mxu1 %v8596_v49  ;;  %v8609_v28 = vld [vmem:[%s11152_s8 + $0x318] sm:$0xff]  }
 0x47b   : > { %v8610_v49 = vld [vmem:[%s11152_s8 + $0x2b8] sm:$0xff]  }
 0x47c   : > { %4044 = vmatmul.mubr.bf16.vlgmr.msra.gmra.mrb[16].mxu0 %v3750_v10  ;;  %v3739_v10 = vsel %vm1068_vm7, %v8199_v45, %v8209_v24  ;;  %v8618_v24 = vld [vmem:[%s11152_s8 + $0x388] sm:$0xff]  }
 0x47d   : > { %7728 = vmatpush3.bf16.msra.mxu0 %v8597_v18  ;;  %4420 = vmatprep.mubr.bf16.mxu0 %v4128_v15  ;;  %v8613_v18 = vld [vmem:[%s11152_s8 + $0x3c0] sm:$0xff]   ;;  %v8619_v15 = vld [vmem:[%s11152_s8 + $0x370] sm:$0xff]  }
 0x47e   : > { %7714 = vmatpush3.bf16.msra.mxu1 %v8598_v34  ;;  %7729 = vmatprep.subr.bf16.mxu0 %v8599_v61  ;;  %v4116_v34 = vsel %vm851_vm3, %v8228_v16, %v8229_v62  ;;  %v3736_v61 = vsel %vm1068_vm7, %v8194_v56, %v8204_v21  ;;  %v8616_v21 = vld [vmem:[%s11152_s8 + $0x328] sm:$0xff]   ;;  %v8629_v62 = vld [vmem:[%s11152_s8 + $0x400] sm:$0xff]  }
 0x47f   : > { %7715 = vmatprep.subr.bf16.mxu1 %v8600_v58  ;;  %v3752_v45 = vpack.c.bf16 %v3739_v10, %v3736_v61  ;;  %v4130_v56 = vpack.c.bf16 %v4116_v34, %v4113_v12  ;;  %v8621_v58 = vld [vmem:[%s11152_s8 + $0x3d0] sm:$0xff]   ;;  %v8639_v10 = vld [vmem:[%s11152_s8 + $0x458] sm:$0xff]   ;;  %v4115_v12 = vsel %vm851_vm3, %v8224_v36, %v8228_v16  ;;  %v8647_v36 = vld [vmem:[%s11152_s8 + $0x468] sm:$0xff]  }
 0x480   : > { %v8641_v34 = vld [vmem:[%s11152_s8 + $0x418] sm:$0xff]   ;;  %v8651_v16 = vld [vmem:[%s11152_s8 + $0x470] sm:$0xff]  }
 0x481   : > { %7730 = vmatpush3.bf16.msra.mxu0 %v8601_v22  ;;  %v8620_v22 = vld [vmem:[%s11152_s8 + $0x330] sm:$0xff]   ;;  %v8642_v61 = vld [vmem:[%s11152_s8 + $0x3b8] sm:$0xff]  }
 0x482   : > { %7716 = vmatpush3.bf16.msra.mxu1 %v8602_v37  ;;  %7731 = vmatprep.subr.bf16.mxu0 %v8603_v31  ;;  %v8622_v37 = vld [vmem:[%s11152_s8 + $0x390] sm:$0xff]   ;;  %v8623_v31 = vld [vmem:[%s11152_s8 + $0x378] sm:$0xff]  }
 0x483   : > { %7717 = vmatprep.subr.bf16.mxu1 %v8604_v25  ;;  %v8625_v25 = vld [vmem:[%s11152_s8 + $0x3d8] sm:$0xff]  }
 0x485   : > { %7732 = vmatpush3.bf16.msra.mxu0 %v8605_v44  ;;  %v8624_v44 = vld [vmem:[%s11152_s8 + $0x338] sm:$0xff]  }
 0x486   : > { %7718 = vmatpush3.bf16.msra.mxu1 %v8606_v1  ;;  %7733 = vmatprep.subr.bf16.mxu0 %v8607_v54  ;;  %v8626_v1 = vld [vmem:[%s11152_s8 + $0x398] sm:$0xff]   ;;  %v8627_v54 = vld [vmem:[%s11152_s8 + $0x440] sm:$0xff]  }
 0x487   : > { %7719 = vmatprep.subr.bf16.mxu1 %v8608_v53  ;;  %v8628_v53 = vld [vmem:[%s11152_s8 + $0x3e0] sm:$0xff]  }
 0x489   : > { %7734 = vmatpush3.bf16.msra.mxu0 %v8609_v28  ;;  %v7071_v28 = vpack.c.bf16 %v8223_v55, %v8213_v38  ;;  %v8633_v55 = vld [vmem:[%s11152_s8 + $0x408] sm:$0xff]  }
 0x48a   : > { %7720 = vmatpush3.bf16.msra.mxu1 %v8610_v49  ;;  %7735 = vmatprep.subr.bf16.mxu0 %v8611_v46  ;;  %v8630_v49 = vld [vmem:[%s11152_s8 + $0x3a0] sm:$0xff]   ;;  %v8631_v46 = vld [vmem:[%s11152_s8 + $0x448] sm:$0xff]  }
 0x48b   : > { %7749 = vmatprep.subr.bf16.mxu1 %v8613_v18  ;;  %v8634_v38 = vld [vmem:[%s11152_s8 + $0x3a8] sm:$0xff]   ;;  %v8635_v18 = vld [vmem:[%s11152_s8 + $0x450] sm:$0xff]  }
 0x48d   : > { %4085 = vmatmul.mubr.bf16.vlgmr.msra.gmra.mrb[16].mxu1 %v3752_v45  ;;  %7736 = vmatpush3.bf16.msra.mxu0 %v8612_v20  ;;  %v8640_v20 = vld [vmem:[%s11152_s8 + $0x3f8] sm:$0xff]   ;;  %v8645_v45 = vld [vmem:[%s11152_s8 + $0x4c0] sm:$0xff]  }
 0x48e   : > { %7750 = vmatpush3.bf16.msra.mxu1 %v8614_v42  ;;  %4461 = vmatprep.mubr.bf16.mxu1 %v4130_v56  ;;  %v8643_v42 = vld [vmem:[%s11152_s8 + $0x460] sm:$0xff]   ;;  %v10522_v56 = vpop.permute.xlu1 %8236 }
 0x48f   : > { %7737 = vmatprep.subr.bf16.mxu0 %v8615_v35  ;;  %7751 = vmatprep.subr.bf16.mxu1 %v8617_v39  ;;  %v8644_v35 = vld [vmem:[%s11152_s8 + $0x420] sm:$0xff]   ;;  %v4112_v39 = vsel %vm851_vm3, %v8214_v63, %v8218_v57  ;;  %v8650_v63 = vld [vmem:[%s11152_s8 + $0x488] sm:$0xff]   ;;  %v8653_v57 = vld [vmem:[%s11152_s8 + $0x4d0] sm:$0xff]  }
 0x490   : > { %v4129_v3 = vpack.c.bf16 %v4115_v12, %v4112_v39  ;;  %v8673_v39 = vld [vmem:[%s11152_s8 + $0x518] sm:$0xff]  }
 0x491   : > { %7738 = vmatpush3.bf16.msra.mxu0 %v8616_v21  ;;  %v10533_v21 = vpop.permute.xlu0 %8231 }
 0x492   : > { %7752 = vmatpush3.bf16.msra.mxu1 %v8618_v24  ;;  %7739 = vmatprep.subr.bf16.mxu0 %v8619_v15  ;;  %v8657_v15 = vld [vmem:[%s11152_s8 + $0x4d8] sm:$0xff]   ;;  %v10605_v12 = vpop.permute.xlu1 %8246 }
 0x493   : > { %7753 = vmatprep.subr.bf16.mxu1 %v8621_v58  ;;  %v8239_v58 = vunpack.i.h.bf16 %v10522_v56 }
 0x495   : > { %7740 = vmatpush3.bf16.msra.mxu0 %v8620_v22  ;;  %v8238_v22 = vunpack.i.l.bf16 %v10522_v56  ;;  %v8710_v56 = vld [vmem:[%s11152_s8 + $0x680] sm:$0xff]  }
 0x496   : > { %7754 = vmatpush3.bf16.msra.mxu1 %v8622_v37  ;;  %7741 = vmatprep.subr.bf16.mxu0 %v8623_v31 }
 0x497   : > { %7755 = vmatprep.subr.bf16.mxu1 %v8625_v25 }
 0x499   : > { %7742 = vmatpush3.bf16.msra.mxu0 %v8624_v44  ;;  %v8656_v44 = vld [vmem:[%s11152_s8 + $0x438] sm:$0xff]  }
 0x49a   : > { %7756 = vmatpush3.bf16.msra.mxu1 %v8626_v1  ;;  %7771 = vmatprep.subr.bf16.mxu0 %v8627_v54  ;;  %v8234_v1 = vunpack.i.h.bf16 %v10533_v21  ;;  %v8233_v54 = vunpack.i.l.bf16 %v10533_v21  ;;  %v8713_v21 = vld [vmem:[%s11152_s8 + $0x6c8] sm:$0xff]  }
 0x49b   : > { %7757 = vmatprep.subr.bf16.mxu1 %v8628_v53 }
 0x49c   : > { %7072 = vmatmul.mubr.msk.bf16.vlgmr.msra.gmra.mrb[20].mxu0 %vm10168_vm12, %v7071_v28  ;;  %v8659_v28 = vld [vmem:[%s11152_s8 + $0x540] sm:$0xff]  }
 0x49d   : > { %7772 = vmatpush3.bf16.msra.mxu0 %v8629_v62  ;;  %4765 = vmatprep.mubr.bf16.mxu0 %v4473_v29  ;;  %v8638_v29 = vld [vmem:[%s11152_s8 + $0x3b0] sm:$0xff]   ;;  %v8658_v62 = vld [vmem:[%s11152_s8 + $0x498] sm:$0xff]  }
 0x49e   : > { %7758 = vmatpush3.bf16.msra.mxu1 %v8630_v49  ;;  %7773 = vmatprep.subr.bf16.mxu0 %v8631_v46  ;;  %v8660_v46 = vld [vmem:[%s11152_s8 + $0x4e0] sm:$0xff]  }
 0x49f   : > { %7759 = vmatprep.subr.bf16.mxu1 %v8632_v50  ;;  %v4837_v50 = vsel %vm1068_vm7, %v8238_v22, %v8239_v58 }
 0x4a1   : > { %7774 = vmatpush3.bf16.msra.mxu0 %v8633_v55  ;;  %v8661_v55 = vld [vmem:[%s11152_s8 + $0x500] sm:$0xff]  }
 0x4a2   : > { %7760 = vmatpush3.bf16.msra.mxu1 %v8634_v38  ;;  %7775 = vmatprep.subr.bf16.mxu0 %v8635_v18  ;;  %v4834_v38 = vsel %vm1068_vm7, %v8233_v54, %v8234_v1  ;;  %v8662_v18 = vld [vmem:[%s11152_s8 + $0x4a0] sm:$0xff]  }
 0x4a3   : > { %7761 = vmatprep.subr.bf16.mxu1 %v8636_v41  ;;  %v8663_v41 = vld [vmem:[%s11152_s8 + $0x548] sm:$0xff]  }
 0x4a5   : > { %7776 = vmatpush3.bf16.msra.mxu0 %v8637_v14  ;;  %v4850_v14 = vpack.c.bf16 %v4837_v50, %v4834_v38  ;;  %v8687_v50 = vld [vmem:[%s11152_s8 + $0x578] sm:$0xff]  }
 0x4a6   : > { %7762 = vmatpush3.bf16.msra.mxu1 %v8638_v29  ;;  %7777 = vmatprep.subr.bf16.mxu0 %v8639_v10  ;;  %v8664_v29 = vld [vmem:[%s11152_s8 + $0x4e8] sm:$0xff]   ;;  %v8689_v38 = vld [vmem:[%s11152_s8 + $0x5d8] sm:$0xff]  }
 0x4a7   : > { %7763 = vmatprep.subr.bf16.mxu1 %v8640_v20  ;;  %v8665_v10 = vld [vmem:[%s11152_s8 + $0x508] sm:$0xff]  }
 0x4a8   : > { %v8666_v20 = vld [vmem:[%s11152_s8 + $0x4a8] sm:$0xff]  }
 0x4a9   : > { %7778 = vmatpush3.bf16.msra.mxu0 %v8641_v34  ;;  %v8667_v34 = vld [vmem:[%s11152_s8 + $0x550] sm:$0xff]  }
 0x4aa   : > { %7764 = vmatpush3.bf16.msra.mxu1 %v8642_v61  ;;  %7779 = vmatprep.subr.bf16.mxu0 %v8643_v42  ;;  %v8671_v61 = vld [vmem:[%s11152_s8 + $0x558] sm:$0xff]  }
 0x4ab   : > { %7793 = vmatprep.subr.bf16.mxu1 %v8645_v45  ;;  %v8672_v42 = vld [vmem:[%s11152_s8 + $0x4f8] sm:$0xff]   ;;  %v10603_v45 = vpop.permute.xlu0 %8241 }
 0x4ad   : > { %4462 = vmatmul.mubr.bf16.vlgmr.msra.gmra.mrb[20].mxu1 %v4129_v3  ;;  %7780 = vmatpush3.bf16.msra.mxu0 %v8644_v35  ;;  %v8674_v3 = vld [vmem:[%s11152_s8 + $0x4b8] sm:$0xff]  }
 0x4ae   : > { %7794 = vmatpush3.bf16.msra.mxu1 %v8646_v48  ;;  %4806 = vmatprep.mubr.bf16.mxu1 %v4475_v4  ;;  %v8655_v4 = vld [vmem:[%s11152_s8 + $0x478] sm:$0xff]  }
 0x4af   : > { %7781 = vmatprep.subr.bf16.mxu0 %v8647_v36  ;;  %7795 = vmatprep.subr.bf16.mxu1 %v8649_v8  ;;  %v8675_v36 = vld [vmem:[%s11152_s8 + $0x560] sm:$0xff]  }
 0x4b1   : > { %7782 = vmatpush3.bf16.msra.mxu0 %v8648_v59 }
 0x4b2   : > { %7796 = vmatpush3.bf16.msra.mxu1 %v8650_v63  ;;  %7783 = vmatprep.subr.bf16.mxu0 %v8651_v16  ;;  %v8677_v63 = vld [vmem:[%s11152_s8 + $0x5c0] sm:$0xff]   ;;  %v8249_v16 = vunpack.i.h.bf16 %v10605_v12 }
 0x4b3   : > { %v7611_v24 = vpop.f32.mrb[8].mxu0  ;;  %7797 = vmatprep.subr.bf16.mxu1 %v8653_v57 }
 0x4b4   : > { %v7612_v37 = vpop.f32.mrb[9].mxu0 }
 0x4b5   : > { %v7613_v31 = vadd.f32 %v7612_v37, %v7611_v24  ;;  %7784 = vmatpush3.bf16.msra.mxu0 %v8652_v7  ;;  %v7614_v25 = vpop.f32.mrb[10].mxu0  ;;  %v8244_v24 = vunpack.i.h.bf16 %v10603_v45  ;;  %v10629_v37 = vpop.permute.xlu0 %8251 }
 0x4b6   : > { %7798 = vmatpush3.bf16.msra.mxu1 %v8654_v23  ;;  %v7615_v53 = vpop.f32.mrb[11].mxu0  ;;  %7785 = vmatprep.subr.bf16.mxu0 %v8655_v4  ;;  %v8676_v4 = vld [vmem:[%s11152_s8 + $0x520] sm:$0xff]  }
 0x4b7   : > { %v7616_v49 = vadd.f32 %v7615_v53, %v7614_v25  ;;  %7799 = vmatprep.subr.bf16.mxu1 %v8657_v15  ;;  %v8678_v15 = vld [vmem:[%s11152_s8 + $0x580] sm:$0xff]   ;;  %v7266_v53 = vpack.c.bf16 %v8249_v16, %v8244_v24 }
 0x4b9   : > { %7786 = vmatpush3.bf16.msra.mxu0 %v8656_v44  ;;  %v8681_v44 = vld [vmem:[%s11152_s8 + $0x5c8] sm:$0xff]   ;;  %v10660_v33 = vpop.permute.xlu0 %8256 }
 0x4ba   : > { %7800 = vmatpush3.bf16.msra.mxu1 %v8658_v62  ;;  %7815 = vmatprep.subr.bf16.mxu0 %v8659_v28  ;;  %v8680_v62 = vld [vmem:[%s11152_s8 + $0x528] sm:$0xff]  }
 0x4bb   : > { %7801 = vmatprep.subr.bf16.mxu1 %v8660_v46  ;;  %v8682_v28 = vld [vmem:[%s11152_s8 + $0x588] sm:$0xff]   ;;  %v8686_v46 = vld [vmem:[%s11152_s8 + $0x590] sm:$0xff]  }
 0x4bc   : > { %4766 = vmatmul.mubr.bf16.vlgmr.msra.gmra.mrb[24].mxu0 %v4472_v52  ;;  %v8670_v52 = vld [vmem:[%s11152_s8 + $0x4b0] sm:$0xff]  }
 0x4bd   : > { %7816 = vmatpush3.bf16.msra.mxu0 %v8661_v55  ;;  %5142 = vmatprep.mubr.bf16.mxu0 %v4850_v14  ;;  %v8248_v55 = vunpack.i.l.bf16 %v10605_v12  ;;  %v8243_v14 = vunpack.i.l.bf16 %v10603_v45  ;;  %v8711_v45 = vld [vmem:[%s11152_s8 + $0x668] sm:$0xff]  }
 0x4be   : > { %7802 = vmatpush3.bf16.msra.mxu1 %v8662_v18  ;;  %7817 = vmatprep.subr.bf16.mxu0 %v8663_v41  ;;  %v8259_v18 = vunpack.i.h.bf16 %v10660_v33  ;;  %v8258_v41 = vunpack.i.l.bf16 %v10660_v33 }
 0x4bf   : > { %7803 = vmatprep.subr.bf16.mxu1 %v8664_v29  ;;  %v8688_v29 = vld [vmem:[%s11152_s8 + $0x538] sm:$0xff]  }
 0x4c1   : > { %7818 = vmatpush3.bf16.msra.mxu0 %v8665_v10  ;;  %v8254_v10 = vunpack.i.h.bf16 %v10629_v37 }
 0x4c2   : > { %7804 = vmatpush3.bf16.msra.mxu1 %v8666_v20  ;;  %7819 = vmatprep.subr.bf16.mxu0 %v8667_v34  ;;  %v8253_v20 = vunpack.i.l.bf16 %v10629_v37  ;;  %v8690_v34 = vld [vmem:[%s11152_s8 + $0x598] sm:$0xff]   ;;  %v8744_v37 = vld [vmem:[%s11152_s8 + $0x728] sm:$0xff]  }
 0x4c3   : > { %7805 = vmatprep.subr.bf16.mxu1 %v8668_v40  ;;  %v8691_v40 = vld [vmem:[%s11152_s8 + $0x640] sm:$0xff]  }
 0x4c5   : > { %7820 = vmatpush3.bf16.msra.mxu0 %v8669_v43  ;;  %v7633_v35 = vpop.f32.mrb[8].mxu1  ;;  %v4836_v43 = vsel %vm1068_vm7, %v8248_v55, %v8238_v22  ;;  %v8693_v22 = vld [vmem:[%s11152_s8 + $0x600] sm:$0xff]  }
 0x4c6   : > { %7806 = vmatpush3.bf16.msra.mxu1 %v8670_v52  ;;  %v7634_v48 = vpop.f32.mrb[9].mxu1  ;;  %7821 = vmatprep.subr.bf16.mxu0 %v8671_v61  ;;  %v8692_v52 = vld [vmem:[%s11152_s8 + $0x5e0] sm:$0xff]   ;;  %v5217_v61 = vsel %vm851_vm3, %v8258_v41, %v8259_v18 }
 0x4c7   : > { %v7635_v8 = vadd.f32 %v7634_v48, %v7633_v35  ;;  %v7636_v59 = vpop.f32.mrb[10].mxu1  ;;  %7807 = vmatprep.subr.bf16.mxu1 %v8672_v42  ;;  %v4833_v42 = vsel %vm1068_vm7, %v8243_v14, %v8233_v54  ;;  %v8694_v48 = vld [vmem:[%s11152_s8 + $0x5a0] sm:$0xff]   ;;  %v8695_v54 = vld [vmem:[%s11152_s8 + $0x648] sm:$0xff]  }
 0x4c8   : > { %v7637_v57 = vpop.f32.mrb[11].mxu1  ;;  %v4849_v35 = vpack.c.bf16 %v4836_v43, %v4833_v42  ;;  %v8709_v55 = vld [vmem:[%s11152_s8 + $0x6c0] sm:$0xff]   ;;  %v8717_v43 = vld [vmem:[%s11152_s8 + $0x6d0] sm:$0xff]   ;;  %v8719_v42 = vld [vmem:[%s11152_s8 + $0x678] sm:$0xff]  }
 0x4c9   : > { %v10620_v7 = vadd.f32 %v7635_v8, %v7613_v31  ;;  %7822 = vmatpush3.bf16.msra.mxu0 %v8673_v39  ;;  %v7638_v23 = vadd.f32 %v7637_v57, %v7636_v59  ;;  %v8679_v31 = vld [vmem:[%s11152_s8 + $0x568] sm:$0xff]   ;;  %v5214_v39 = vsel %vm851_vm3, %v8253_v20, %v8254_v10  ;;  %v10720_v8 = vpop.permute.xlu1 %8261  ;;  %v8699_v57 = vld [vmem:[%s11152_s8 + $0x650] sm:$0xff]   ;;  %v8708_v14 = vld [vmem:[%s11152_s8 + $0x620] sm:$0xff]  }
 0x4ca   : > { %7808 = vmatpush3.bf16.msra.mxu1 %v8674_v3  ;;  %7823 = vmatprep.subr.bf16.mxu0 %v8675_v36  ;;  %v5231_v3 = vpack.c.bf16 %v5217_v61, %v5214_v39  ;;  %v8696_v36 = vld [vmem:[%s11152_s8 + $0x5e8] sm:$0xff]   ;;  %v8718_v61 = vld [vmem:[%s11152_s8 + $0x690] sm:$0xff]   ;;  %v8722_v39 = vld [vmem:[%s11152_s8 + $0x698] sm:$0xff]  }
 0x4cb   : > { %v10631_v25 = vadd.f32 %v7638_v23, %v7616_v49  ;;  %7837 = vmatprep.subr.bf16.mxu1 %v8677_v63  ;;  %v8683_v49 = vld [vmem:[%s11152_s8 + $0x570] sm:$0xff]   ;;  %v8697_v59 = vld [vmem:[%s11152_s8 + $0x608] sm:$0xff]  }
 0x4cc   : > { %v8698_v63 = vld [vmem:[%s11152_s8 + $0x5a8] sm:$0xff]   ;;  %v8700_v23 = vld [vmem:[%s11152_s8 + $0x5f0] sm:$0xff]  }
 0x4cd   : > { %4807 = vmatmul.mubr.bf16.vlgmr.msra.gmra.mrb[24].mxu1 %v4474_v27  ;;  %7824 = vmatpush3.bf16.msra.mxu0 %v8676_v4  ;;  %v8684_v27 = vld [vmem:[%s11152_s8 + $0x530] sm:$0xff]  }
 0x4ce   : > { %7838 = vmatpush3.bf16.msra.mxu1 %v8678_v15  ;;  %7267 = vmatprep.mubr.msk.bf16.mxu1 %vm10249_vm13, %v7266_v53  ;;  %v8701_v4 = vld [vmem:[%s11152_s8 + $0x610] sm:$0xff]   ;;  %v10737_v15 = vpop.permute.xlu1 %8266  ;;  %v8704_v53 = vld [vmem:[%s11152_s8 + $0x5f8] sm:$0xff]  }
 0x4cf   : > { %7825 = vmatprep.subr.bf16.mxu0 %v8679_v31  ;;  %7839 = vmatprep.subr.bf16.mxu1 %v8681_v44  ;;  %v8702_v31 = vld [vmem:[%s11152_s8 + $0x5b0] sm:$0xff]   ;;  %v8703_v44 = vld [vmem:[%s11152_s8 + $0x658] sm:$0xff]  }
 0x4d1   : > { %7826 = vmatpush3.bf16.msra.mxu0 %v8680_v62  ;;  %v8269_v62 = vunpack.i.h.bf16 %v10737_v15 }
 0x4d2   : > { %7840 = vmatpush3.bf16.msra.mxu1 %v8682_v28  ;;  %7827 = vmatprep.subr.bf16.mxu0 %v8683_v49  ;;  %v8268_v28 = vunpack.i.l.bf16 %v10737_v15  ;;  %v8705_v49 = vld [vmem:[%s11152_s8 + $0x618] sm:$0xff]   ;;  %v8742_v15 = vld [vmem:[%s11152_s8 + $0x780] sm:$0xff]  }
 0x4d3   : > { %7841 = vmatprep.subr.bf16.mxu1 %v8685_v26  ;;  %v8706_v26 = vld [vmem:[%s11152_s8 + $0x5b8] sm:$0xff]  }
 0x4d5   : > { %7828 = vmatpush3.bf16.msra.mxu0 %v8684_v27  ;;  %v8707_v27 = vld [vmem:[%s11152_s8 + $0x660] sm:$0xff]  }
 0x4d6   : > { %7842 = vmatpush3.bf16.msra.mxu1 %v8686_v46  ;;  %7829 = vmatprep.subr.bf16.mxu0 %v8687_v50  ;;  %v8264_v46 = vunpack.i.h.bf16 %v10720_v8  ;;  %v8263_v50 = vunpack.i.l.bf16 %v10720_v8  ;;  %v8745_v8 = vld [vmem:[%s11152_s8 + $0x7c8] sm:$0xff]  }
 0x4d7   : > { %7843 = vmatprep.subr.bf16.mxu1 %v8689_v38  ;;  %v4838_v38 = vsel %vm1068_vm7, %v8239_v58, %v8249_v16  ;;  %v8712_v16 = vld [vmem:[%s11152_s8 + $0x628] sm:$0xff]  }
 0x4d8   : > { %v5216_v12 = vsel %vm851_vm3, %v8263_v50, %v8264_v46  ;;  %v5215_v46 = vsel %vm851_vm3, %v8254_v10, %v8263_v50  ;;  %v8746_v10 = vld [vmem:[%s11152_s8 + $0x788] sm:$0xff]   ;;  %v8749_v50 = vld [vmem:[%s11152_s8 + $0x7d0] sm:$0xff]  }
 0x4d9   : > { %7830 = vmatpush3.bf16.msra.mxu0 %v8688_v29  ;;  %v5219_v29 = vsel %vm851_vm3, %v8268_v28, %v8269_v62  ;;  %v8739_v62 = vld [vmem:[%s11152_s8 + $0x760] sm:$0xff]  }
 0x4da   : > { %7844 = vmatpush3.bf16.msra.mxu1 %v8690_v34  ;;  %7859 = vmatprep.subr.bf16.mxu0 %v8691_v40  ;;  %v4835_v34 = vsel %vm1068_vm7, %v8234_v1, %v8244_v24  ;;  %v5233_v1 = vpack.c.bf16 %v5219_v29, %v5216_v12  ;;  %v8714_v24 = vld [vmem:[%s11152_s8 + $0x688] sm:$0xff]   ;;  %v8715_v40 = vld [vmem:[%s11152_s8 + $0x670] sm:$0xff]  }
 0x4db   : > { %7845 = vmatprep.subr.bf16.mxu1 %v8692_v52  ;;  %v4851_v58 = vpack.c.bf16 %v4838_v38, %v4835_v34  ;;  %v8716_v52 = vld [vmem:[%s11152_s8 + $0x630] sm:$0xff]   ;;  %v10943_v38 = vpop.permute.xlu0 %8271 }
 0x4dc   : > { %5143 = vmatmul.mubr.bf16.vlgmr.msra.gmra.mrb[28].mxu0 %v4849_v35  ;;  %v8720_v35 = vld [vmem:[%s11152_s8 + $0x638] sm:$0xff]   ;;  %v8273_v12 = vunpack.i.l.bf16 %v10943_v38 }
 0x4dd   : > { %7860 = vmatpush3.bf16.msra.mxu0 %v8693_v22  ;;  %5523 = vmatprep.mubr.bf16.mxu0 %v5231_v3  ;;  %v8721_v22 = vld [vmem:[%s11152_s8 + $0x6d8] sm:$0xff]   ;;  %v8725_v3 = vld [vmem:[%s11152_s8 + $0x700] sm:$0xff]  }
 0x4de   : > { %7846 = vmatpush3.bf16.msra.mxu1 %v8694_v48  ;;  %7861 = vmatprep.subr.bf16.mxu0 %v8695_v54  ;;  %v8723_v48 = vld [vmem:[%s11152_s8 + $0x740] sm:$0xff]  }
 0x4df   : > { %7847 = vmatprep.subr.bf16.mxu1 %v8696_v36  ;;  %v8724_v54 = vld [vmem:[%s11152_s8 + $0x6e0] sm:$0xff]   ;;  %v7367_v36 = vpack.c.bf16 %v8258_v41, %v8253_v20  ;;  %v8728_v41 = vld [vmem:[%s11152_s8 + $0x6e8] sm:$0xff]  }
 0x4e0   : > { %v8729_v20 = vld [vmem:[%s11152_s8 + $0x708] sm:$0xff]  }
 0x4e1   : > { %7862 = vmatpush3.bf16.msra.mxu0 %v8697_v59 }
 0x4e2   : > { %7848 = vmatpush3.bf16.msra.mxu1 %v8698_v63  ;;  %7863 = vmatprep.subr.bf16.mxu0 %v8699_v57  ;;  %v8726_v63 = vld [vmem:[%s11152_s8 + $0x6a0] sm:$0xff]   ;;  %v8727_v57 = vld [vmem:[%s11152_s8 + $0x748] sm:$0xff]  }
 0x4e3   : > { %7849 = vmatprep.subr.bf16.mxu1 %v8700_v23  ;;  %v8730_v23 = vld [vmem:[%s11152_s8 + $0x6a8] sm:$0xff]  }
 0x4e5   : > { %7864 = vmatpush3.bf16.msra.mxu0 %v8701_v4  ;;  %v8735_v4 = vld [vmem:[%s11152_s8 + $0x758] sm:$0xff]  }
 0x4e6   : > { %7850 = vmatpush3.bf16.msra.mxu1 %v8702_v31  ;;  %7865 = vmatprep.subr.bf16.mxu0 %v8703_v44  ;;  %v8736_v31 = vld [vmem:[%s11152_s8 + $0x6f8] sm:$0xff]  }
 0x4e7   : > { %7851 = vmatprep.subr.bf16.mxu1 %v8704_v53  ;;  %v8737_v44 = vld [vmem:[%s11152_s8 + $0x718] sm:$0xff]  }
 0x4e8   : > { %v8738_v53 = vld [vmem:[%s11152_s8 + $0x6b8] sm:$0xff]  }
 0x4e9   : > { %7866 = vmatpush3.bf16.msra.mxu0 %v8705_v49  ;;  %v8741_v49 = vld [vmem:[%s11152_s8 + $0x7c0] sm:$0xff]  }
 0x4ea   : > { %7852 = vmatpush3.bf16.msra.mxu1 %v8706_v26  ;;  %7867 = vmatprep.subr.bf16.mxu0 %v8707_v27  ;;  %v5218_v26 = vsel %vm851_vm3, %v8259_v18, %v8268_v28  ;;  %v8740_v27 = vld [vmem:[%s11152_s8 + $0x720] sm:$0xff]   ;;  %v8743_v18 = vld [vmem:[%s11152_s8 + $0x768] sm:$0xff]   ;;  %v8747_v28 = vld [vmem:[%s11152_s8 + $0x770] sm:$0xff]  }
 0x4eb   : > { %7881 = vmatprep.subr.bf16.mxu1 %v8709_v55  ;;  %v5232_v33 = vpack.c.bf16 %v5218_v26, %v5215_v46  ;;  %v10932_v55 = vpop.permute.xlu1 %8276  ;;  %v8783_v46 = vld [vmem:[%s11152_s8 + $0x878] sm:$0xff]  }
 0x4ec   : > { %v8279_v29 = vunpack.i.h.bf16 %v10932_v55  ;;  %v8278_v34 = vunpack.i.l.bf16 %v10932_v55 }
 0x4ed   : > { %5184 = vmatmul.mubr.bf16.vlgmr.msra.gmra.mrb[28].mxu1 %v4851_v58  ;;  %7868 = vmatpush3.bf16.msra.mxu0 %v8708_v14  ;;  %v8753_v14 = vld [vmem:[%s11152_s8 + $0x7d8] sm:$0xff]   ;;  %v8274_v58 = vunpack.i.h.bf16 %v10943_v38 }
 0x4ee   : > { %7882 = vmatpush3.bf16.msra.mxu1 %v8710_v56  ;;  %5564 = vmatprep.mubr.bf16.mxu1 %v5233_v1  ;;  %v8752_v56 = vld [vmem:[%s11152_s8 + $0x738] sm:$0xff]   ;;  %v8756_v1 = vld [vmem:[%s11152_s8 + $0x7e0] sm:$0xff]  }
 0x4ef   : > { %7869 = vmatprep.subr.bf16.mxu0 %v8711_v45  ;;  %7883 = vmatprep.subr.bf16.mxu1 %v8713_v21  ;;  %v8754_v45 = vld [vmem:[%s11152_s8 + $0x798] sm:$0xff]   ;;  %v8755_v21 = vld [vmem:[%s11152_s8 + $0x840] sm:$0xff]  }
 0x4f1   : > { %7870 = vmatpush3.bf16.msra.mxu0 %v8712_v16  ;;  %v5940_v16 = vsel %vm1068_vm7, %v8278_v34, %v8279_v29 }
 0x4f2   : > { %7884 = vmatpush3.bf16.msra.mxu1 %v8714_v24  ;;  %7871 = vmatprep.subr.bf16.mxu0 %v8715_v40  ;;  %v8757_v24 = vld [vmem:[%s11152_s8 + $0x800] sm:$0xff]   ;;  %v5937_v40 = vsel %vm1068_vm7, %v8273_v12, %v8274_v58 }
 0x4f3   : > { %7885 = vmatprep.subr.bf16.mxu1 %v8717_v43  ;;  %v8758_v43 = vld [vmem:[%s11152_s8 + $0x7a0] sm:$0xff]  }
 0x4f5   : > { %7872 = vmatpush3.bf16.msra.mxu0 %v8716_v52  ;;  %v8759_v52 = vld [vmem:[%s11152_s8 + $0x848] sm:$0xff]  }
 0x4f6   : > { %7886 = vmatpush3.bf16.msra.mxu1 %v8718_v61  ;;  %7873 = vmatprep.subr.bf16.mxu0 %v8719_v42  ;;  %v5953_v61 = vpack.c.bf16 %v5940_v16, %v5937_v40  ;;  %v8760_v42 = vld [vmem:[%s11152_s8 + $0x7e8] sm:$0xff]  }
 0x4f7   : > { %7887 = vmatprep.subr.bf16.mxu1 %v8721_v22  ;;  %v8761_v22 = vld [vmem:[%s11152_s8 + $0x808] sm:$0xff]  }
 0x4f9   : > { %7874 = vmatpush3.bf16.msra.mxu0 %v8720_v35  ;;  %v8762_v35 = vld [vmem:[%s11152_s8 + $0x7a8] sm:$0xff]  }
 0x4fa   : > { %7888 = vmatpush3.bf16.msra.mxu1 %v8722_v39  ;;  %7903 = vmatprep.subr.bf16.mxu0 %v8723_v48  ;;  %v8763_v39 = vld [vmem:[%s11152_s8 + $0x850] sm:$0xff]   ;;  %v8767_v48 = vld [vmem:[%s11152_s8 + $0x858] sm:$0xff]  }
 0x4fb   : > { %7889 = vmatprep.subr.bf16.mxu1 %v8724_v54  ;;  %v8768_v54 = vld [vmem:[%s11152_s8 + $0x7f8] sm:$0xff]  }
 0x4fc   : > { %7368 = vmatmul.mubr.msk.bf16.vlgmr.msra.gmra.mrb[32].mxu0 %vm10168_vm12, %v7367_v36  ;;  %v8769_v36 = vld [vmem:[%s11152_s8 + $0x818] sm:$0xff]  }
 0x4fd   : > { %7904 = vmatpush3.bf16.msra.mxu0 %v8725_v3  ;;  %7467 = vmatprep.mubr.msk.bf16.mxu0 %vm10837_vm14, %v7466_v6  ;;  %v8734_v6 = vld [vmem:[%s11152_s8 + $0x6b0] sm:$0xff]   ;;  %v11015_v3 = vpop.permute.xlu1 %8286 }
 0x4fe   : > { %7890 = vmatpush3.bf16.msra.mxu1 %v8726_v63  ;;  %7905 = vmatprep.subr.bf16.mxu0 %v8727_v57  ;;  %v8770_v63 = vld [vmem:[%s11152_s8 + $0x7b8] sm:$0xff]   ;;  %v8771_v57 = vld [vmem:[%s11152_s8 + $0x860] sm:$0xff]  }
 0x4ff   : > { %7891 = vmatprep.subr.bf16.mxu1 %v8728_v41  ;;  %v11026_v41 = vpop.permute.xlu0 %8281 }
 0x501   : > { %7906 = vmatpush3.bf16.msra.mxu0 %v8729_v20  ;;  %v8773_v20 = vld [vmem:[%s11152_s8 + $0x8c0] sm:$0xff]  }
 0x502   : > { %7892 = vmatpush3.bf16.msra.mxu1 %v8730_v23  ;;  %7907 = vmatprep.subr.bf16.mxu0 %v8731_v0  ;;  %v8289_v23 = vunpack.i.h.bf16 %v11015_v3  ;;  %v8772_v0 = vld [vmem:[%s11152_s8 + $0x820] sm:$0xff]  }
 0x503   : > { %7893 = vmatprep.subr.bf16.mxu1 %v8732_v19  ;;  %v8284_v19 = vunpack.i.h.bf16 %v11026_v41 }
 0x505   : > { %7908 = vmatpush3.bf16.msra.mxu0 %v8733_v13  ;;  %v8774_v13 = vld [vmem:[%s11152_s8 + $0x880] sm:$0xff]  }
 0x506   : > { %7894 = vmatpush3.bf16.msra.mxu1 %v8734_v6  ;;  %7909 = vmatprep.subr.bf16.mxu0 %v8735_v4  ;;  %v8775_v6 = vld [vmem:[%s11152_s8 + $0x868] sm:$0xff]  }
 0x507   : > { %7895 = vmatprep.subr.bf16.mxu1 %v8736_v31  ;;  %v8777_v4 = vld [vmem:[%s11152_s8 + $0x8c8] sm:$0xff]   ;;  %v7574_v31 = vpack.c.bf16 %v8289_v23, %v8284_v19 }
 0x509   : > { %7910 = vmatpush3.bf16.msra.mxu0 %v8737_v44  ;;  %v8776_v44 = vld [vmem:[%s11152_s8 + $0x828] sm:$0xff]  }
 0x50a   : > { %7896 = vmatpush3.bf16.msra.mxu1 %v8738_v53  ;;  %7911 = vmatprep.subr.bf16.mxu0 %v8739_v62  ;;  %v8778_v53 = vld [vmem:[%s11152_s8 + $0x888] sm:$0xff]  }
 0x50b   : > { %7925 = vmatprep.subr.bf16.mxu1 %v8741_v49  ;;  %v8780_v49 = vld [vmem:[%s11152_s8 + $0x830] sm:$0xff]  }
 0x50d   : > { %5565 = vmatmul.mubr.bf16.vlgmr.msra.gmra.mrb[32].mxu1 %v5232_v33  ;;  %7912 = vmatpush3.bf16.msra.mxu0 %v8740_v27  ;;  %v8782_v27 = vld [vmem:[%s11152_s8 + $0x890] sm:$0xff]  }
 0x50e   : > { %7926 = vmatpush3.bf16.msra.mxu1 %v8742_v15  ;;  %7473 = vmatprep.mubr.msk.bf16.mxu1 %vm10837_vm14, %v7472_v32  ;;  %v8751_v32 = vld [vmem:[%s11152_s8 + $0x778] sm:$0xff]   ;;  %v8288_v15 = vunpack.i.l.bf16 %v11015_v3 }
 0x50f   : > { %7913 = vmatprep.subr.bf16.mxu0 %v8743_v18  ;;  %7927 = vmatprep.subr.bf16.mxu1 %v8745_v8  ;;  %v8785_v8 = vld [vmem:[%s11152_s8 + $0x8d8] sm:$0xff]  }
 0x511   : > { %7914 = vmatpush3.bf16.msra.mxu0 %v8744_v37  ;;  %v8283_v37 = vunpack.i.l.bf16 %v11026_v41 }
 0x512   : > { %7928 = vmatpush3.bf16.msra.mxu1 %v8746_v10  ;;  %7915 = vmatprep.subr.bf16.mxu0 %v8747_v28  ;;  %v8784_v28 = vld [vmem:[%s11152_s8 + $0x838] sm:$0xff]  }
 0x513   : > { %7929 = vmatprep.subr.bf16.mxu1 %v8749_v50  ;;  %v5939_v50 = vsel %vm1068_vm7, %v8288_v15, %v8278_v34  ;;  %v8790_v34 = vld [vmem:[%s11152_s8 + $0x8a8] sm:$0xff]  }
 0x515   : > { %7916 = vmatpush3.bf16.msra.mxu0 %v8748_v5  ;;  %v5936_v5 = vsel %vm1068_vm7, %v8283_v37, %v8273_v12  ;;  %v8791_v12 = vld [vmem:[%s11152_s8 + $0x8f0] sm:$0xff]  }
 0x516   : > { %7930 = vmatpush3.bf16.msra.mxu1 %v8750_v30  ;;  %7917 = vmatprep.subr.bf16.mxu0 %v8751_v32  ;;  %v5952_v30 = vpack.c.bf16 %v5939_v50, %v5936_v5  ;;  %v8788_v32 = vld [vmem:[%s11152_s8 + $0x8a0] sm:$0xff]  }
 0x517   : > { %7931 = vmatprep.subr.bf16.mxu1 %v8753_v14  ;;  %v8789_v14 = vld [vmem:[%s11152_s8 + $0x8e8] sm:$0xff]  }
 0x519   : > { %7918 = vmatpush3.bf16.msra.mxu0 %v8752_v56 }
 0x51a   : > { %7932 = vmatpush3.bf16.msra.mxu1 %v8754_v45  ;;  %7947 = vmatprep.subr.bf16.mxu0 %v8755_v21 }
 0x51b   : > { %7933 = vmatprep.subr.bf16.mxu1 %v8756_v1 }
 0x51c   : > { %7470 = vmatmul.mubr.msk.bf16.vlgmr.msra.gmra.mrb[36].mxu0 %vm10837_vm14, %v7469_v17  ;;  %v8766_v17 = vld [vmem:[%s11152_s8 + $0x7b0] sm:$0xff]  }
 0x51d   : > { %7948 = vmatpush3.bf16.msra.mxu0 %v8757_v24  ;;  %6245 = vmatprep.mubr.bf16.mxu0 %v5953_v61  ;;  %v8792_v24 = vld [vmem:[%s11152_s8 + $0x8b0] sm:$0xff]  }
 0x51e   : > { %7934 = vmatpush3.bf16.msra.mxu1 %v8758_v43  ;;  %7949 = vmatprep.subr.bf16.mxu0 %v8759_v52  ;;  %v8793_v52 = vld [vmem:[%s11152_s8 + $0x8f8] sm:$0xff]  }
 0x51f   : > { %7935 = vmatprep.subr.bf16.mxu1 %v8760_v42  ;;  %v8794_v42 = vld [vmem:[%s11152_s8 + $0x8b8] sm:$0xff]  }
 0x521   : > { %7950 = vmatpush3.bf16.msra.mxu0 %v8761_v22  ;;  %v5941_v22 = vsel %vm1068_vm7, %v8279_v29, %v8289_v23 }
 0x522   : > { %7936 = vmatpush3.bf16.msra.mxu1 %v8762_v35  ;;  %7951 = vmatprep.subr.bf16.mxu0 %v8763_v39  ;;  %v5938_v35 = vsel %vm1068_vm7, %v8274_v58, %v8284_v19 }
 0x523   : > { %7937 = vmatprep.subr.bf16.mxu1 %v8764_v47  ;;  %v5954_v39 = vpack.c.bf16 %v5941_v22, %v5938_v35 }
 0x525   : > { %7952 = vmatpush3.bf16.msra.mxu0 %v8765_v60 }
 0x526   : > { %7938 = vmatpush3.bf16.msra.mxu1 %v8766_v17  ;;  %7953 = vmatprep.subr.bf16.mxu0 %v8767_v48 }
 0x527   : > { %7939 = vmatprep.subr.bf16.mxu1 %v8768_v54 }
 0x529   : > { %7954 = vmatpush3.bf16.msra.mxu0 %v8769_v36 }
 0x52a   : > { %7940 = vmatpush3.bf16.msra.mxu1 %v8770_v63  ;;  %7955 = vmatprep.subr.bf16.mxu0 %v8771_v57 }
 0x52b   : > { %7969 = vmatprep.subr.bf16.mxu1 %v8773_v20 }
 0x52d   : > { %7476 = vmatmul.mubr.msk.bf16.vlgmr.msra.gmra.mrb[36].mxu1 %vm10837_vm14, %v7475_v11  ;;  %7956 = vmatpush3.bf16.msra.mxu0 %v8772_v0  ;;  %v8781_v11 = vld [vmem:[%s11152_s8 + $0x8d0] sm:$0xff]  }
 0x52e   : > { %7970 = vmatpush3.bf16.msra.mxu1 %v8774_v13  ;;  %7575 = vmatprep.mubr.msk.bf16.mxu1 %vm10249_vm13, %v7574_v31 }
 0x52f   : > { %v7655_v9 = vpop.f32.mrb[12].mxu0  ;;  %7957 = vmatprep.subr.bf16.mxu0 %v8775_v6  ;;  %7971 = vmatprep.subr.bf16.mxu1 %v8777_v4 }
 0x530   : > { %v7656_v59 = vpop.f32.mrb[13].mxu0 }
 0x531   : > { %v7657_v62 = vadd.f32 %v7656_v59, %v7655_v9  ;;  %7958 = vmatpush3.bf16.msra.mxu0 %v8776_v44  ;;  %v7658_v2 = vpop.f32.mrb[14].mxu0 }
 0x532   : > { %7972 = vmatpush3.bf16.msra.mxu1 %v8778_v53  ;;  %v7659_v26 = vpop.f32.mrb[15].mxu0  ;;  %7959 = vmatprep.subr.bf16.mxu0 %v8779_v51 }
 0x533   : > { %v3671_v33 = vadd.f32 %v7657_v62, %v10620_v7  ;;  %v7660_v18 = vadd.f32 %v7659_v26, %v7658_v2  ;;  %7973 = vmatprep.subr.bf16.mxu1 %v8781_v11  ;;  %v8786_v7 = vld [vmem:[%s11152_s8 + $0x898] sm:$0xff]  }
 0x535   : > { %v3674_v10 = vadd.f32 %v7660_v18, %v10631_v25  ;;  %7960 = vmatpush3.bf16.msra.mxu0 %v8780_v49  ;;  %v8787_v25 = vld [vmem:[%s11152_s8 + $0x8e0] sm:$0xff]  }
 0x536   : > { %7974 = vmatpush3.bf16.msra.mxu1 %v8782_v27  ;;  %7961 = vmatprep.subr.bf16.mxu0 %v8783_v46 }
 0x537   : > { %7975 = vmatprep.subr.bf16.mxu1 %v8785_v8 }
 0x539   : > { %7962 = vmatpush3.bf16.msra.mxu0 %v8784_v28 }
 0x53a   : > { %7976 = vmatpush3.bf16.msra.mxu1 %v8786_v7 }
 0x53b   : > { %7977 = vmatprep.subr.bf16.mxu1 %v8787_v25 }
 0x53c   : > { %6246 = vmatmul.mubr.bf16.vlgmr.msra.gmra.mrb[40].mxu0 %v5952_v30 }
 0x53e   : > { %7978 = vmatpush3.bf16.msra.mxu1 %v8788_v32 }
 0x53f   : > { %v7677_v56 = vpop.f32.mrb[12].mxu1  ;;  %7979 = vmatprep.subr.bf16.mxu1 %v8789_v14 }
 0x540   : > { %v7678_v45 = vpop.f32.mrb[13].mxu1 }
 0x541   : > { %v7679_v21 = vadd.f32 %v7678_v45, %v7677_v56  ;;  %v7680_v1 = vpop.f32.mrb[14].mxu1 }
 0x542   : > { %7980 = vmatpush3.bf16.msra.mxu1 %v8790_v34  ;;  %v7681_v16 = vpop.f32.mrb[15].mxu1 }
 0x543   : > { %v3712_v40 = vadd.f32 %v7679_v21, %v3671_v33  ;;  %v7682_v43 = vadd.f32 %v7681_v16, %v7680_v1  ;;  %7981 = vmatprep.subr.bf16.mxu1 %v8791_v12 }
 0x545   : > { %v3715_v61 = vadd.f32 %v7682_v43, %v3674_v10 }
 0x546   : > { %7982 = vmatpush3.bf16.msra.mxu1 %v8792_v24 }
 0x547   : > { %7983 = vmatprep.subr.bf16.mxu1 %v8793_v52 }
 0x54a   : > { %7984 = vmatpush3.bf16.msra.mxu1 %v8794_v42 }
 0x54d   : > { %6287 = vmatmul.mubr.bf16.vlgmr.msra.gmra.mrb[40].mxu1 %v5954_v39 }
 0x54f   : > { %v7699_v47 = vpop.f32.mrb[16].mxu0 }
 0x550   : > { %v7700_v60 = vpop.f32.mrb[17].mxu0 }
 0x551   : > { %v7701_v17 = vadd.f32 %v7700_v60, %v7699_v47  ;;  %v7702_v48 = vpop.f32.mrb[18].mxu0 }
 0x552   : > { %v7703_v54 = vpop.f32.mrb[19].mxu0 }
 0x553   : > { %v7704_v36 = vadd.f32 %v7703_v54, %v7702_v48 }
 0x560   : > { %v7721_v3 = vpop.f32.mrb[16].mxu1 }
 0x561   : > { %v7722_v63 = vpop.f32.mrb[17].mxu1 }
 0x562   : > { %v7723_v55 = vadd.f32 %v7722_v63, %v7721_v3  ;;  %v7724_v57 = vpop.f32.mrb[18].mxu1 }
 0x563   : > { %v7725_v29 = vpop.f32.mrb[19].mxu1 }
 0x564   : > { %v4087_v20 = vadd.f32 %v7723_v55, %v7701_v17  ;;  %v7726_v41 = vadd.f32 %v7725_v29, %v7724_v57 }
 0x566   : > { %v4093_v23 = vadd.f32 %v4087_v20, %v3712_v40  ;;  %v4090_v38 = vadd.f32 %v7726_v41, %v7704_v36 }
 0x568   : > { %v4094_v0 = vadd.f32 %v4090_v38, %v3715_v61 }
 0x56f   : > { %v7743_v58 = vpop.f32.mrb[20].mxu0 }
 0x570   : > { %v7744_v19 = vpop.f32.mrb[21].mxu0 }
 0x571   : > { %v7745_v13 = vadd.f32 %v7744_v19, %v7743_v58  ;;  %v7746_v6 = vpop.f32.mrb[22].mxu0 }
 0x572   : > { %v7747_v4 = vpop.f32.mrb[23].mxu0 }
 0x573   : > { %v7748_v31 = vadd.f32 %v7747_v4, %v7746_v6 }
 0x580   : > { %v7765_v44 = vpop.f32.mrb[20].mxu1 }
 0x581   : > { %v7766_v53 = vpop.f32.mrb[21].mxu1 }
 0x582   : > { %v7767_v51 = vadd.f32 %v7766_v53, %v7765_v44  ;;  %v7768_v9 = vpop.f32.mrb[22].mxu1 }
 0x583   : > { %v7769_v11 = vpop.f32.mrb[23].mxu1 }
 0x584   : > { %v4464_v59 = vadd.f32 %v7767_v51, %v7745_v13  ;;  %v7770_v62 = vadd.f32 %v7769_v11, %v7768_v9 }
 0x586   : > { %v4470_v2 = vadd.f32 %v4464_v59, %v4093_v23  ;;  %v4467_v49 = vadd.f32 %v7770_v62, %v7748_v31 }
 0x588   : > { %v4471_v26 = vadd.f32 %v4467_v49, %v4094_v0 }
 0x58f   : > { %v7787_v27 = vpop.f32.mrb[24].mxu0 }
 0x590   : > { %v7788_v46 = vpop.f32.mrb[25].mxu0 }
 0x591   : > { %v7789_v15 = vadd.f32 %v7788_v46, %v7787_v27  ;;  %v7790_v33 = vpop.f32.mrb[26].mxu0 }
 0x592   : > { %v7791_v18 = vpop.f32.mrb[27].mxu0 }
 0x593   : > { %v7792_v8 = vadd.f32 %v7791_v18, %v7790_v33 }
 0x5a0   : > { %v7809_v37 = vpop.f32.mrb[24].mxu1 }
 0x5a1   : > { %v7810_v10 = vpop.f32.mrb[25].mxu1 }
 0x5a2   : > { %v7811_v28 = vadd.f32 %v7810_v10, %v7809_v37  ;;  %v7812_v7 = vpop.f32.mrb[26].mxu1 }
 0x5a3   : > { %v7813_v50 = vpop.f32.mrb[27].mxu1 }
 0x5a4   : > { %v4809_v25 = vadd.f32 %v7811_v28, %v7789_v15  ;;  %v7814_v5 = vadd.f32 %v7813_v50, %v7812_v7 }
 0x5a6   : > { %v4815_v30 = vadd.f32 %v4809_v25, %v4470_v2  ;;  %v4812_v32 = vadd.f32 %v7814_v5, %v7792_v8 }
 0x5a8   : > { %v4816_v14 = vadd.f32 %v4812_v32, %v4471_v26 }
 0x5af   : > { %v7831_v34 = vpop.f32.mrb[28].mxu0 }
 0x5b0   : > { %v7832_v56 = vpop.f32.mrb[29].mxu0 }
 0x5b1   : > { %v7833_v12 = vadd.f32 %v7832_v56, %v7831_v34  ;;  %v7834_v45 = vpop.f32.mrb[30].mxu0 }
 0x5b2   : > { %v7835_v21 = vpop.f32.mrb[31].mxu0 }
 0x5b3   : > { %v7836_v1 = vadd.f32 %v7835_v21, %v7834_v45  ;;  %v6314_v45 = vpop.permute.xlu1 %6313 }
 0x5c0   : > { %v7853_v16 = vpop.f32.mrb[28].mxu1 }
 0x5c1   : > { %v7854_v24 = vpop.f32.mrb[29].mxu1 }
 0x5c2   : > { %v7855_v40 = vadd.f32 %v7854_v24, %v7853_v16  ;;  %v7856_v43 = vpop.f32.mrb[30].mxu1  ;;  %v8849_v24 = vld [vmem:[%s9077_s28] sm:$0xff] }
 0x5c3   : > { %v7857_v52 = vpop.f32.mrb[31].mxu1 }
 0x5c4   : > { %v5186_v61 = vadd.f32 %v7855_v40, %v7833_v12  ;;  %v7858_v42 = vadd.f32 %v7857_v52, %v7856_v43  ;;  %v6309_v12 = vpop.permute.xlu0 %6308  ;;  %v8850_v43 = vld [vmem:[%s9077_s28 + $0x8] sm:$0xff] }
 0x5c6   : > { %v5192_v22 = vadd.f32 %v5186_v61, %v4815_v30  ;;  %v5189_v35 = vadd.f32 %v7858_v42, %v7836_v1  ;;  %v7576_v30 = vld [vmem:[%s11153_s9] ss:$0 sm:$0xff] }
 0x5c8   : > { %v5193_v39 = vadd.f32 %v5189_v35, %v4816_v14 }
 0x5cf   : > { %v7875_v47 = vpop.f32.mrb[32].mxu0 }
 0x5d0   : > { %v7876_v60 = vpop.f32.mrb[33].mxu0 }
 0x5d1   : > { %v7877_v17 = vadd.f32 %v7876_v60, %v7875_v47  ;;  %v7878_v48 = vpop.f32.mrb[34].mxu0 }
 0x5d2   : > { %v7879_v54 = vpop.f32.mrb[35].mxu0 }
 0x5d3   : > { %v7880_v36 = vadd.f32 %v7879_v54, %v7878_v48 }
 0x5e0   : > { %v7897_v3 = vpop.f32.mrb[32].mxu1 }
 0x5e1   : > { %v7898_v63 = vpop.f32.mrb[33].mxu1 }
 0x5e2   : > { %v7899_v55 = vadd.f32 %v7898_v63, %v7897_v3  ;;  %v7900_v57 = vpop.f32.mrb[34].mxu1 }
 0x5e3   : > { %v7901_v29 = vpop.f32.mrb[35].mxu1 }
 0x5e4   : > { %v5567_v20 = vadd.f32 %v7899_v55, %v7877_v17  ;;  %v7902_v41 = vadd.f32 %v7901_v29, %v7900_v57 }
 0x5e6   : > { %v5573_v23 = vadd.f32 %v5567_v20, %v5192_v22  ;;  %v5570_v38 = vadd.f32 %v7902_v41, %v7880_v36 }
 0x5e8   : > { %v5574_v0 = vadd.f32 %v5570_v38, %v5193_v39 }
 0x5ef   : > { %v7919_v58 = vpop.f32.mrb[36].mxu0 }
 0x5f0   : > { %v7920_v19 = vpop.f32.mrb[37].mxu0 }
 0x5f1   : > { %v7921_v13 = vadd.f32 %v7920_v19, %v7919_v58  ;;  %v7922_v6 = vpop.f32.mrb[38].mxu0 }
 0x5f2   : > { %v7923_v4 = vpop.f32.mrb[39].mxu0 }
 0x5f3   : > { %v7924_v31 = vadd.f32 %v7923_v4, %v7922_v6 }
 0x600   : > { %v7941_v44 = vpop.f32.mrb[36].mxu1 }
 0x601   : > { %v7942_v53 = vpop.f32.mrb[37].mxu1 }
 0x602   : > { %v7943_v51 = vadd.f32 %v7942_v53, %v7941_v44  ;;  %v7944_v9 = vpop.f32.mrb[38].mxu1 }
 0x603   : > { %v7945_v11 = vpop.f32.mrb[39].mxu1 }
 0x604   : > { %v5912_v59 = vadd.f32 %v7943_v51, %v7921_v13  ;;  %v7946_v62 = vadd.f32 %v7945_v11, %v7944_v9 }
 0x606   : > { %v5918_v2 = vadd.f32 %v5912_v59, %v5573_v23  ;;  %v5915_v49 = vadd.f32 %v7946_v62, %v7924_v31 }
 0x608   : > { %v5919_v26 = vadd.f32 %v5915_v49, %v5574_v0 }
 0x60f   : > { %v7963_v27 = vpop.f32.mrb[40].mxu0 }
 0x610   : > { %v7964_v46 = vpop.f32.mrb[41].mxu0 }
 0x611   : > { %v7965_v15 = vadd.f32 %v7964_v46, %v7963_v27  ;;  %v7966_v33 = vpop.f32.mrb[42].mxu0 }
 0x612   : > { %v7967_v18 = vpop.f32.mrb[43].mxu0 }
 0x613   : > { %v7968_v8 = vadd.f32 %v7967_v18, %v7966_v33 }
 0x620   : > { %v7985_v37 = vpop.f32.mrb[40].mxu1 }
 0x621   : > { %v7986_v10 = vpop.f32.mrb[41].mxu1 }
 0x622   : > { %v7987_v28 = vadd.f32 %v7986_v10, %v7985_v37  ;;  %v7988_v7 = vpop.f32.mrb[42].mxu1 }
 0x623   : > { %v7989_v50 = vpop.f32.mrb[43].mxu1 }
 0x624   : > { %v6289_v25 = vadd.f32 %v7987_v28, %v7965_v15  ;;  %v7990_v5 = vadd.f32 %v7989_v50, %v7988_v7 }
 0x626   : > { %v6295_v32 = vadd.f32 %v6289_v25, %v5918_v2  ;;  %v6292_v14 = vadd.f32 %v7990_v5, %v7968_v8 }
 0x628   : > { %v6296_v34 = vadd.f32 %v6292_v14, %v5919_v26  ;;  %v6304_v56 = vadd.f32 %v7576_v30, %v6295_v32 }
 0x62a   : > { %v6305_v21 = vadd.f32 %v7576_v30, %v6296_v34  ;;  %v6316_v1 = vmul.f32 %v6309_v12, %v6304_v56 }
 0x62c   : > { %v6317_v16 = vmul.f32 %v6314_v45, %v6305_v21  ;;  %v6318_v40 = vadd.f32 %v8849_v24, %v6316_v1 }
 0x62e   : > { %v6319_v52 = vadd.f32 %v8850_v43, %v6317_v16  ;;  %6320 = vst.msk [vmem:[%s383_s18] sm:$0xff] %vm962_vm4, %v6318_v40 }
 0x630   : > { %6321 = vst.msk [vmem:[%s383_s18 + $0x8] sm:$0xff] %vm962_vm4, %v6319_v52 }
 0x631 PF: > { %s20_s13 = sadd.s32 1, %s8857_s13  }
 0x632   : > { %p17_p4 = scmp.ge.s32.totalorder %s20_s13, 4  }
 0x634   :  { %19 = sbr.rel (!%p17_p4) target bundleno = 1 (0x1), region = 109 }

</bundles_post_ra>
